<compile_context>
chip_gen: v7x
topology: tpu7x:2x2x1
jax: 0.10.0
libtpu: 0.0.40
codegen_flags: <defaults>
</compile_context>

<pallas_src>
import functools

import jax
import jax.numpy as jnp
from jax import lax
from jax.experimental import pallas as pl
from jax.experimental.pallas import tpu as pltpu


# ---------------------------------------------------------------------------
# Fused Pallas kernel: one grid step = one batch element
# ---------------------------------------------------------------------------
def _upsample_double_conv_kernel(x1_ref, x2_ref, upmat_ref,
                                 w1a_ref, w1b_ref, s1_ref, b1_ref,
                                 w2_ref, s2_ref, b2_ref,
                                 o_ref, xup, xskip, xmid,
                                 *, k, H, W, C1, C2, Cout):
    # x1_ref   : (1, H1*W1, C1)   decoder feature, spatially flattened (channels-last)
    # x2_ref   : (1, H, W, C2)    skip connection (channels-last)
    # upmat_ref: (H*W, H1*W1)     bilinear(align_corners=True, x2) + F.pad folded matrix
    # w1a_ref  : (k*k, C2, Cout)  conv1 weight, x2-channel group, per tap
    # w1b_ref  : (k*k, C1, Cout)  conv1 weight, upsampled-x1 channel group, per tap
    # w2_ref   : (k*k, Cout, Cout)
    # s*_ref/b*_ref: (1, Cout)    folded BN scale / bias (includes conv bias)
    # o_ref    : (1, H, W, Cout)
    # xup/xskip/xmid: VMEM halo-padded (H+2p, W+2p, C) staging buffers
    p = (k - 1) // 2
    HW = H * W

    # (1) bilinear 2x upsample of x1 (+ F.pad) as a single MXU matmul.
    up = jnp.dot(upmat_ref[...], x1_ref[0],
                 preferred_element_type=jnp.float32)           # (H*W, C1)

    # (2) build zero halo-padded inputs for conv1 entirely in VMEM.
    xup[...] = jnp.zeros_like(xup)
    xup[p:p + H, p:p + W, :] = up.reshape(H, W, C1)
    xskip[...] = jnp.zeros_like(xskip)
    xskip[p:p + H, p:p + W, :] = x2_ref[0]

    # (3) conv1 => BN => ReLU.  Each tap is a full-image matmul (M = H*W rows);
    #     the torch.cat([x2, up], dim=1) is realized by the split weight groups.
    acc = jnp.zeros((HW, Cout), jnp.float32)
    for t in range(k * k):
        dy, dx = t // k, t % k
        acc += jnp.dot(xskip[dy:dy + H, dx:dx + W, :].reshape(HW, C2),
                       w1a_ref[t], preferred_element_type=jnp.float32)
        acc += jnp.dot(xup[dy:dy + H, dx:dx + W, :].reshape(HW, C1),
                       w1b_ref[t], preferred_element_type=jnp.float32)
    y1 = jnp.maximum(acc * s1_ref[0] + b1_ref[0], 0.0)         # (H*W, Cout)

    # (4) conv2 => BN => ReLU (conv1 output never leaves VMEM).
    xmid[...] = jnp.zeros_like(xmid)
    xmid[p:p + H, p:p + W, :] = y1.reshape(H, W, Cout)
    acc2 = jnp.zeros((HW, Cout), jnp.float32)
    for t in range(k * k):
        dy, dx = t // k, t % k
        acc2 += jnp.dot(xmid[dy:dy + H, dx:dx + W, :].reshape(HW, Cout),
                        w2_ref[t], preferred_element_type=jnp.float32)
    y2 = jnp.maximum(acc2 * s2_ref[0] + b2_ref[0], 0.0)

    o_ref[0] = y2.reshape(H, W, Cout)


# ---------------------------------------------------------------------------
# Host-side helpers: interpolation matrix, wrapper, parameters
# ---------------------------------------------------------------------------
def _bilinear_matrix(out_size, in_size):
    """Row-stochastic matrix of torch bilinear interpolation with align_corners=True."""
    if in_size == 1:
        return jnp.ones((out_size, 1), jnp.float32)
    pos = jnp.arange(out_size) * (in_size - 1) / (out_size - 1)
    lo = jnp.clip(jnp.floor(pos), 0, in_size - 2).astype(jnp.int32)
    frac = (pos - lo).astype(jnp.float32)
    rows = jnp.arange(out_size)
    m = jnp.zeros((out_size, in_size), jnp.float32)
    m = m.at[rows, lo].add(1.0 - frac)
    m = m.at[rows, lo + 1].add(frac)
    return m


def _upsample_pad_matrix(H1, W1, H2, W2):
    """M such that M @ x1.reshape(H1*W1, C) == F.pad(upsample2x(x1)).reshape(H2*W2, C)."""
    Hu, Wu = 2 * H1, 2 * W1
    dY, dX = H2 - Hu, W2 - Wu
    assert dY >= 0 and dX >= 0, "x2 must be at least as large as the upsampled x1"
    Uh = jnp.zeros((H2, H1), jnp.float32)
    Uh = Uh.at[dY // 2:dY // 2 + Hu, :].set(_bilinear_matrix(Hu, H1))
    Uw = jnp.zeros((W2, W1), jnp.float32)
    Uw = Uw.at[dX // 2:dX // 2 + Wu, :].set(_bilinear_matrix(Wu, W1))
    return jnp.kron(Uh, Uw)                                    # (H2*W2, H1*W1)


def upsample_forward(x1_nchw, x2_nchw, params, k):
    """UpSample.forward: bilinear 2x up -> F.pad -> cat([x2, x1]) -> DoubleConv."""
    (w1, s1, b1), (w2, s2, b2) = params
    N, C1, H1, W1 = x1_nchw.shape
    N2, C2, H2, W2 = x2_nchw.shape
    assert N == N2 and k % 2 == 1
    Cin = C1 + C2
    Cout = w1.shape[-1]
    assert w1.shape == (k, k, Cin, Cout) and w2.shape == (k, k, Cout, Cout)
    p = (k - 1) // 2
    Hp, Wp = H2 + 2 * p, W2 + 2 * p

    # Boundary layout change only (torch NCHW -> channels-last); everything else
    # runs inside one fused pallas_call.
    x1r = jnp.transpose(x1_nchw, (0, 2, 3, 1)).reshape(N, H1 * W1, C1)
    x2r = jnp.transpose(x2_nchw, (0, 2, 3, 1))

    upmat = _upsample_pad_matrix(H1, W1, H2, W2)               # (H2*W2, H1*W1)

    # conv1 weight split by the torch.cat([x2, up(x1)], dim=1) channel groups.
    w1a = w1[:, :, :C2, :].reshape(k * k, C2, Cout)
    w1b = w1[:, :, C2:, :].reshape(k * k, C1, Cout)
    w2m = w2.reshape(k * k, Cout, Cout)

    kern = functools.partial(_upsample_double_conv_kernel, k=k,
                             H=H2, W=W2, C1=C1, C2=C2, Cout=Cout)
    out_nhwc = pl.pallas_call(
        kern,
        out_shape=jax.ShapeDtypeStruct((N, H2, W2, Cout), jnp.float32),
        grid=(N,),
        in_specs=[
            pl.BlockSpec((1, H1 * W1, C1), lambda n: (n, 0, 0)),        # x1
            pl.BlockSpec((1, H2, W2, C2), lambda n: (n, 0, 0, 0)),      # x2
            pl.BlockSpec((H2 * W2, H1 * W1), lambda n: (0, 0)),         # upsample matrix
            pl.BlockSpec((k * k, C2, Cout), lambda n: (0, 0, 0)),       # w1 (x2 group)
            pl.BlockSpec((k * k, C1, Cout), lambda n: (0, 0, 0)),       # w1 (x1 group)
            pl.BlockSpec((1, Cout), lambda n: (0, 0)),                  # scale1
            pl.BlockSpec((1, Cout), lambda n: (0, 0)),                  # bias1
            pl.BlockSpec((k * k, Cout, Cout), lambda n: (0, 0, 0)),     # w2
            pl.BlockSpec((1, Cout), lambda n: (0, 0)),                  # scale2
            pl.BlockSpec((1, Cout), lambda n: (0, 0)),                  # bias2
        ],
        out_specs=pl.BlockSpec((1, H2, W2, Cout), lambda n: (n, 0, 0, 0)),
        scratch_shapes=[
            pltpu.VMEM((Hp, Wp, C1), jnp.float32),    # halo-padded upsampled x1
            pltpu.VMEM((Hp, Wp, C2), jnp.float32),    # halo-padded skip (x2)
            pltpu.VMEM((Hp, Wp, Cout), jnp.float32),  # halo-padded conv1 output
        ],
        compiler_params=pltpu.CompilerParams(
            dimension_semantics=("parallel",)),       # 2-way across v7x TensorCores
    )(x1r, x2r, upmat, w1a, w1b, s1.reshape(1, -1), b1.reshape(1, -1),
      w2m, s2.reshape(1, -1), b2.reshape(1, -1))

    return jnp.transpose(out_nhwc, (0, 3, 1, 2))               # channels-last -> NCHW


# ---------------------------------------------------------------------------
# Deterministic parameter construction (folding BN into scale/bias)
# ---------------------------------------------------------------------------
def make_layer_params(key, cin, cout, k):
    ks = jax.random.split(key, 6)
    w = jax.random.normal(ks[0], (k, k, cin, cout), jnp.float32) * 0.1   # HWIO
    b = jax.random.normal(ks[1], (cout,), jnp.float32) * 0.1
    gamma = 1.0 + 0.1 * jax.random.normal(ks[2], (cout,), jnp.float32)
    beta = 0.1 * jax.random.normal(ks[3], (cout,), jnp.float32)
    rmean = 0.1 * jax.random.normal(ks[4], (cout,), jnp.float32)
    rvar = jax.random.uniform(ks[5], (cout,), jnp.float32, 0.5, 1.5)
    eps = 1e-5
    scale = gamma / jnp.sqrt(rvar + eps)
    bias = beta + (b - rmean) * scale
    return w, scale, bias


# ---------------------------------------------------------------------------
# Pure-JAX reference (independent code path) for correctness check
# ---------------------------------------------------------------------------
def _bilinear_upsample2_ref(x_nhwc):
    """scale_factor=2 bilinear upsample with align_corners=True (torch semantics)."""
    def lerp_axis(x, axis):
        in_size = x.shape[axis]
        out_size = 2 * in_size
        if in_size == 1:
            return jnp.repeat(x, out_size, axis=axis)
        pos = jnp.arange(out_size) * (in_size - 1) / (out_size - 1)
        lo = jnp.clip(jnp.floor(pos), 0, in_size - 2).astype(jnp.int32)
        frac = (pos - lo).astype(x.dtype)
        shape = [1] * x.ndim
        shape[axis] = out_size
        frac = frac.reshape(shape)
        return (jnp.take(x, lo, axis=axis) * (1.0 - frac)
                + jnp.take(x, lo + 1, axis=axis) * frac)
    return lerp_axis(lerp_axis(x_nhwc, 1), 2)


def reference_forward(x1_nchw, x2_nchw, params, k):
    (w1, s1, b1), (w2, s2, b2) = params
    x1 = jnp.transpose(x1_nchw, (0, 2, 3, 1))
    x2 = jnp.transpose(x2_nchw, (0, 2, 3, 1))
    x1 = _bilinear_upsample2_ref(x1)
    dY = x2.shape[1] - x1.shape[1]
    dX = x2.shape[2] - x1.shape[2]
    x1 = jnp.pad(x1, ((0, 0), (dY // 2, dY - dY // 2),
                      (dX // 2, dX - dX // 2), (0, 0)))
    x = jnp.concatenate([x2, x1], axis=-1)
    for (w, s, b) in ((w1, s1, b1), (w2, s2, b2)):
        y = lax.conv_general_dilated(x, w, (1, 1), "SAME",
                                     dimension_numbers=("NHWC", "HWIO", "NHWC"))
        x = jnp.maximum(y * s + b, 0.0)
    return jnp.transpose(x, (0, 3, 1, 2))


# ---------------------------------------------------------------------------
if __name__ == "__main__":
    N = 2
    C1, H1, W1 = 4, 8, 8          # x1: decoder feature (pre-upsample)
    C2, H2, W2 = 4, 16, 16        # x2: encoder skip connection
    in_ch = C1 + C2               # channels after torch.cat([x2, up(x1)], dim=1)
    out_ch, k = 8, 3

    key = jax.random.PRNGKey(0)
    kx1, kx2, kp1, kp2 = jax.random.split(key, 4)
    x1 = jax.random.normal(kx1, (N, C1, H1, W1), jnp.float32)   # NCHW, like torch
    x2 = jax.random.normal(kx2, (N, C2, H2, W2), jnp.float32)

    params = [
        make_layer_params(kp1, in_ch, out_ch, k),   # conv1 + BN1 (folded)
        make_layer_params(kp2, out_ch, out_ch, k),  # conv2 + BN2 (folded)
    ]

    out = jax.block_until_ready(upsample_forward(x1, x2, params, k))
    ref = jax.block_until_ready(reference_forward(x1, x2, params, k))

    assert out.shape == (N, out_ch, H2, W2), out.shape
    max_err = float(jnp.max(jnp.abs(out - ref)))
    assert jnp.allclose(out, ref, atol=2e-4, rtol=2e-4), max_err

    print("KERNEL_OK")
</pallas_src>

<mosaic_0001>
module attributes {stable_mosaic.version = 11 : i64} {
  func.func @_upsample_double_conv_kernel(%arg0: i32, %arg1: memref<1x64x4xf32, #tpu.memory_space<vmem>>, %arg2: memref<1x16x16x4xf32, #tpu.memory_space<vmem>>, %arg3: memref<256x64xf32, #tpu.memory_space<vmem>>, %arg4: memref<9x4x8xf32, #tpu.memory_space<vmem>>, %arg5: memref<9x4x8xf32, #tpu.memory_space<vmem>>, %arg6: memref<1x8xf32, #tpu.memory_space<vmem>>, %arg7: memref<1x8xf32, #tpu.memory_space<vmem>>, %arg8: memref<9x8x8xf32, #tpu.memory_space<vmem>>, %arg9: memref<1x8xf32, #tpu.memory_space<vmem>>, %arg10: memref<1x8xf32, #tpu.memory_space<vmem>>, %arg11: memref<1x16x16x8xf32, #tpu.memory_space<vmem>>, %arg12: memref<18x18x4xf32, #tpu.memory_space<vmem>>, %arg13: memref<18x18x4xf32, #tpu.memory_space<vmem>>, %arg14: memref<18x18x8xf32, #tpu.memory_space<vmem>>) attributes {dimension_semantics = [#tpu.dimension_semantics<parallel>], iteration_bounds = array<i64: 2>, scalar_prefetch = 0 : i64, scratch_operands = 3 : i64, tpu.core_type = #tpu.core_type<tc>, window_params = [{transform_indices = @transform_0, window_bounds = array<i64: 1, 64, 4>}, {transform_indices = @transform_1, window_bounds = array<i64: 1, 16, 16, 4>}, {pipeline_mode = #tpu.pipeline_mode<synchronous>, transform_indices = @transform_2, window_bounds = array<i64: 256, 64>}, {pipeline_mode = #tpu.pipeline_mode<synchronous>, transform_indices = @transform_3, window_bounds = array<i64: 9, 4, 8>}, {pipeline_mode = #tpu.pipeline_mode<synchronous>, transform_indices = @transform_4, window_bounds = array<i64: 9, 4, 8>}, {pipeline_mode = #tpu.pipeline_mode<synchronous>, transform_indices = @transform_5, window_bounds = array<i64: 1, 8>}, {pipeline_mode = #tpu.pipeline_mode<synchronous>, transform_indices = @transform_6, window_bounds = array<i64: 1, 8>}, {pipeline_mode = #tpu.pipeline_mode<synchronous>, transform_indices = @transform_7, window_bounds = array<i64: 9, 8, 8>}, {pipeline_mode = #tpu.pipeline_mode<synchronous>, transform_indices = @transform_8, window_bounds = array<i64: 1, 8>}, {pipeline_mode = #tpu.pipeline_mode<synchronous>, transform_indices = @transform_9, window_bounds = array<i64: 1, 8>}, {transform_indices = @transform_10, window_bounds = array<i64: 1, 16, 16, 8>}]} {
    %c0 = arith.constant 0 : index
    %c0_0 = arith.constant 0 : index
    %0 = vector.load %arg3[%c0, %c0_0] : memref<256x64xf32, #tpu.memory_space<vmem>>, vector<256x64xf32>
    %c0_1 = arith.constant 0 : index
    %c0_2 = arith.constant 0 : index
    %c0_3 = arith.constant 0 : index
    %1 = vector.load %arg1[%c0_1, %c0_2, %c0_3] : memref<1x64x4xf32, #tpu.memory_space<vmem>>, vector<1x64x4xf32>
    %2 = vector.shape_cast %1 : vector<1x64x4xf32> to vector<64x4xf32>
    %cst = arith.constant dense<0.000000e+00> : vector<256x4xf32>
    %3 = tpu.matmul %0, %2, %cst {dimension_numbers = #tpu.dot_dimension_numbers<[1], [0], [0], [1], [0, 0, 1, 1], [], []>} : vector<256x64xf32>, vector<64x4xf32>, vector<256x4xf32> -> vector<256x4xf32>
    %cst_4 = arith.constant 0.000000e+00 : f32
    %4 = vector.broadcast %cst_4 : f32 to vector<18x18x4xf32>
    %c0_5 = arith.constant 0 : index
    %c0_6 = arith.constant 0 : index
    %c0_7 = arith.constant 0 : index
    %5 = vector.load %arg12[%c0_5, %c0_6, %c0_7] : memref<18x18x4xf32, #tpu.memory_space<vmem>>, vector<18x18x4xf32>
    tpu.vector_store %arg12[%c0_5, %c0_6, %c0_7], %4 {strides = array<i32>} : memref<18x18x4xf32, #tpu.memory_space<vmem>>, vector<18x18x4xf32>,
    %6 = vector.shape_cast %3 : vector<256x4xf32> to vector<16x16x4xf32>
    %c1 = arith.constant 1 : index
    %c1_8 = arith.constant 1 : index
    %c0_9 = arith.constant 0 : index
    %7 = vector.load %arg12[%c1, %c1_8, %c0_9] : memref<18x18x4xf32, #tpu.memory_space<vmem>>, vector<16x16x4xf32>
    tpu.vector_store %arg12[%c1, %c1_8, %c0_9], %6 {strides = array<i32>} : memref<18x18x4xf32, #tpu.memory_space<vmem>>, vector<16x16x4xf32>,
    %cst_10 = arith.constant 0.000000e+00 : f32
    %8 = vector.broadcast %cst_10 : f32 to vector<18x18x4xf32>
    %c0_11 = arith.constant 0 : index
    %c0_12 = arith.constant 0 : index
    %c0_13 = arith.constant 0 : index
    %9 = vector.load %arg13[%c0_11, %c0_12, %c0_13] : memref<18x18x4xf32, #tpu.memory_space<vmem>>, vector<18x18x4xf32>
    tpu.vector_store %arg13[%c0_11, %c0_12, %c0_13], %8 {strides = array<i32>} : memref<18x18x4xf32, #tpu.memory_space<vmem>>, vector<18x18x4xf32>,
    %c0_14 = arith.constant 0 : index
    %c0_15 = arith.constant 0 : index
    %c0_16 = arith.constant 0 : index
    %c0_17 = arith.constant 0 : index
    %10 = vector.load %arg2[%c0_14, %c0_15, %c0_16, %c0_17] : memref<1x16x16x4xf32, #tpu.memory_space<vmem>>, vector<1x16x16x4xf32>
    %11 = vector.shape_cast %10 : vector<1x16x16x4xf32> to vector<16x16x4xf32>
    %c1_18 = arith.constant 1 : index
    %c1_19 = arith.constant 1 : index
    %c0_20 = arith.constant 0 : index
    %12 = vector.load %arg13[%c1_18, %c1_19, %c0_20] : memref<18x18x4xf32, #tpu.memory_space<vmem>>, vector<16x16x4xf32>
    tpu.vector_store %arg13[%c1_18, %c1_19, %c0_20], %11 {strides = array<i32>} : memref<18x18x4xf32, #tpu.memory_space<vmem>>, vector<16x16x4xf32>,
    %cst_21 = arith.constant 0.000000e+00 : f32
    %13 = vector.broadcast %cst_21 : f32 to vector<256x8xf32>
    %c0_22 = arith.constant 0 : index
    %c0_23 = arith.constant 0 : index
    %c0_24 = arith.constant 0 : index
    %14 = vector.load %arg13[%c0_22, %c0_23, %c0_24] : memref<18x18x4xf32, #tpu.memory_space<vmem>>, vector<16x16x4xf32>
    %15 = vector.shape_cast %14 : vector<16x16x4xf32> to vector<256x4xf32>
    %c0_25 = arith.constant 0 : index
    %c0_26 = arith.constant 0 : index
    %c0_27 = arith.constant 0 : index
    %16 = vector.load %arg4[%c0_25, %c0_26, %c0_27] : memref<9x4x8xf32, #tpu.memory_space<vmem>>, vector<1x4x8xf32>
    %17 = vector.shape_cast %16 : vector<1x4x8xf32> to vector<4x8xf32>
    %cst_28 = arith.constant dense<0.000000e+00> : vector<256x8xf32>
    %18 = tpu.matmul %15, %17, %cst_28 {dimension_numbers = #tpu.dot_dimension_numbers<[1], [0], [0], [1], [0, 0, 1, 1], [], []>} : vector<256x4xf32>, vector<4x8xf32>, vector<256x8xf32> -> vector<256x8xf32>
    %19 = arith.addf %13, %18 : vector<256x8xf32>
    %c0_29 = arith.constant 0 : index
    %c0_30 = arith.constant 0 : index
    %c0_31 = arith.constant 0 : index
    %20 = vector.load %arg12[%c0_29, %c0_30, %c0_31] : memref<18x18x4xf32, #tpu.memory_space<vmem>>, vector<16x16x4xf32>
    %21 = vector.shape_cast %20 : vector<16x16x4xf32> to vector<256x4xf32>
    %c0_32 = arith.constant 0 : index
    %c0_33 = arith.constant 0 : index
    %c0_34 = arith.constant 0 : index
    %22 = vector.load %arg5[%c0_32, %c0_33, %c0_34] : memref<9x4x8xf32, #tpu.memory_space<vmem>>, vector<1x4x8xf32>
    %23 = vector.shape_cast %22 : vector<1x4x8xf32> to vector<4x8xf32>
    %cst_35 = arith.constant dense<0.000000e+00> : vector<256x8xf32>
    %24 = tpu.matmul %21, %23, %cst_35 {dimension_numbers = #tpu.dot_dimension_numbers<[1], [0], [0], [1], [0, 0, 1, 1], [], []>} : vector<256x4xf32>, vector<4x8xf32>, vector<256x8xf32> -> vector<256x8xf32>
    %25 = arith.addf %19, %24 : vector<256x8xf32>
    %c0_36 = arith.constant 0 : index
    %c1_37 = arith.constant 1 : index
    %c0_38 = arith.constant 0 : index
    %26 = vector.load %arg13[%c0_36, %c1_37, %c0_38] : memref<18x18x4xf32, #tpu.memory_space<vmem>>, vector<16x16x4xf32>
    %27 = vector.shape_cast %26 : vector<16x16x4xf32> to vector<256x4xf32>
    %c1_39 = arith.constant 1 : index
    %c0_40 = arith.constant 0 : index
    %c0_41 = arith.constant 0 : index
    %28 = vector.load %arg4[%c1_39, %c0_40, %c0_41] : memref<9x4x8xf32, #tpu.memory_space<vmem>>, vector<1x4x8xf32>
    %29 = vector.shape_cast %28 : vector<1x4x8xf32> to vector<4x8xf32>
    %cst_42 = arith.constant dense<0.000000e+00> : vector<256x8xf32>
    %30 = tpu.matmul %27, %29, %cst_42 {dimension_numbers = #tpu.dot_dimension_numbers<[1], [0], [0], [1], [0, 0, 1, 1], [], []>} : vector<256x4xf32>, vector<4x8xf32>, vector<256x8xf32> -> vector<256x8xf32>
    %31 = arith.addf %25, %30 : vector<256x8xf32>
    %c0_43 = arith.constant 0 : index
    %c1_44 = arith.constant 1 : index
    %c0_45 = arith.constant 0 : index
    %32 = vector.load %arg12[%c0_43, %c1_44, %c0_45] : memref<18x18x4xf32, #tpu.memory_space<vmem>>, vector<16x16x4xf32>
    %33 = vector.shape_cast %32 : vector<16x16x4xf32> to vector<256x4xf32>
    %c1_46 = arith.constant 1 : index
    %c0_47 = arith.constant 0 : index
    %c0_48 = arith.constant 0 : index
    %34 = vector.load %arg5[%c1_46, %c0_47, %c0_48] : memref<9x4x8xf32, #tpu.memory_space<vmem>>, vector<1x4x8xf32>
    %35 = vector.shape_cast %34 : vector<1x4x8xf32> to vector<4x8xf32>
    %cst_49 = arith.constant dense<0.000000e+00> : vector<256x8xf32>
    %36 = tpu.matmul %33, %35, %cst_49 {dimension_numbers = #tpu.dot_dimension_numbers<[1], [0], [0], [1], [0, 0, 1, 1], [], []>} : vector<256x4xf32>, vector<4x8xf32>, vector<256x8xf32> -> vector<256x8xf32>
    %37 = arith.addf %31, %36 : vector<256x8xf32>
    %c0_50 = arith.constant 0 : index
    %c2 = arith.constant 2 : index
    %c0_51 = arith.constant 0 : index
    %38 = vector.load %arg13[%c0_50, %c2, %c0_51] : memref<18x18x4xf32, #tpu.memory_space<vmem>>, vector<16x16x4xf32>
    %39 = vector.shape_cast %38 : vector<16x16x4xf32> to vector<256x4xf32>
    %c2_52 = arith.constant 2 : index
    %c0_53 = arith.constant 0 : index
    %c0_54 = arith.constant 0 : index
    %40 = vector.load %arg4[%c2_52, %c0_53, %c0_54] : memref<9x4x8xf32, #tpu.memory_space<vmem>>, vector<1x4x8xf32>
    %41 = vector.shape_cast %40 : vector<1x4x8xf32> to vector<4x8xf32>
    %cst_55 = arith.constant dense<0.000000e+00> : vector<256x8xf32>
    %42 = tpu.matmul %39, %41, %cst_55 {dimension_numbers = #tpu.dot_dimension_numbers<[1], [0], [0], [1], [0, 0, 1, 1], [], []>} : vector<256x4xf32>, vector<4x8xf32>, vector<256x8xf32> -> vector<256x8xf32>
    %43 = arith.addf %37, %42 : vector<256x8xf32>
    %c0_56 = arith.constant 0 : index
    %c2_57 = arith.constant 2 : index
    %c0_58 = arith.constant 0 : index
    %44 = vector.load %arg12[%c0_56, %c2_57, %c0_58] : memref<18x18x4xf32, #tpu.memory_space<vmem>>, vector<16x16x4xf32>
    %45 = vector.shape_cast %44 : vector<16x16x4xf32> to vector<256x4xf32>
    %c2_59 = arith.constant 2 : index
    %c0_60 = arith.constant 0 : index
    %c0_61 = arith.constant 0 : index
    %46 = vector.load %arg5[%c2_59, %c0_60, %c0_61] : memref<9x4x8xf32, #tpu.memory_space<vmem>>, vector<1x4x8xf32>
    %47 = vector.shape_cast %46 : vector<1x4x8xf32> to vector<4x8xf32>
    %cst_62 = arith.constant dense<0.000000e+00> : vector<256x8xf32>
    %48 = tpu.matmul %45, %47, %cst_62 {dimension_numbers = #tpu.dot_dimension_numbers<[1], [0], [0], [1], [0, 0, 1, 1], [], []>} : vector<256x4xf32>, vector<4x8xf32>, vector<256x8xf32> -> vector<256x8xf32>
    %49 = arith.addf %43, %48 : vector<256x8xf32>
    %c1_63 = arith.constant 1 : index
    %c0_64 = arith.constant 0 : index
    %c0_65 = arith.constant 0 : index
    %50 = vector.load %arg13[%c1_63, %c0_64, %c0_65] : memref<18x18x4xf32, #tpu.memory_space<vmem>>, vector<16x16x4xf32>
    %51 = vector.shape_cast %50 : vector<16x16x4xf32> to vector<256x4xf32>
    %c3 = arith.constant 3 : index
    %c0_66 = arith.constant 0 : index
    %c0_67 = arith.constant 0 : index
    %52 = vector.load %arg4[%c3, %c0_66, %c0_67] : memref<9x4x8xf32, #tpu.memory_space<vmem>>, vector<1x4x8xf32>
    %53 = vector.shape_cast %52 : vector<1x4x8xf32> to vector<4x8xf32>
    %cst_68 = arith.constant dense<0.000000e+00> : vector<256x8xf32>
    %54 = tpu.matmul %51, %53, %cst_68 {dimension_numbers = #tpu.dot_dimension_numbers<[1], [0], [0], [1], [0, 0, 1, 1], [], []>} : vector<256x4xf32>, vector<4x8xf32>, vector<256x8xf32> -> vector<256x8xf32>
    %55 = arith.addf %49, %54 : vector<256x8xf32>
    %c1_69 = arith.constant 1 : index
    %c0_70 = arith.constant 0 : index
    %c0_71 = arith.constant 0 : index
    %56 = vector.load %arg12[%c1_69, %c0_70, %c0_71] : memref<18x18x4xf32, #tpu.memory_space<vmem>>, vector<16x16x4xf32>
    %57 = vector.shape_cast %56 : vector<16x16x4xf32> to vector<256x4xf32>
    %c3_72 = arith.constant 3 : index
    %c0_73 = arith.constant 0 : index
    %c0_74 = arith.constant 0 : index
    %58 = vector.load %arg5[%c3_72, %c0_73, %c0_74] : memref<9x4x8xf32, #tpu.memory_space<vmem>>, vector<1x4x8xf32>
    %59 = vector.shape_cast %58 : vector<1x4x8xf32> to vector<4x8xf32>
    %cst_75 = arith.constant dense<0.000000e+00> : vector<256x8xf32>
    %60 = tpu.matmul %57, %59, %cst_75 {dimension_numbers = #tpu.dot_dimension_numbers<[1], [0], [0], [1], [0, 0, 1, 1], [], []>} : vector<256x4xf32>, vector<4x8xf32>, vector<256x8xf32> -> vector<256x8xf32>
    %61 = arith.addf %55, %60 : vector<256x8xf32>
    %c1_76 = arith.constant 1 : index
    %c1_77 = arith.constant 1 : index
    %c0_78 = arith.constant 0 : index
    %62 = vector.load %arg13[%c1_76, %c1_77, %c0_78] : memref<18x18x4xf32, #tpu.memory_space<vmem>>, vector<16x16x4xf32>
    %63 = vector.shape_cast %62 : vector<16x16x4xf32> to vector<256x4xf32>
    %c4 = arith.constant 4 : index
    %c0_79 = arith.constant 0 : index
    %c0_80 = arith.constant 0 : index
    %64 = vector.load %arg4[%c4, %c0_79, %c0_80] : memref<9x4x8xf32, #tpu.memory_space<vmem>>, vector<1x4x8xf32>
    %65 = vector.shape_cast %64 : vector<1x4x8xf32> to vector<4x8xf32>
    %cst_81 = arith.constant dense<0.000000e+00> : vector<256x8xf32>
    %66 = tpu.matmul %63, %65, %cst_81 {dimension_numbers = #tpu.dot_dimension_numbers<[1], [0], [0], [1], [0, 0, 1, 1], [], []>} : vector<256x4xf32>, vector<4x8xf32>, vector<256x8xf32> -> vector<256x8xf32>
    %67 = arith.addf %61, %66 : vector<256x8xf32>
    %c1_82 = arith.constant 1 : index
    %c1_83 = arith.constant 1 : index
    %c0_84 = arith.constant 0 : index
    %68 = vector.load %arg12[%c1_82, %c1_83, %c0_84] : memref<18x18x4xf32, #tpu.memory_space<vmem>>, vector<16x16x4xf32>
    %69 = vector.shape_cast %68 : vector<16x16x4xf32> to vector<256x4xf32>
    %c4_85 = arith.constant 4 : index
    %c0_86 = arith.constant 0 : index
    %c0_87 = arith.constant 0 : index
    %70 = vector.load %arg5[%c4_85, %c0_86, %c0_87] : memref<9x4x8xf32, #tpu.memory_space<vmem>>, vector<1x4x8xf32>
    %71 = vector.shape_cast %70 : vector<1x4x8xf32> to vector<4x8xf32>
    %cst_88 = arith.constant dense<0.000000e+00> : vector<256x8xf32>
    %72 = tpu.matmul %69, %71, %cst_88 {dimension_numbers = #tpu.dot_dimension_numbers<[1], [0], [0], [1], [0, 0, 1, 1], [], []>} : vector<256x4xf32>, vector<4x8xf32>, vector<256x8xf32> -> vector<256x8xf32>
    %73 = arith.addf %67, %72 : vector<256x8xf32>
    %c1_89 = arith.constant 1 : index
    %c2_90 = arith.constant 2 : index
    %c0_91 = arith.constant 0 : index
    %74 = vector.load %arg13[%c1_89, %c2_90, %c0_91] : memref<18x18x4xf32, #tpu.memory_space<vmem>>, vector<16x16x4xf32>
    %75 = vector.shape_cast %74 : vector<16x16x4xf32> to vector<256x4xf32>
    %c5 = arith.constant 5 : index
    %c0_92 = arith.constant 0 : index
    %c0_93 = arith.constant 0 : index
    %76 = vector.load %arg4[%c5, %c0_92, %c0_93] : memref<9x4x8xf32, #tpu.memory_space<vmem>>, vector<1x4x8xf32>
    %77 = vector.shape_cast %76 : vector<1x4x8xf32> to vector<4x8xf32>
    %cst_94 = arith.constant dense<0.000000e+00> : vector<256x8xf32>
    %78 = tpu.matmul %75, %77, %cst_94 {dimension_numbers = #tpu.dot_dimension_numbers<[1], [0], [0], [1], [0, 0, 1, 1], [], []>} : vector<256x4xf32>, vector<4x8xf32>, vector<256x8xf32> -> vector<256x8xf32>
    %79 = arith.addf %73, %78 : vector<256x8xf32>
    %c1_95 = arith.constant 1 : index
    %c2_96 = arith.constant 2 : index
    %c0_97 = arith.constant 0 : index
    %80 = vector.load %arg12[%c1_95, %c2_96, %c0_97] : memref<18x18x4xf32, #tpu.memory_space<vmem>>, vector<16x16x4xf32>
    %81 = vector.shape_cast %80 : vector<16x16x4xf32> to vector<256x4xf32>
    %c5_98 = arith.constant 5 : index
    %c0_99 = arith.constant 0 : index
    %c0_100 = arith.constant 0 : index
    %82 = vector.load %arg5[%c5_98, %c0_99, %c0_100] : memref<9x4x8xf32, #tpu.memory_space<vmem>>, vector<1x4x8xf32>
    %83 = vector.shape_cast %82 : vector<1x4x8xf32> to vector<4x8xf32>
    %cst_101 = arith.constant dense<0.000000e+00> : vector<256x8xf32>
    %84 = tpu.matmul %81, %83, %cst_101 {dimension_numbers = #tpu.dot_dimension_numbers<[1], [0], [0], [1], [0, 0, 1, 1], [], []>} : vector<256x4xf32>, vector<4x8xf32>, vector<256x8xf32> -> vector<256x8xf32>
    %85 = arith.addf %79, %84 : vector<256x8xf32>
    %c2_102 = arith.constant 2 : index
    %c0_103 = arith.constant 0 : index
    %c0_104 = arith.constant 0 : index
    %86 = vector.load %arg13[%c2_102, %c0_103, %c0_104] : memref<18x18x4xf32, #tpu.memory_space<vmem>>, vector<16x16x4xf32>
    %87 = vector.shape_cast %86 : vector<16x16x4xf32> to vector<256x4xf32>
    %c6 = arith.constant 6 : index
    %c0_105 = arith.constant 0 : index
    %c0_106 = arith.constant 0 : index
    %88 = vector.load %arg4[%c6, %c0_105, %c0_106] : memref<9x4x8xf32, #tpu.memory_space<vmem>>, vector<1x4x8xf32>
    %89 = vector.shape_cast %88 : vector<1x4x8xf32> to vector<4x8xf32>
    %cst_107 = arith.constant dense<0.000000e+00> : vector<256x8xf32>
    %90 = tpu.matmul %87, %89, %cst_107 {dimension_numbers = #tpu.dot_dimension_numbers<[1], [0], [0], [1], [0, 0, 1, 1], [], []>} : vector<256x4xf32>, vector<4x8xf32>, vector<256x8xf32> -> vector<256x8xf32>
    %91 = arith.addf %85, %90 : vector<256x8xf32>
    %c2_108 = arith.constant 2 : index
    %c0_109 = arith.constant 0 : index
    %c0_110 = arith.constant 0 : index
    %92 = vector.load %arg12[%c2_108, %c0_109, %c0_110] : memref<18x18x4xf32, #tpu.memory_space<vmem>>, vector<16x16x4xf32>
    %93 = vector.shape_cast %92 : vector<16x16x4xf32> to vector<256x4xf32>
    %c6_111 = arith.constant 6 : index
    %c0_112 = arith.constant 0 : index
    %c0_113 = arith.constant 0 : index
    %94 = vector.load %arg5[%c6_111, %c0_112, %c0_113] : memref<9x4x8xf32, #tpu.memory_space<vmem>>, vector<1x4x8xf32>
    %95 = vector.shape_cast %94 : vector<1x4x8xf32> to vector<4x8xf32>
    %cst_114 = arith.constant dense<0.000000e+00> : vector<256x8xf32>
    %96 = tpu.matmul %93, %95, %cst_114 {dimension_numbers = #tpu.dot_dimension_numbers<[1], [0], [0], [1], [0, 0, 1, 1], [], []>} : vector<256x4xf32>, vector<4x8xf32>, vector<256x8xf32> -> vector<256x8xf32>
    %97 = arith.addf %91, %96 : vector<256x8xf32>
    %c2_115 = arith.constant 2 : index
    %c1_116 = arith.constant 1 : index
    %c0_117 = arith.constant 0 : index
    %98 = vector.load %arg13[%c2_115, %c1_116, %c0_117] : memref<18x18x4xf32, #tpu.memory_space<vmem>>, vector<16x16x4xf32>
    %99 = vector.shape_cast %98 : vector<16x16x4xf32> to vector<256x4xf32>
    %c7 = arith.constant 7 : index
    %c0_118 = arith.constant 0 : index
    %c0_119 = arith.constant 0 : index
    %100 = vector.load %arg4[%c7, %c0_118, %c0_119] : memref<9x4x8xf32, #tpu.memory_space<vmem>>, vector<1x4x8xf32>
    %101 = vector.shape_cast %100 : vector<1x4x8xf32> to vector<4x8xf32>
    %cst_120 = arith.constant dense<0.000000e+00> : vector<256x8xf32>
    %102 = tpu.matmul %99, %101, %cst_120 {dimension_numbers = #tpu.dot_dimension_numbers<[1], [0], [0], [1], [0, 0, 1, 1], [], []>} : vector<256x4xf32>, vector<4x8xf32>, vector<256x8xf32> -> vector<256x8xf32>
    %103 = arith.addf %97, %102 : vector<256x8xf32>
    %c2_121 = arith.constant 2 : index
    %c1_122 = arith.constant 1 : index
    %c0_123 = arith.constant 0 : index
    %104 = vector.load %arg12[%c2_121, %c1_122, %c0_123] : memref<18x18x4xf32, #tpu.memory_space<vmem>>, vector<16x16x4xf32>
    %105 = vector.shape_cast %104 : vector<16x16x4xf32> to vector<256x4xf32>
    %c7_124 = arith.constant 7 : index
    %c0_125 = arith.constant 0 : index
    %c0_126 = arith.constant 0 : index
    %106 = vector.load %arg5[%c7_124, %c0_125, %c0_126] : memref<9x4x8xf32, #tpu.memory_space<vmem>>, vector<1x4x8xf32>
    %107 = vector.shape_cast %106 : vector<1x4x8xf32> to vector<4x8xf32>
    %cst_127 = arith.constant dense<0.000000e+00> : vector<256x8xf32>
    %108 = tpu.matmul %105, %107, %cst_127 {dimension_numbers = #tpu.dot_dimension_numbers<[1], [0], [0], [1], [0, 0, 1, 1], [], []>} : vector<256x4xf32>, vector<4x8xf32>, vector<256x8xf32> -> vector<256x8xf32>
    %109 = arith.addf %103, %108 : vector<256x8xf32>
    %c2_128 = arith.constant 2 : index
    %c2_129 = arith.constant 2 : index
    %c0_130 = arith.constant 0 : index
    %110 = vector.load %arg13[%c2_128, %c2_129, %c0_130] : memref<18x18x4xf32, #tpu.memory_space<vmem>>, vector<16x16x4xf32>
    %111 = vector.shape_cast %110 : vector<16x16x4xf32> to vector<256x4xf32>
    %c8 = arith.constant 8 : index
    %c0_131 = arith.constant 0 : index
    %c0_132 = arith.constant 0 : index
    %112 = vector.load %arg4[%c8, %c0_131, %c0_132] : memref<9x4x8xf32, #tpu.memory_space<vmem>>, vector<1x4x8xf32>
    %113 = vector.shape_cast %112 : vector<1x4x8xf32> to vector<4x8xf32>
    %cst_133 = arith.constant dense<0.000000e+00> : vector<256x8xf32>
    %114 = tpu.matmul %111, %113, %cst_133 {dimension_numbers = #tpu.dot_dimension_numbers<[1], [0], [0], [1], [0, 0, 1, 1], [], []>} : vector<256x4xf32>, vector<4x8xf32>, vector<256x8xf32> -> vector<256x8xf32>
    %115 = arith.addf %109, %114 : vector<256x8xf32>
    %c2_134 = arith.constant 2 : index
    %c2_135 = arith.constant 2 : index
    %c0_136 = arith.constant 0 : index
    %116 = vector.load %arg12[%c2_134, %c2_135, %c0_136] : memref<18x18x4xf32, #tpu.memory_space<vmem>>, vector<16x16x4xf32>
    %117 = vector.shape_cast %116 : vector<16x16x4xf32> to vector<256x4xf32>
    %c8_137 = arith.constant 8 : index
    %c0_138 = arith.constant 0 : index
    %c0_139 = arith.constant 0 : index
    %118 = vector.load %arg5[%c8_137, %c0_138, %c0_139] : memref<9x4x8xf32, #tpu.memory_space<vmem>>, vector<1x4x8xf32>
    %119 = vector.shape_cast %118 : vector<1x4x8xf32> to vector<4x8xf32>
    %cst_140 = arith.constant dense<0.000000e+00> : vector<256x8xf32>
    %120 = tpu.matmul %117, %119, %cst_140 {dimension_numbers = #tpu.dot_dimension_numbers<[1], [0], [0], [1], [0, 0, 1, 1], [], []>} : vector<256x4xf32>, vector<4x8xf32>, vector<256x8xf32> -> vector<256x8xf32>
    %121 = arith.addf %115, %120 : vector<256x8xf32>
    %c0_141 = arith.constant 0 : index
    %c0_142 = arith.constant 0 : index
    %122 = vector.load %arg6[%c0_141, %c0_142] : memref<1x8xf32, #tpu.memory_space<vmem>>, vector<1x8xf32>
    %123 = vector.shape_cast %122 : vector<1x8xf32> to vector<8xf32>
    %124 = vector.shape_cast %123 : vector<8xf32> to vector<1x8xf32>
    %125 = vector.broadcast %124 : vector<1x8xf32> to vector<256x8xf32>
    %126 = arith.mulf %121, %125 : vector<256x8xf32>
    %c0_143 = arith.constant 0 : index
    %c0_144 = arith.constant 0 : index
    %127 = vector.load %arg7[%c0_143, %c0_144] : memref<1x8xf32, #tpu.memory_space<vmem>>, vector<1x8xf32>
    %128 = vector.shape_cast %127 : vector<1x8xf32> to vector<8xf32>
    %129 = vector.shape_cast %128 : vector<8xf32> to vector<1x8xf32>
    %130 = vector.broadcast %129 : vector<1x8xf32> to vector<256x8xf32>
    %131 = arith.addf %126, %130 : vector<256x8xf32>
    %cst_145 = arith.constant 0.000000e+00 : f32
    %132 = vector.broadcast %cst_145 : f32 to vector<256x8xf32>
    %133 = arith.maximumf %131, %132 : vector<256x8xf32>
    %cst_146 = arith.constant 0.000000e+00 : f32
    %134 = vector.broadcast %cst_146 : f32 to vector<18x18x8xf32>
    %c0_147 = arith.constant 0 : index
    %c0_148 = arith.constant 0 : index
    %c0_149 = arith.constant 0 : index
    %135 = vector.load %arg14[%c0_147, %c0_148, %c0_149] : memref<18x18x8xf32, #tpu.memory_space<vmem>>, vector<18x18x8xf32>
    tpu.vector_store %arg14[%c0_147, %c0_148, %c0_149], %134 {strides = array<i32>} : memref<18x18x8xf32, #tpu.memory_space<vmem>>, vector<18x18x8xf32>,
    %136 = vector.shape_cast %133 : vector<256x8xf32> to vector<16x16x8xf32>
    %c1_150 = arith.constant 1 : index
    %c1_151 = arith.constant 1 : index
    %c0_152 = arith.constant 0 : index
    %137 = vector.load %arg14[%c1_150, %c1_151, %c0_152] : memref<18x18x8xf32, #tpu.memory_space<vmem>>, vector<16x16x8xf32>
    tpu.vector_store %arg14[%c1_150, %c1_151, %c0_152], %136 {strides = array<i32>} : memref<18x18x8xf32, #tpu.memory_space<vmem>>, vector<16x16x8xf32>,
    %cst_153 = arith.constant 0.000000e+00 : f32
    %138 = vector.broadcast %cst_153 : f32 to vector<256x8xf32>
    %c0_154 = arith.constant 0 : index
    %c0_155 = arith.constant 0 : index
    %c0_156 = arith.constant 0 : index
    %139 = vector.load %arg14[%c0_154, %c0_155, %c0_156] : memref<18x18x8xf32, #tpu.memory_space<vmem>>, vector<16x16x8xf32>
    %140 = vector.shape_cast %139 : vector<16x16x8xf32> to vector<256x8xf32>
    %c0_157 = arith.constant 0 : index
    %c0_158 = arith.constant 0 : index
    %c0_159 = arith.constant 0 : index
    %141 = vector.load %arg8[%c0_157, %c0_158, %c0_159] : memref<9x8x8xf32, #tpu.memory_space<vmem>>, vector<1x8x8xf32>
    %142 = vector.shape_cast %141 : vector<1x8x8xf32> to vector<8x8xf32>
    %cst_160 = arith.constant dense<0.000000e+00> : vector<256x8xf32>
    %143 = tpu.matmul %140, %142, %cst_160 {dimension_numbers = #tpu.dot_dimension_numbers<[1], [0], [0], [1], [0, 0, 1, 1], [], []>} : vector<256x8xf32>, vector<8x8xf32>, vector<256x8xf32> -> vector<256x8xf32>
    %144 = arith.addf %138, %143 : vector<256x8xf32>
    %c0_161 = arith.constant 0 : index
    %c1_162 = arith.constant 1 : index
    %c0_163 = arith.constant 0 : index
    %145 = vector.load %arg14[%c0_161, %c1_162, %c0_163] : memref<18x18x8xf32, #tpu.memory_space<vmem>>, vector<16x16x8xf32>
    %146 = vector.shape_cast %145 : vector<16x16x8xf32> to vector<256x8xf32>
    %c1_164 = arith.constant 1 : index
    %c0_165 = arith.constant 0 : index
    %c0_166 = arith.constant 0 : index
    %147 = vector.load %arg8[%c1_164, %c0_165, %c0_166] : memref<9x8x8xf32, #tpu.memory_space<vmem>>, vector<1x8x8xf32>
    %148 = vector.shape_cast %147 : vector<1x8x8xf32> to vector<8x8xf32>
    %cst_167 = arith.constant dense<0.000000e+00> : vector<256x8xf32>
    %149 = tpu.matmul %146, %148, %cst_167 {dimension_numbers = #tpu.dot_dimension_numbers<[1], [0], [0], [1], [0, 0, 1, 1], [], []>} : vector<256x8xf32>, vector<8x8xf32>, vector<256x8xf32> -> vector<256x8xf32>
    %150 = arith.addf %144, %149 : vector<256x8xf32>
    %c0_168 = arith.constant 0 : index
    %c2_169 = arith.constant 2 : index
    %c0_170 = arith.constant 0 : index
    %151 = vector.load %arg14[%c0_168, %c2_169, %c0_170] : memref<18x18x8xf32, #tpu.memory_space<vmem>>, vector<16x16x8xf32>
    %152 = vector.shape_cast %151 : vector<16x16x8xf32> to vector<256x8xf32>
    %c2_171 = arith.constant 2 : index
    %c0_172 = arith.constant 0 : index
    %c0_173 = arith.constant 0 : index
    %153 = vector.load %arg8[%c2_171, %c0_172, %c0_173] : memref<9x8x8xf32, #tpu.memory_space<vmem>>, vector<1x8x8xf32>
    %154 = vector.shape_cast %153 : vector<1x8x8xf32> to vector<8x8xf32>
    %cst_174 = arith.constant dense<0.000000e+00> : vector<256x8xf32>
    %155 = tpu.matmul %152, %154, %cst_174 {dimension_numbers = #tpu.dot_dimension_numbers<[1], [0], [0], [1], [0, 0, 1, 1], [], []>} : vector<256x8xf32>, vector<8x8xf32>, vector<256x8xf32> -> vector<256x8xf32>
    %156 = arith.addf %150, %155 : vector<256x8xf32>
    %c1_175 = arith.constant 1 : index
    %c0_176 = arith.constant 0 : index
    %c0_177 = arith.constant 0 : index
    %157 = vector.load %arg14[%c1_175, %c0_176, %c0_177] : memref<18x18x8xf32, #tpu.memory_space<vmem>>, vector<16x16x8xf32>
    %158 = vector.shape_cast %157 : vector<16x16x8xf32> to vector<256x8xf32>
    %c3_178 = arith.constant 3 : index
    %c0_179 = arith.constant 0 : index
    %c0_180 = arith.constant 0 : index
    %159 = vector.load %arg8[%c3_178, %c0_179, %c0_180] : memref<9x8x8xf32, #tpu.memory_space<vmem>>, vector<1x8x8xf32>
    %160 = vector.shape_cast %159 : vector<1x8x8xf32> to vector<8x8xf32>
    %cst_181 = arith.constant dense<0.000000e+00> : vector<256x8xf32>
    %161 = tpu.matmul %158, %160, %cst_181 {dimension_numbers = #tpu.dot_dimension_numbers<[1], [0], [0], [1], [0, 0, 1, 1], [], []>} : vector<256x8xf32>, vector<8x8xf32>, vector<256x8xf32> -> vector<256x8xf32>
    %162 = arith.addf %156, %161 : vector<256x8xf32>
    %c1_182 = arith.constant 1 : index
    %c1_183 = arith.constant 1 : index
    %c0_184 = arith.constant 0 : index
    %163 = vector.load %arg14[%c1_182, %c1_183, %c0_184] : memref<18x18x8xf32, #tpu.memory_space<vmem>>, vector<16x16x8xf32>
    %164 = vector.shape_cast %163 : vector<16x16x8xf32> to vector<256x8xf32>
    %c4_185 = arith.constant 4 : index
    %c0_186 = arith.constant 0 : index
    %c0_187 = arith.constant 0 : index
    %165 = vector.load %arg8[%c4_185, %c0_186, %c0_187] : memref<9x8x8xf32, #tpu.memory_space<vmem>>, vector<1x8x8xf32>
    %166 = vector.shape_cast %165 : vector<1x8x8xf32> to vector<8x8xf32>
    %cst_188 = arith.constant dense<0.000000e+00> : vector<256x8xf32>
    %167 = tpu.matmul %164, %166, %cst_188 {dimension_numbers = #tpu.dot_dimension_numbers<[1], [0], [0], [1], [0, 0, 1, 1], [], []>} : vector<256x8xf32>, vector<8x8xf32>, vector<256x8xf32> -> vector<256x8xf32>
    %168 = arith.addf %162, %167 : vector<256x8xf32>
    %c1_189 = arith.constant 1 : index
    %c2_190 = arith.constant 2 : index
    %c0_191 = arith.constant 0 : index
    %169 = vector.load %arg14[%c1_189, %c2_190, %c0_191] : memref<18x18x8xf32, #tpu.memory_space<vmem>>, vector<16x16x8xf32>
    %170 = vector.shape_cast %169 : vector<16x16x8xf32> to vector<256x8xf32>
    %c5_192 = arith.constant 5 : index
    %c0_193 = arith.constant 0 : index
    %c0_194 = arith.constant 0 : index
    %171 = vector.load %arg8[%c5_192, %c0_193, %c0_194] : memref<9x8x8xf32, #tpu.memory_space<vmem>>, vector<1x8x8xf32>
    %172 = vector.shape_cast %171 : vector<1x8x8xf32> to vector<8x8xf32>
    %cst_195 = arith.constant dense<0.000000e+00> : vector<256x8xf32>
    %173 = tpu.matmul %170, %172, %cst_195 {dimension_numbers = #tpu.dot_dimension_numbers<[1], [0], [0], [1], [0, 0, 1, 1], [], []>} : vector<256x8xf32>, vector<8x8xf32>, vector<256x8xf32> -> vector<256x8xf32>
    %174 = arith.addf %168, %173 : vector<256x8xf32>
    %c2_196 = arith.constant 2 : index
    %c0_197 = arith.constant 0 : index
    %c0_198 = arith.constant 0 : index
    %175 = vector.load %arg14[%c2_196, %c0_197, %c0_198] : memref<18x18x8xf32, #tpu.memory_space<vmem>>, vector<16x16x8xf32>
    %176 = vector.shape_cast %175 : vector<16x16x8xf32> to vector<256x8xf32>
    %c6_199 = arith.constant 6 : index
    %c0_200 = arith.constant 0 : index
    %c0_201 = arith.constant 0 : index
    %177 = vector.load %arg8[%c6_199, %c0_200, %c0_201] : memref<9x8x8xf32, #tpu.memory_space<vmem>>, vector<1x8x8xf32>
    %178 = vector.shape_cast %177 : vector<1x8x8xf32> to vector<8x8xf32>
    %cst_202 = arith.constant dense<0.000000e+00> : vector<256x8xf32>
    %179 = tpu.matmul %176, %178, %cst_202 {dimension_numbers = #tpu.dot_dimension_numbers<[1], [0], [0], [1], [0, 0, 1, 1], [], []>} : vector<256x8xf32>, vector<8x8xf32>, vector<256x8xf32> -> vector<256x8xf32>
    %180 = arith.addf %174, %179 : vector<256x8xf32>
    %c2_203 = arith.constant 2 : index
    %c1_204 = arith.constant 1 : index
    %c0_205 = arith.constant 0 : index
    %181 = vector.load %arg14[%c2_203, %c1_204, %c0_205] : memref<18x18x8xf32, #tpu.memory_space<vmem>>, vector<16x16x8xf32>
    %182 = vector.shape_cast %181 : vector<16x16x8xf32> to vector<256x8xf32>
    %c7_206 = arith.constant 7 : index
    %c0_207 = arith.constant 0 : index
    %c0_208 = arith.constant 0 : index
    %183 = vector.load %arg8[%c7_206, %c0_207, %c0_208] : memref<9x8x8xf32, #tpu.memory_space<vmem>>, vector<1x8x8xf32>
    %184 = vector.shape_cast %183 : vector<1x8x8xf32> to vector<8x8xf32>
    %cst_209 = arith.constant dense<0.000000e+00> : vector<256x8xf32>
    %185 = tpu.matmul %182, %184, %cst_209 {dimension_numbers = #tpu.dot_dimension_numbers<[1], [0], [0], [1], [0, 0, 1, 1], [], []>} : vector<256x8xf32>, vector<8x8xf32>, vector<256x8xf32> -> vector<256x8xf32>
    %186 = arith.addf %180, %185 : vector<256x8xf32>
    %c2_210 = arith.constant 2 : index
    %c2_211 = arith.constant 2 : index
    %c0_212 = arith.constant 0 : index
    %187 = vector.load %arg14[%c2_210, %c2_211, %c0_212] : memref<18x18x8xf32, #tpu.memory_space<vmem>>, vector<16x16x8xf32>
    %188 = vector.shape_cast %187 : vector<16x16x8xf32> to vector<256x8xf32>
    %c8_213 = arith.constant 8 : index
    %c0_214 = arith.constant 0 : index
    %c0_215 = arith.constant 0 : index
    %189 = vector.load %arg8[%c8_213, %c0_214, %c0_215] : memref<9x8x8xf32, #tpu.memory_space<vmem>>, vector<1x8x8xf32>
    %190 = vector.shape_cast %189 : vector<1x8x8xf32> to vector<8x8xf32>
    %cst_216 = arith.constant dense<0.000000e+00> : vector<256x8xf32>
    %191 = tpu.matmul %188, %190, %cst_216 {dimension_numbers = #tpu.dot_dimension_numbers<[1], [0], [0], [1], [0, 0, 1, 1], [], []>} : vector<256x8xf32>, vector<8x8xf32>, vector<256x8xf32> -> vector<256x8xf32>
    %192 = arith.addf %186, %191 : vector<256x8xf32>
    %c0_217 = arith.constant 0 : index
    %c0_218 = arith.constant 0 : index
    %193 = vector.load %arg9[%c0_217, %c0_218] : memref<1x8xf32, #tpu.memory_space<vmem>>, vector<1x8xf32>
    %194 = vector.shape_cast %193 : vector<1x8xf32> to vector<8xf32>
    %195 = vector.shape_cast %194 : vector<8xf32> to vector<1x8xf32>
    %196 = vector.broadcast %195 : vector<1x8xf32> to vector<256x8xf32>
    %197 = arith.mulf %192, %196 : vector<256x8xf32>
    %c0_219 = arith.constant 0 : index
    %c0_220 = arith.constant 0 : index
    %198 = vector.load %arg10[%c0_219, %c0_220] : memref<1x8xf32, #tpu.memory_space<vmem>>, vector<1x8xf32>
    %199 = vector.shape_cast %198 : vector<1x8xf32> to vector<8xf32>
    %200 = vector.shape_cast %199 : vector<8xf32> to vector<1x8xf32>
    %201 = vector.broadcast %200 : vector<1x8xf32> to vector<256x8xf32>
    %202 = arith.addf %197, %201 : vector<256x8xf32>
    %cst_221 = arith.constant 0.000000e+00 : f32
    %203 = vector.broadcast %cst_221 : f32 to vector<256x8xf32>
    %204 = arith.maximumf %202, %203 : vector<256x8xf32>
    %205 = vector.shape_cast %204 : vector<256x8xf32> to vector<16x16x8xf32>
    %c0_222 = arith.constant 0 : index
    %c0_223 = arith.constant 0 : index
    %c0_224 = arith.constant 0 : index
    %c0_225 = arith.constant 0 : index
    %206 = vector.load %arg11[%c0_222, %c0_223, %c0_224, %c0_225] : memref<1x16x16x8xf32, #tpu.memory_space<vmem>>, vector<1x16x16x8xf32>
    %207 = vector.shape_cast %206 : vector<1x16x16x8xf32> to vector<16x16x8xf32>
    %208 = vector.shape_cast %205 : vector<16x16x8xf32> to vector<1x16x16x8xf32>
    tpu.vector_store %arg11[%c0_222, %c0_223, %c0_224, %c0_225], %208 {strides = array<i32>} : memref<1x16x16x8xf32, #tpu.memory_space<vmem>>, vector<1x16x16x8xf32>,
    return
  }
  func.func @transform_0(%arg0: i32) -> (i32, i32, i32) {
    %c0_i32 = arith.constant 0 : i32
    %c0_i32_0 = arith.constant 0 : i32
    %c0_i32_1 = arith.constant 0 : i32
    return %arg0, %c0_i32, %c0_i32_0 : i32, i32, i32
  }
  func.func @transform_1(%arg0: i32) -> (i32, i32, i32, i32) {
    %c0_i32 = arith.constant 0 : i32
    %c0_i32_0 = arith.constant 0 : i32
    %c0_i32_1 = arith.constant 0 : i32
    %c0_i32_2 = arith.constant 0 : i32
    return %arg0, %c0_i32, %c0_i32_0, %c0_i32_1 : i32, i32, i32, i32
  }
  func.func @transform_2(%arg0: i32) -> (i32, i32) {
    %c0_i32 = arith.constant 0 : i32
    %c0_i32_0 = arith.constant 0 : i32
    %c0_i32_1 = arith.constant 0 : i32
    return %c0_i32, %c0_i32_0 : i32, i32
  }
  func.func @transform_3(%arg0: i32) -> (i32, i32, i32) {
    %c0_i32 = arith.constant 0 : i32
    %c0_i32_0 = arith.constant 0 : i32
    %c0_i32_1 = arith.constant 0 : i32
    %c0_i32_2 = arith.constant 0 : i32
    return %c0_i32, %c0_i32_0, %c0_i32_1 : i32, i32, i32
  }
  func.func @transform_4(%arg0: i32) -> (i32, i32, i32) {
    %c0_i32 = arith.constant 0 : i32
    %c0_i32_0 = arith.constant 0 : i32
    %c0_i32_1 = arith.constant 0 : i32
    %c0_i32_2 = arith.constant 0 : i32
    return %c0_i32, %c0_i32_0, %c0_i32_1 : i32, i32, i32
  }
  func.func @transform_5(%arg0: i32) -> (i32, i32) {
    %c0_i32 = arith.constant 0 : i32
    %c0_i32_0 = arith.constant 0 : i32
    %c0_i32_1 = arith.constant 0 : i32
    return %c0_i32, %c0_i32_0 : i32, i32
  }
  func.func @transform_6(%arg0: i32) -> (i32, i32) {
    %c0_i32 = arith.constant 0 : i32
    %c0_i32_0 = arith.constant 0 : i32
    %c0_i32_1 = arith.constant 0 : i32
    return %c0_i32, %c0_i32_0 : i32, i32
  }
  func.func @transform_7(%arg0: i32) -> (i32, i32, i32) {
    %c0_i32 = arith.constant 0 : i32
    %c0_i32_0 = arith.constant 0 : i32
    %c0_i32_1 = arith.constant 0 : i32
    %c0_i32_2 = arith.constant 0 : i32
    return %c0_i32, %c0_i32_0, %c0_i32_1 : i32, i32, i32
  }
  func.func @transform_8(%arg0: i32) -> (i32, i32) {
    %c0_i32 = arith.constant 0 : i32
    %c0_i32_0 = arith.constant 0 : i32
    %c0_i32_1 = arith.constant 0 : i32
    return %c0_i32, %c0_i32_0 : i32, i32
  }
  func.func @transform_9(%arg0: i32) -> (i32, i32) {
    %c0_i32 = arith.constant 0 : i32
    %c0_i32_0 = arith.constant 0 : i32
    %c0_i32_1 = arith.constant 0 : i32
    return %c0_i32, %c0_i32_0 : i32, i32
  }
  func.func @transform_10(%arg0: i32) -> (i32, i32, i32, i32) {
    %c0_i32 = arith.constant 0 : i32
    %c0_i32_0 = arith.constant 0 : i32
    %c0_i32_1 = arith.constant 0 : i32
    %c0_i32_2 = arith.constant 0 : i32
    return %arg0, %c0_i32, %c0_i32_0, %c0_i32_1 : i32, i32, i32, i32
  }
}

</mosaic_0001>

<bundles_post_ra>
// kernel: tpu_custom_call.1
= control target key start
LH: loop header
LB: loop body
LE: loop exit
PB: predicated region body
PF: predicated region fallthrough
CT: control target
= control target key end

     0   :  { %s15928_s13 = smov 0   ;;  %s19093_s0 = inlined_call_operand.vmem [shape: f32[2,64,4], index: 0, kind: input, shape index: {}]   ;;  %s19094_s1 = inlined_call_operand.vmem [shape: f32[2,16,16,4], index: 1, kind: input, shape index: {}]   ;;  %s19095_s2 = inlined_call_operand.vmem [shape: f32[256,64], index: 2, kind: input, shape index: {}]   ;;  %s19096_s3 = inlined_call_operand.vmem [shape: f32[9,4,8], index: 3, kind: input, shape index: {}]   ;;  %s19097_s4 = inlined_call_operand.vmem [shape: f32[9,4,8], index: 4, kind: input, shape index: {}]   ;;  %s19098_s5 = inlined_call_operand.vmem [shape: f32[1,8], index: 5, kind: input, shape index: {}]   ;;  %s19099_s6 = inlined_call_operand.vmem [shape: f32[1,8], index: 6, kind: input, shape index: {}]   ;;  %s19100_s7 = inlined_call_operand.vmem [shape: f32[9,8,8], index: 7, kind: input, shape index: {}]   ;;  %s19101_s8 = inlined_call_operand.vmem [shape: f32[1,8], index: 8, kind: input, shape index: {}]   ;;  %s19102_s9 = inlined_call_operand.vmem [shape: f32[1,8], index: 9, kind: input, shape index: {}]   ;;  %s19103_s10 = inlined_call_operand.vmem [shape: f32[2,16,16,8], index: 10, kind: output, shape index: {}]  }
   0x1 LB: > { %s11734_s14 = sadd.s32 4294967295, %s15870_s13   ;;  %p11738_p0 = scmp.ge.s32.totalorder %s15870_s13, 1  ;;  %s15870_s13 = sphi %s15928_s13, %s20_s13  }
   0x2   : > { %p322_p1 = scmp.lt.s32.totalorder %s15870_s13, 3 }
   0x4   : > { %p323_p2 = pnand %p11738_p0, %p322_p1 }
   0x6   : > { %326 = sbr.rel (%p323_p2) target bundleno = 2170 (0x87a), region = 60 }
   0xd   : > { %p365_p3 = scmp.lt.s32.totalorder %s11734_s14, 1  ;;  %v380_v0 = vld [vmem:[%s19095_s2] sm:$0xff]  ;;  %vm420_vm0 = vcmask 523264   ;;  %v381_v13 = vld [vmem:[%s19095_s2 + $0x8] sm:$0xff]  ;;  %v382_v14 = vld [vmem:[%s19095_s2 + $0x10] sm:$0xff]  ;;  %vm742_vm1 = vcmask 31744  }
   0xe   : > { %13639 = vmatprep.mubr.msk.f32.mxu0 %vm420_vm0, %v380_v0  ;;  %v383_v15 = vld [vmem:[%s19095_s2 + $0x18] sm:$0xff]  ;;  %v384_v16 = vld [vmem:[%s19095_s2 + $0x20] sm:$0xff]  ;;  %v385_v17 = vld [vmem:[%s19095_s2 + $0x28] sm:$0xff]  ;;  %v19104_v42 = vmov 0.0   ;;  %vm745_vm2 = vcmask 25600   ;;  %vm1112_vm3 = vcmask 1043456  }
   0xf   : > { %s19438_s14 = smov (!%p365_p3, %s11734_s14), 1  ;;  %v386_v18 = vld [vmem:[%s19095_s2 + $0x30] sm:$0xff]  ;;  %v387_v19 = vld [vmem:[%s19095_s2 + $0x38] sm:$0xff]  ;;  %v388_v20 = vld [vmem:[%s19095_s2 + $0x40] sm:$0xff]  ;;  %748 = vst.msk [vmem:[#allocation2 + $0x20] sm:$0xff] %vm742_vm1, %v19104_v42  ;;  %vm8017_vm4 = vcmask 64512  }
  0x10   : > { %s12689_s17 = sshll.u32 %s19438_s14, 6  ;;  %v389_v21 = vld [vmem:[%s19095_s2 + $0x48] sm:$0xff]  ;;  %v390_v22 = vld [vmem:[%s19095_s2 + $0x50] sm:$0xff]  ;;  %v391_v23 = vld [vmem:[%s19095_s2 + $0x58] sm:$0xff]  ;;  %743 = vst.msk [vmem:[#allocation2] sm:$0xff] %vm742_vm1, %v19104_v42  ;;  %s12690_s11 = sshll.u32 %s19438_s14, 8 }
  0x11   : > { %s369_s20 = scalar_lea.vmem %s19093_s0, %s12689_s17  ;;  %v392_v24 = vld [vmem:[%s19095_s2 + $0x60] sm:$0xff]  ;;  %v393_v25 = vld [vmem:[%s19095_s2 + $0x68] sm:$0xff]  ;;  %v394_v26 = vld [vmem:[%s19095_s2 + $0x70] sm:$0xff]  ;;  %744 = vst.msk [vmem:[#allocation2 + $0x8] sm:$0xff] %vm742_vm1, %v19104_v42  ;;  %s16308_s18 = scalar_lea.vmem %s19094_s1, %s12690_s11  ;;  %vm8020_vm5 = vcmask 58368  }
  0x12   : > { %v412_v1 = vld [vmem:[%s369_s20] sm:$0xff]  ;;  %v413_v2 = vld [vmem:[%s369_s20 + $0x8] sm:$0xff]  ;;  %v414_v3 = vld [vmem:[%s369_s20 + $0x10] sm:$0xff]  ;;  %747 = vst.msk [vmem:[#allocation2 + $0x18] sm:$0xff] %vm742_vm1, %v19104_v42  ;;  %s18963_s28 = scalar_lea.vmem %s19103_s10, %s12690_s11 }
  0x13   : > { %v15037_v4 = vpack.c.bf16 %v413_v2, %v412_v1  ;;  %v415_v5 = vld [vmem:[%s369_s20 + $0x18] sm:$0xff]  ;;  %v416_v7 = vld [vmem:[%s369_s20 + $0x20] sm:$0xff]  ;;  %v417_v8 = vld [vmem:[%s369_s20 + $0x28] sm:$0xff]  ;;  %750 = vst.msk [vmem:[#allocation2 + $0x30] sm:$0xff] %vm742_vm1, %v19104_v42 }
  0x14   : > { %v15041_v6 = vpack.c.bf16 %v415_v5, %v414_v3  ;;  %v15045_v9 = vpack.c.bf16 %v417_v8, %v416_v7  ;;  %v418_v10 = vld [vmem:[%s369_s20 + $0x30] sm:$0xff]  ;;  %v419_v11 = vld [vmem:[%s369_s20 + $0x38] sm:$0xff]  ;;  %v396_v28 = vld [vmem:[%s19095_s2 + $0x80] sm:$0xff]  ;;  %751 = vst.msk [vmem:[#allocation2 + $0x38] sm:$0xff] %vm742_vm1, %v19104_v42 }
  0x15   : > { %15038 = vmatprep.subr.bf16.mxu0 %v15037_v4  ;;  %v15049_v12 = vpack.c.bf16 %v419_v11, %v418_v10  ;;  %v395_v27 = vld [vmem:[%s19095_s2 + $0x78] sm:$0xff]  ;;  %v397_v29 = vld [vmem:[%s19095_s2 + $0x88] sm:$0xff]  ;;  %v398_v30 = vld [vmem:[%s19095_s2 + $0x90] sm:$0xff]  ;;  %753 = vst.msk [vmem:[#allocation2 + $0x48] sm:$0xff] %vm742_vm1, %v19104_v42 }
  0x16   : > { %15040 = vmatpush3.bf16.msra.mxu0 %v15037_v4  ;;  %v399_v31 = vld [vmem:[%s19095_s2 + $0x98] sm:$0xff]  ;;  %v400_v32 = vld [vmem:[%s19095_s2 + $0xa0] sm:$0xff]  ;;  %v401_v33 = vld [vmem:[%s19095_s2 + $0xa8] sm:$0xff]  ;;  %754 = vst.msk [vmem:[#allocation2 + $0x50] sm:$0xff] %vm742_vm1, %v19104_v42 }
  0x17   : > { %15042 = vmatprep.subr.bf16.mxu0 %v15041_v6  ;;  %v402_v34 = vld [vmem:[%s19095_s2 + $0xb0] sm:$0xff]  ;;  %v403_v35 = vld [vmem:[%s19095_s2 + $0xb8] sm:$0xff]  ;;  %v404_v36 = vld [vmem:[%s19095_s2 + $0xc0] sm:$0xff]  ;;  %756 = vst.msk [vmem:[#allocation2 + $0x60] sm:$0xff] %vm742_vm1, %v19104_v42 }
  0x18   : > { %v405_v37 = vld [vmem:[%s19095_s2 + $0xc8] sm:$0xff]  ;;  %v406_v38 = vld [vmem:[%s19095_s2 + $0xd0] sm:$0xff]  ;;  %v407_v39 = vld [vmem:[%s19095_s2 + $0xd8] sm:$0xff]  ;;  %757 = vst.msk [vmem:[#allocation2 + $0x68] sm:$0xff] %vm742_vm1, %v19104_v42 }
  0x19   : > { %v408_v40 = vld [vmem:[%s19095_s2 + $0xe0] sm:$0xff]  ;;  %v409_v41 = vld [vmem:[%s19095_s2 + $0xe8] sm:$0xff]  ;;  %759 = vst.msk [vmem:[#allocation2 + $0x78] sm:$0xff] %vm742_vm1, %v19104_v42  ;;  %760 = vst.msk [vmem:[#allocation2 + $0x80] sm:$0xff] %vm742_vm1, %v19104_v42 }
  0x1a   : > { %15044 = vmatpush3.bf16.msra.mxu0 %v15041_v6  ;;  %762 = vst.msk [vmem:[#allocation2 + $0x90] sm:$0xff] %vm742_vm1, %v19104_v42  ;;  %763 = vst.msk [vmem:[#allocation2 + $0x98] sm:$0xff] %vm742_vm1, %v19104_v42  ;;  %v410_v43 = vld [vmem:[%s19095_s2 + $0xf0] sm:$0xff]  ;;  %v411_v44 = vld [vmem:[%s19095_s2 + $0xf8] sm:$0xff] }
  0x1b   : > { %15046 = vmatprep.subr.bf16.mxu0 %v15045_v9  ;;  %765 = vst.msk [vmem:[#allocation2 + $0xa8] sm:$0xff] %vm742_vm1, %v19104_v42  ;;  %766 = vst.msk [vmem:[#allocation2 + $0xb0] sm:$0xff] %vm742_vm1, %v19104_v42  ;;  %v1015_v45 = vld [vmem:[%s19097_s4] sm:$0xf]  ;;  %v984_v47 = vld [vmem:[#allocation2 + $0x8] sm:$0xff] }
  0x1c   : > { %768 = vst.msk [vmem:[#allocation2 + $0xc0] sm:$0xff] %vm742_vm1, %v19104_v42  ;;  %769 = vst.msk [vmem:[#allocation2 + $0xc8] sm:$0xff] %vm742_vm1, %v19104_v42  ;;  %v983_v46 = vld [vmem:[#allocation2] sm:$0xff]  ;;  %v16313_v49 = vld [vmem:[%s19096_s3 + $0x8] sm:$0xf] }
  0x1d   : > { %771 = vst.msk [vmem:[#allocation2 + $0xd8] sm:$0xff] %vm742_vm1, %v19104_v42  ;;  %772 = vst.msk [vmem:[#allocation2 + $0xe0] sm:$0xff] %vm742_vm1, %v19104_v42  ;;  %v16297_v48 = vld [vmem:[%s19097_s4 + $0x4] sm:$0xf]  ;;  %v886_v51 = vld [vmem:[%s16308_s18 + $0x8] sm:$0xff] }
  0x1e   : > { %15048 = vmatpush3.bf16.msra.mxu0 %v15045_v9  ;;  %774 = vst.msk [vmem:[#allocation2 + $0xf0] sm:$0xff] %vm742_vm1, %v19104_v42  ;;  %775 = vst.msk [vmem:[#allocation2 + $0xf8] sm:$0xff] %vm742_vm1, %v19104_v42  ;;  %15053 = vmatprep.subr.msk.mxu1 %vm1112_vm3, %v16297_v48  ;;  %v885_v50 = vld [vmem:[%s16308_s18] sm:$0xff]  ;;  %v887_v53 = vld [vmem:[%s16308_s18 + $0x10] sm:$0xff] }
  0x1f   : > { %15050 = vmatprep.subr.bf16.mxu0 %v15049_v12  ;;  %777 = vst.msk [vmem:[#allocation2 + $0x108] sm:$0xff] %vm742_vm1, %v19104_v42  ;;  %778 = vst.msk [vmem:[#allocation2 + $0x110] sm:$0xff] %vm742_vm1, %v19104_v42  ;;  %15054 = vmatpush3.msk.msra.mxu1 %vm1112_vm3, %v16297_v48  ;;  %v982_v52 = vld [vmem:[%s19096_s3] sm:$0xf]  ;;  %v888_v54 = vld [vmem:[%s16308_s18 + $0x18] sm:$0xff] }
  0x20   : > { %780 = vst.msk [vmem:[#allocation2 + $0x120] sm:$0xff] %vm742_vm1, %v19104_v42  ;;  %781 = vst.msk [vmem:[#allocation2 + $0x128] sm:$0xff] %vm742_vm1, %v19104_v42  ;;  %13887 = vmatprep.subr.msk.mxu1 %vm1112_vm3, %v16313_v49  ;;  %v889_v55 = vld [vmem:[%s16308_s18 + $0x20] sm:$0xff]  ;;  %v890_v56 = vld [vmem:[%s16308_s18 + $0x28] sm:$0xff] }
  0x21   : > { %783 = vst.msk [vmem:[#allocation2 + $0x138] sm:$0xff] %vm742_vm1, %v19104_v42  ;;  %784 = vst.msk [vmem:[#allocation2 + $0x140] sm:$0xff] %vm742_vm1, %v19104_v42  ;;  %v891_v57 = vld [vmem:[%s16308_s18 + $0x30] sm:$0xff]  ;;  %v892_v58 = vld [vmem:[%s16308_s18 + $0x38] sm:$0xff] }
  0x22   : > { %15052 = vmatpush3.bf16.msra.mxu0 %v15049_v12  ;;  %786 = vst.msk [vmem:[#allocation2 + $0x150] sm:$0xff] %vm742_vm1, %v19104_v42  ;;  %787 = vst.msk [vmem:[#allocation2 + $0x158] sm:$0xff] %vm742_vm1, %v19104_v42  ;;  %v893_v59 = vld [vmem:[%s16308_s18 + $0x40] sm:$0xff]  ;;  %v894_v60 = vld [vmem:[%s16308_s18 + $0x48] sm:$0xff] }
  0x23   : > { %789 = vst.msk [vmem:[#allocation2 + $0x168] sm:$0xff] %vm742_vm1, %v19104_v42  ;;  %790 = vst.msk [vmem:[#allocation2 + $0x170] sm:$0xff] %vm742_vm1, %v19104_v42  ;;  %13687 = vmatprep.subr.msk.mxu0 %vm1112_vm3, %v1015_v45  ;;  %v895_v61 = vld [vmem:[%s16308_s18 + $0x50] sm:$0xff]  ;;  %v896_v62 = vld [vmem:[%s16308_s18 + $0x58] sm:$0xff] }
  0x24   : > { %792 = vst.msk [vmem:[#allocation2 + $0x180] sm:$0xff] %vm742_vm1, %v19104_v42  ;;  %793 = vst.msk [vmem:[#allocation2 + $0x188] sm:$0xff] %vm742_vm1, %v19104_v42  ;;  %v897_v63 = vld [vmem:[%s16308_s18 + $0x60] sm:$0xff]  ;;  %v898_v0 = vld [vmem:[%s16308_s18 + $0x68] sm:$0xff] }
  0x25   : > { %13640 = vmatmul.mubr.msk.f32.vlgmr.msra.gmra.mrb[0].mxu0 %vm420_vm0, %v381_v13  ;;  %795 = vst.msk [vmem:[#allocation2 + $0x198] sm:$0xff] %vm742_vm1, %v19104_v42  ;;  %796 = vst.msk [vmem:[#allocation2 + $0x1a0] sm:$0xff] %vm742_vm1, %v19104_v42  ;;  %v899_v1 = vld [vmem:[%s16308_s18 + $0x70] sm:$0xff]  ;;  %v900_v2 = vld [vmem:[%s16308_s18 + $0x78] sm:$0xff] }
  0x26   : > { %13642 = vmatprep.mubr.msk.f32.mxu0 %vm420_vm0, %v382_v14  ;;  %831 = vst.msk [vmem:[#allocation3] sm:$0xff] %vm742_vm1, %v19104_v42  ;;  %832 = vst.msk [vmem:[#allocation3 + $0x8] sm:$0xff] %vm742_vm1, %v19104_v42  ;;  %13688 = vmatpush3.msk.msra.mxu0 %vm1112_vm3, %v1015_v45  ;;  %v901_v3 = vld [vmem:[%s16308_s18 + $0x80] sm:$0xff]  ;;  %v902_v4 = vld [vmem:[%s16308_s18 + $0x88] sm:$0xff] }
  0x27   : > { %834 = vst.msk [vmem:[#allocation3 + $0x18] sm:$0xff] %vm742_vm1, %v19104_v42  ;;  %835 = vst.msk [vmem:[#allocation3 + $0x20] sm:$0xff] %vm742_vm1, %v19104_v42  ;;  %13737 = vmatprep.subr.msk.mxu0 %vm1112_vm3, %v982_v52  ;;  %v903_v5 = vld [vmem:[%s16308_s18 + $0x90] sm:$0xff]  ;;  %v904_v6 = vld [vmem:[%s16308_s18 + $0x98] sm:$0xff] }
  0x28   : > { %837 = vst.msk [vmem:[#allocation3 + $0x30] sm:$0xff] %vm742_vm1, %v19104_v42  ;;  %838 = vst.msk [vmem:[#allocation3 + $0x38] sm:$0xff] %vm742_vm1, %v19104_v42  ;;  %v905_v7 = vld [vmem:[%s16308_s18 + $0xa0] sm:$0xff]  ;;  %v906_v8 = vld [vmem:[%s16308_s18 + $0xa8] sm:$0xff] }
  0x29   : > { %13643 = vmatmul.mubr.msk.f32.gmra.mrb[2].mxu0 %vm420_vm0, %v383_v15  ;;  %840 = vst.msk [vmem:[#allocation3 + $0x48] sm:$0xff] %vm742_vm1, %v19104_v42  ;;  %841 = vst.msk [vmem:[#allocation3 + $0x50] sm:$0xff] %vm742_vm1, %v19104_v42  ;;  %v907_v9 = vld [vmem:[%s16308_s18 + $0xb0] sm:$0xff]  ;;  %v908_v10 = vld [vmem:[%s16308_s18 + $0xb8] sm:$0xff] }
  0x2a   : > { %13645 = vmatprep.mubr.msk.f32.mxu0 %vm420_vm0, %v384_v16  ;;  %843 = vst.msk [vmem:[#allocation3 + $0x60] sm:$0xff] %vm742_vm1, %v19104_v42  ;;  %844 = vst.msk [vmem:[#allocation3 + $0x68] sm:$0xff] %vm742_vm1, %v19104_v42  ;;  %v909_v11 = vld [vmem:[%s16308_s18 + $0xc0] sm:$0xff]  ;;  %v910_v12 = vld [vmem:[%s16308_s18 + $0xc8] sm:$0xff] }
  0x2b   : > { %846 = vst.msk [vmem:[#allocation3 + $0x78] sm:$0xff] %vm742_vm1, %v19104_v42  ;;  %847 = vst.msk [vmem:[#allocation3 + $0x80] sm:$0xff] %vm742_vm1, %v19104_v42  ;;  %v911_v13 = vld [vmem:[%s16308_s18 + $0xd0] sm:$0xff]  ;;  %v912_v14 = vld [vmem:[%s16308_s18 + $0xd8] sm:$0xff] }
  0x2c   : > { %849 = vst.msk [vmem:[#allocation3 + $0x90] sm:$0xff] %vm742_vm1, %v19104_v42  ;;  %850 = vst.msk [vmem:[#allocation3 + $0x98] sm:$0xff] %vm742_vm1, %v19104_v42  ;;  %v913_v15 = vld [vmem:[%s16308_s18 + $0xe0] sm:$0xff]  ;;  %v914_v16 = vld [vmem:[%s16308_s18 + $0xe8] sm:$0xff] }
  0x2d   : > { %13646 = vmatmul.mubr.msk.f32.gmra.mrb[4].mxu0 %vm420_vm0, %v385_v17  ;;  %852 = vst.msk [vmem:[#allocation3 + $0xa8] sm:$0xff] %vm742_vm1, %v19104_v42  ;;  %853 = vst.msk [vmem:[#allocation3 + $0xb0] sm:$0xff] %vm742_vm1, %v19104_v42 }
  0x2e   : > { %13648 = vmatprep.mubr.msk.f32.mxu0 %vm420_vm0, %v386_v18  ;;  %855 = vst.msk [vmem:[#allocation3 + $0xc0] sm:$0xff] %vm742_vm1, %v19104_v42  ;;  %856 = vst.msk [vmem:[#allocation3 + $0xc8] sm:$0xff] %vm742_vm1, %v19104_v42 }
  0x2f   : > { %858 = vst.msk [vmem:[#allocation3 + $0xd8] sm:$0xff] %vm742_vm1, %v19104_v42  ;;  %859 = vst.msk [vmem:[#allocation3 + $0xe0] sm:$0xff] %vm742_vm1, %v19104_v42 }
  0x30   : > { %861 = vst.msk [vmem:[#allocation3 + $0xf0] sm:$0xff] %vm742_vm1, %v19104_v42  ;;  %862 = vst.msk [vmem:[#allocation3 + $0xf8] sm:$0xff] %vm742_vm1, %v19104_v42 }
  0x31   : > { %13649 = vmatmul.mubr.msk.f32.gmra.mrb[6].mxu0 %vm420_vm0, %v387_v19  ;;  %864 = vst.msk [vmem:[#allocation3 + $0x108] sm:$0xff] %vm742_vm1, %v19104_v42  ;;  %865 = vst.msk [vmem:[#allocation3 + $0x110] sm:$0xff] %vm742_vm1, %v19104_v42  ;;  %v16387_v19 = vld [vmem:[%s19096_s3 + $0x4] sm:$0xf] }
  0x32   : > { %13651 = vmatprep.mubr.msk.f32.mxu0 %vm420_vm0, %v388_v20  ;;  %867 = vst.msk [vmem:[#allocation3 + $0x120] sm:$0xff] %vm742_vm1, %v19104_v42  ;;  %868 = vst.msk [vmem:[#allocation3 + $0x128] sm:$0xff] %vm742_vm1, %v19104_v42 }
  0x33   : > { %870 = vst.msk [vmem:[#allocation3 + $0x138] sm:$0xff] %vm742_vm1, %v19104_v42  ;;  %871 = vst.msk [vmem:[#allocation3 + $0x140] sm:$0xff] %vm742_vm1, %v19104_v42 }
  0x34   : > { %873 = vst.msk [vmem:[#allocation3 + $0x150] sm:$0xff] %vm742_vm1, %v19104_v42  ;;  %874 = vst.msk [vmem:[#allocation3 + $0x158] sm:$0xff] %vm742_vm1, %v19104_v42 }
  0x35   : > { %13652 = vmatmul.mubr.msk.f32.gmra.mrb[8].mxu0 %vm420_vm0, %v389_v21  ;;  %876 = vst.msk [vmem:[#allocation3 + $0x168] sm:$0xff] %vm742_vm1, %v19104_v42  ;;  %877 = vst.msk [vmem:[#allocation3 + $0x170] sm:$0xff] %vm742_vm1, %v19104_v42 }
  0x36   : > { %13654 = vmatprep.mubr.msk.f32.mxu0 %vm420_vm0, %v390_v22  ;;  %879 = vst.msk [vmem:[#allocation3 + $0x180] sm:$0xff] %vm742_vm1, %v19104_v42  ;;  %880 = vst.msk [vmem:[#allocation3 + $0x188] sm:$0xff] %vm742_vm1, %v19104_v42 }
  0x37   : > { %882 = vst.msk [vmem:[#allocation3 + $0x198] sm:$0xff] %vm742_vm1, %v19104_v42  ;;  %883 = vst.msk [vmem:[#allocation3 + $0x1a0] sm:$0xff] %vm742_vm1, %v19104_v42 }
  0x38   : > { %749 = vst.msk [vmem:[#allocation2 + $0x28] sm:$0x3] %vm745_vm2, %v19104_v42  ;;  %746 = vst.msk [vmem:[#allocation2 + $0x10] sm:$0x3] %vm745_vm2, %v19104_v42 }
  0x39   : > { %13655 = vmatmul.mubr.msk.f32.gmra.mrb[10].mxu0 %vm420_vm0, %v391_v23  ;;  %752 = vst.msk [vmem:[#allocation2 + $0x40] sm:$0x3] %vm745_vm2, %v19104_v42  ;;  %755 = vst.msk [vmem:[#allocation2 + $0x58] sm:$0x3] %vm745_vm2, %v19104_v42 }
  0x3a   : > { %13657 = vmatprep.mubr.msk.f32.mxu0 %vm420_vm0, %v392_v24  ;;  %758 = vst.msk [vmem:[#allocation2 + $0x70] sm:$0x3] %vm745_vm2, %v19104_v42  ;;  %761 = vst.msk [vmem:[#allocation2 + $0x88] sm:$0x3] %vm745_vm2, %v19104_v42 }
  0x3b   : > { %764 = vst.msk [vmem:[#allocation2 + $0xa0] sm:$0x3] %vm745_vm2, %v19104_v42  ;;  %767 = vst.msk [vmem:[#allocation2 + $0xb8] sm:$0x3] %vm745_vm2, %v19104_v42 }
  0x3c   : > { %770 = vst.msk [vmem:[#allocation2 + $0xd0] sm:$0x3] %vm745_vm2, %v19104_v42  ;;  %773 = vst.msk [vmem:[#allocation2 + $0xe8] sm:$0x3] %vm745_vm2, %v19104_v42 }
  0x3d   : > { %13658 = vmatmul.mubr.msk.f32.gmra.mrb[12].mxu0 %vm420_vm0, %v393_v25  ;;  %776 = vst.msk [vmem:[#allocation2 + $0x100] sm:$0x3] %vm745_vm2, %v19104_v42  ;;  %779 = vst.msk [vmem:[#allocation2 + $0x118] sm:$0x3] %vm745_vm2, %v19104_v42 }
  0x3e   : > { %13660 = vmatprep.mubr.msk.f32.mxu0 %vm420_vm0, %v394_v26  ;;  %782 = vst.msk [vmem:[#allocation2 + $0x130] sm:$0x3] %vm745_vm2, %v19104_v42  ;;  %785 = vst.msk [vmem:[#allocation2 + $0x148] sm:$0x3] %vm745_vm2, %v19104_v42 }
  0x3f   : > { %788 = vst.msk [vmem:[#allocation2 + $0x160] sm:$0x3] %vm745_vm2, %v19104_v42  ;;  %791 = vst.msk [vmem:[#allocation2 + $0x178] sm:$0x3] %vm745_vm2, %v19104_v42 }
  0x40   : > { %794 = vst.msk [vmem:[#allocation2 + $0x190] sm:$0x3] %vm745_vm2, %v19104_v42  ;;  %797 = vst.msk [vmem:[#allocation2 + $0x1a8] sm:$0x3] %vm745_vm2, %v19104_v42 }
  0x41   : > { %13661 = vmatmul.mubr.msk.f32.gmra.mrb[14].mxu0 %vm420_vm0, %v395_v27  ;;  %833 = vst.msk [vmem:[#allocation3 + $0x10] sm:$0x3] %vm745_vm2, %v19104_v42  ;;  %836 = vst.msk [vmem:[#allocation3 + $0x28] sm:$0x3] %vm745_vm2, %v19104_v42 }
  0x42   : > { %13663 = vmatprep.mubr.msk.f32.mxu0 %vm420_vm0, %v396_v28  ;;  %839 = vst.msk [vmem:[#allocation3 + $0x40] sm:$0x3] %vm745_vm2, %v19104_v42  ;;  %842 = vst.msk [vmem:[#allocation3 + $0x58] sm:$0x3] %vm745_vm2, %v19104_v42 }
  0x43   : > { %845 = vst.msk [vmem:[#allocation3 + $0x70] sm:$0x3] %vm745_vm2, %v19104_v42  ;;  %848 = vst.msk [vmem:[#allocation3 + $0x88] sm:$0x3] %vm745_vm2, %v19104_v42 }
  0x44   : > { %851 = vst.msk [vmem:[#allocation3 + $0xa0] sm:$0x3] %vm745_vm2, %v19104_v42  ;;  %854 = vst.msk [vmem:[#allocation3 + $0xb8] sm:$0x3] %vm745_vm2, %v19104_v42 }
  0x45   : > { %13664 = vmatmul.mubr.msk.f32.gmra.mrb[16].mxu0 %vm420_vm0, %v397_v29  ;;  %857 = vst.msk [vmem:[#allocation3 + $0xd0] sm:$0x3] %vm745_vm2, %v19104_v42  ;;  %860 = vst.msk [vmem:[#allocation3 + $0xe8] sm:$0x3] %vm745_vm2, %v19104_v42 }
  0x46   : > { %13666 = vmatprep.mubr.msk.f32.mxu0 %vm420_vm0, %v398_v30  ;;  %863 = vst.msk [vmem:[#allocation3 + $0x100] sm:$0x3] %vm745_vm2, %v19104_v42  ;;  %866 = vst.msk [vmem:[#allocation3 + $0x118] sm:$0x3] %vm745_vm2, %v19104_v42 }
  0x47   : > { %869 = vst.msk [vmem:[#allocation3 + $0x130] sm:$0x3] %vm745_vm2, %v19104_v42  ;;  %872 = vst.msk [vmem:[#allocation3 + $0x148] sm:$0x3] %vm745_vm2, %v19104_v42 }
  0x48   : > { %875 = vst.msk [vmem:[#allocation3 + $0x160] sm:$0x3] %vm745_vm2, %v19104_v42  ;;  %878 = vst.msk [vmem:[#allocation3 + $0x178] sm:$0x3] %vm745_vm2, %v19104_v42 }
  0x49   : > { %13667 = vmatmul.mubr.msk.f32.gmra.mrb[18].mxu0 %vm420_vm0, %v399_v31  ;;  %881 = vst.msk [vmem:[#allocation3 + $0x190] sm:$0x3] %vm745_vm2, %v19104_v42  ;;  %884 = vst.msk [vmem:[#allocation3 + $0x1a8] sm:$0x3] %vm745_vm2, %v19104_v42 }
  0x4a   : > { %13669 = vmatprep.mubr.msk.f32.mxu0 %vm420_vm0, %v400_v32  ;;  %918 = vst.msk [vmem:[#allocation3 + $0x19] sm:$0xff] %vm742_vm1, %v885_v50  ;;  %919 = vst.msk [vmem:[#allocation3 + $0x21] sm:$0xff] %vm742_vm1, %v886_v51 }
  0x4b   : > { %920 = vst.msk [vmem:[#allocation3 + $0x31] sm:$0xff] %vm742_vm1, %v887_v53  ;;  %921 = vst.msk [vmem:[#allocation3 + $0x39] sm:$0xff] %vm742_vm1, %v888_v54 }
  0x4c   : > { %922 = vst.msk [vmem:[#allocation3 + $0x49] sm:$0xff] %vm742_vm1, %v889_v55  ;;  %923 = vst.msk [vmem:[#allocation3 + $0x51] sm:$0xff] %vm742_vm1, %v890_v56 }
  0x4d   : > { %13670 = vmatmul.mubr.msk.f32.gmra.mrb[20].mxu0 %vm420_vm0, %v401_v33  ;;  %924 = vst.msk [vmem:[#allocation3 + $0x61] sm:$0xff] %vm742_vm1, %v891_v57  ;;  %925 = vst.msk [vmem:[#allocation3 + $0x69] sm:$0xff] %vm742_vm1, %v892_v58 }
  0x4e   : > { %13672 = vmatprep.mubr.msk.f32.mxu0 %vm420_vm0, %v402_v34  ;;  %926 = vst.msk [vmem:[#allocation3 + $0x79] sm:$0xff] %vm742_vm1, %v893_v59  ;;  %927 = vst.msk [vmem:[#allocation3 + $0x81] sm:$0xff] %vm742_vm1, %v894_v60 }
  0x4f   : > { %928 = vst.msk [vmem:[#allocation3 + $0x91] sm:$0xff] %vm742_vm1, %v895_v61  ;;  %929 = vst.msk [vmem:[#allocation3 + $0x99] sm:$0xff] %vm742_vm1, %v896_v62 }
  0x50   : > { %930 = vst.msk [vmem:[#allocation3 + $0xa9] sm:$0xff] %vm742_vm1, %v897_v63  ;;  %931 = vst.msk [vmem:[#allocation3 + $0xb1] sm:$0xff] %vm742_vm1, %v898_v0 }
  0x51   : > { %13673 = vmatmul.mubr.msk.f32.gmra.mrb[22].mxu0 %vm420_vm0, %v403_v35  ;;  %932 = vst.msk [vmem:[#allocation3 + $0xc1] sm:$0xff] %vm742_vm1, %v899_v1  ;;  %933 = vst.msk [vmem:[#allocation3 + $0xc9] sm:$0xff] %vm742_vm1, %v900_v2 }
  0x52   : > { %13675 = vmatprep.mubr.msk.f32.mxu0 %vm420_vm0, %v404_v36  ;;  %934 = vst.msk [vmem:[#allocation3 + $0xd9] sm:$0xff] %vm742_vm1, %v901_v3  ;;  %935 = vst.msk [vmem:[#allocation3 + $0xe1] sm:$0xff] %vm742_vm1, %v902_v4 }
  0x53   : > { %936 = vst.msk [vmem:[#allocation3 + $0xf1] sm:$0xff] %vm742_vm1, %v903_v5  ;;  %937 = vst.msk [vmem:[#allocation3 + $0xf9] sm:$0xff] %vm742_vm1, %v904_v6 }
  0x54   : > { %938 = vst.msk [vmem:[#allocation3 + $0x109] sm:$0xff] %vm742_vm1, %v905_v7  ;;  %939 = vst.msk [vmem:[#allocation3 + $0x111] sm:$0xff] %vm742_vm1, %v906_v8 }
  0x55   : > { %13676 = vmatmul.mubr.msk.f32.gmra.mrb[24].mxu0 %vm420_vm0, %v405_v37  ;;  %940 = vst.msk [vmem:[#allocation3 + $0x121] sm:$0xff] %vm742_vm1, %v907_v9  ;;  %941 = vst.msk [vmem:[#allocation3 + $0x129] sm:$0xff] %vm742_vm1, %v908_v10 }
  0x56   : > { %13678 = vmatprep.mubr.msk.f32.mxu0 %vm420_vm0, %v406_v38  ;;  %942 = vst.msk [vmem:[#allocation3 + $0x139] sm:$0xff] %vm742_vm1, %v909_v11  ;;  %943 = vst.msk [vmem:[#allocation3 + $0x141] sm:$0xff] %vm742_vm1, %v910_v12 }
  0x57   : > { %944 = vst.msk [vmem:[#allocation3 + $0x151] sm:$0xff] %vm742_vm1, %v911_v13  ;;  %945 = vst.msk [vmem:[#allocation3 + $0x159] sm:$0xff] %vm742_vm1, %v912_v14 }
  0x58   : > { %946 = vst.msk [vmem:[#allocation3 + $0x169] sm:$0xff] %vm742_vm1, %v913_v15  ;;  %947 = vst.msk [vmem:[#allocation3 + $0x171] sm:$0xff] %vm742_vm1, %v914_v16 }
  0x59   : > { %13679 = vmatmul.mubr.msk.f32.gmra.mrb[26].mxu0 %vm420_vm0, %v407_v39 }
  0x5a   : > { %13681 = vmatprep.mubr.msk.f32.mxu0 %vm420_vm0, %v408_v40 }
  0x5d   : > { %13682 = vmatmul.mubr.msk.f32.gmra.mrb[28].mxu0 %vm420_vm0, %v409_v41 }
  0x5e   : > { %13684 = vmatprep.mubr.msk.f32.mxu0 %vm420_vm0, %v410_v43 }
  0x61   : > { %13685 = vmatmul.mubr.msk.f32.gmra.mrb[30].mxu0 %vm420_vm0, %v411_v44 }
  0x62   : > { %13689 = vmatprep.mubr.msk.f32.mxu0 %vm742_vm1, %v983_v46 }
  0x65   : > { %13690 = vmatmul.mubr.msk.f32.vlgmr.msra.gmra.mrb[32].mxu0 %vm742_vm1, %v984_v47 }
  0x66   : > { %13738 = vmatpush3.msk.msra.mxu0 %vm1112_vm3, %v982_v52 }
  0x67   : > { %13787 = vmatprep.subr.msk.mxu0 %vm1112_vm3, %v16387_v19 }
  0xf8   : > { %v13641_v17 = vpop.f32.mrb[0].mxu0 }
  0xf9   : > { %800 = vst.msk [vmem:[#allocation2 + $0x21] sm:$0xff] %vm742_vm1, %v13641_v17  ;;  %v583_v18 = vpop.f32.mrb[1].mxu0  ;;  %v11945_v17 = vld [vmem:[%s19097_s4 + $0x8] sm:$0xf] }
  0xfa   : > { %799 = vst.msk [vmem:[#allocation2 + $0x19] sm:$0xff] %vm742_vm1, %v583_v18  ;;  %v950_v18 = vld [vmem:[#allocation3] sm:$0xff] }
  0xfc   : > { %v13644_v20 = vpop.f32.mrb[2].mxu0 }
  0xfd   : > { %802 = vst.msk [vmem:[#allocation2 + $0x39] sm:$0xff] %vm742_vm1, %v13644_v20  ;;  %v593_v21 = vpop.f32.mrb[3].mxu0  ;;  %v2445_v20 = vld [vmem:[#allocation3 + $0x2] sm:$0xff] }
  0xfe   : > { %801 = vst.msk [vmem:[#allocation2 + $0x31] sm:$0xff] %vm742_vm1, %v593_v21 }
 0x100   : > { %v13647_v22 = vpop.f32.mrb[4].mxu0 }
 0x101   : > { %804 = vst.msk [vmem:[#allocation2 + $0x51] sm:$0xff] %vm742_vm1, %v13647_v22  ;;  %v603_v23 = vpop.f32.mrb[5].mxu0  ;;  %v985_v24 = vld [vmem:[#allocation2 + $0x18] sm:$0xff]  ;;  %v986_v25 = vld [vmem:[#allocation2 + $0x20] sm:$0xff] }
 0x102   : > { %803 = vst.msk [vmem:[#allocation2 + $0x49] sm:$0xff] %vm742_vm1, %v603_v23  ;;  %13692 = vmatprep.mubr.msk.f32.mxu0 %vm742_vm1, %v985_v24 }
 0x103   : > { %13693 = vmatmul.mubr.msk.f32.gmra.mrb[34].mxu0 %vm742_vm1, %v986_v25  ;;  %v2446_v25 = vld [vmem:[#allocation3 + $0xa] sm:$0xff] }
 0x104   : > { %v13650_v26 = vpop.f32.mrb[6].mxu0 }
 0x105   : > { %806 = vst.msk [vmem:[#allocation2 + $0x69] sm:$0xff] %vm742_vm1, %v13650_v26  ;;  %v613_v27 = vpop.f32.mrb[7].mxu0  ;;  %v987_v28 = vld [vmem:[#allocation2 + $0x30] sm:$0xff]  ;;  %v988_v29 = vld [vmem:[#allocation2 + $0x38] sm:$0xff]  ;;  %v16461_v26 = vld [vmem:[#allocation3 + $0x18] sm:$0xff] }
 0x106   : > { %805 = vst.msk [vmem:[#allocation2 + $0x61] sm:$0xff] %vm742_vm1, %v613_v27  ;;  %13695 = vmatprep.mubr.msk.f32.mxu0 %vm742_vm1, %v987_v28  ;;  %v2447_v27 = vld [vmem:[#allocation3 + $0x1a] sm:$0xff] }
 0x107   : > { %13696 = vmatmul.mubr.msk.f32.gmra.mrb[36].mxu0 %vm742_vm1, %v988_v29  ;;  %v16468_v28 = vld [vmem:[%s19096_s3 + $0xc] sm:$0xf]  ;;  %v16473_v29 = vld [vmem:[#allocation3 + $0x20] sm:$0xff] }
 0x108   : > { %v13653_v30 = vpop.f32.mrb[8].mxu0 }
 0x109   : > { %808 = vst.msk [vmem:[#allocation2 + $0x81] sm:$0xff] %vm742_vm1, %v13653_v30  ;;  %v623_v31 = vpop.f32.mrb[9].mxu0  ;;  %v989_v32 = vld [vmem:[#allocation2 + $0x48] sm:$0xff]  ;;  %v990_v33 = vld [vmem:[#allocation2 + $0x50] sm:$0xff] }
 0x10a   : > { %807 = vst.msk [vmem:[#allocation2 + $0x79] sm:$0xff] %vm742_vm1, %v623_v31  ;;  %13698 = vmatprep.mubr.msk.f32.mxu0 %vm742_vm1, %v989_v32  ;;  %v2448_v30 = vld [vmem:[#allocation3 + $0x22] sm:$0xff]  ;;  %v16476_v31 = vld [vmem:[#allocation3 + $0x30] sm:$0xff] }
 0x10b   : > { %13699 = vmatmul.mubr.msk.f32.gmra.mrb[38].mxu0 %vm742_vm1, %v990_v33  ;;  %v2449_v32 = vld [vmem:[#allocation3 + $0x32] sm:$0xff] }
 0x10c   : > { %v13656_v34 = vpop.f32.mrb[10].mxu0  ;;  %v16490_v33 = vld [vmem:[#allocation3 + $0x38] sm:$0xff] }
 0x10d   : > { %810 = vst.msk [vmem:[#allocation2 + $0x99] sm:$0xff] %vm742_vm1, %v13656_v34  ;;  %v633_v35 = vpop.f32.mrb[11].mxu0  ;;  %v991_v36 = vld [vmem:[#allocation2 + $0x60] sm:$0xff]  ;;  %v992_v37 = vld [vmem:[#allocation2 + $0x68] sm:$0xff] }
 0x10e   : > { %809 = vst.msk [vmem:[#allocation2 + $0x91] sm:$0xff] %vm742_vm1, %v633_v35  ;;  %13701 = vmatprep.mubr.msk.f32.mxu0 %vm742_vm1, %v991_v36  ;;  %v2450_v34 = vld [vmem:[#allocation3 + $0x3a] sm:$0xff]  ;;  %v2451_v35 = vld [vmem:[#allocation3 + $0x4a] sm:$0xff] }
 0x10f   : > { %13702 = vmatmul.mubr.msk.f32.gmra.mrb[40].mxu0 %vm742_vm1, %v992_v37  ;;  %v16500_v36 = vld [vmem:[#allocation3 + $0x50] sm:$0xff] }
 0x110   : > { %v13659_v38 = vpop.f32.mrb[12].mxu0  ;;  %v2452_v37 = vld [vmem:[#allocation3 + $0x52] sm:$0xff] }
 0x111   : > { %812 = vst.msk [vmem:[#allocation2 + $0xb1] sm:$0xff] %vm742_vm1, %v13659_v38  ;;  %v643_v39 = vpop.f32.mrb[13].mxu0  ;;  %v993_v40 = vld [vmem:[#allocation2 + $0x78] sm:$0xff]  ;;  %v994_v41 = vld [vmem:[#allocation2 + $0x80] sm:$0xff]  ;;  %v16502_v38 = vld [vmem:[#allocation3 + $0x60] sm:$0xff] }
 0x112   : > { %811 = vst.msk [vmem:[#allocation2 + $0xa9] sm:$0xff] %vm742_vm1, %v643_v39  ;;  %13704 = vmatprep.mubr.msk.f32.mxu0 %vm742_vm1, %v993_v40  ;;  %v2453_v39 = vld [vmem:[#allocation3 + $0x62] sm:$0xff] }
 0x113   : > { %13705 = vmatmul.mubr.msk.f32.gmra.mrb[42].mxu0 %vm742_vm1, %v994_v41  ;;  %v16510_v40 = vld [vmem:[#allocation3 + $0x68] sm:$0xff] }
 0x114   : > { %v13662_v43 = vpop.f32.mrb[14].mxu0  ;;  %v2454_v41 = vld [vmem:[#allocation3 + $0x6a] sm:$0xff] }
 0x115   : > { %814 = vst.msk [vmem:[#allocation2 + $0xc9] sm:$0xff] %vm742_vm1, %v13662_v43  ;;  %v653_v44 = vpop.f32.mrb[15].mxu0  ;;  %v995_v45 = vld [vmem:[#allocation2 + $0x90] sm:$0xff]  ;;  %v996_v46 = vld [vmem:[#allocation2 + $0x98] sm:$0xff]  ;;  %v16512_v43 = vld [vmem:[#allocation3 + $0x78] sm:$0xff] }
 0x116   : > { %813 = vst.msk [vmem:[#allocation2 + $0xc1] sm:$0xff] %vm742_vm1, %v653_v44  ;;  %13707 = vmatprep.mubr.msk.f32.mxu0 %vm742_vm1, %v995_v45  ;;  %v2455_v44 = vld [vmem:[#allocation3 + $0x7a] sm:$0xff] }
 0x117   : > { %13708 = vmatmul.mubr.msk.f32.gmra.mrb[44].mxu0 %vm742_vm1, %v996_v46  ;;  %v16520_v45 = vld [vmem:[#allocation3 + $0x80] sm:$0xff] }
 0x118   : > { %v13665_v47 = vpop.f32.mrb[16].mxu0  ;;  %v2456_v46 = vld [vmem:[#allocation3 + $0x82] sm:$0xff] }
 0x119   : > { %816 = vst.msk [vmem:[#allocation2 + $0xe1] sm:$0xff] %vm742_vm1, %v13665_v47  ;;  %v663_v50 = vpop.f32.mrb[17].mxu0  ;;  %v997_v51 = vld [vmem:[#allocation2 + $0xa8] sm:$0xff]  ;;  %v998_v52 = vld [vmem:[#allocation2 + $0xb0] sm:$0xff]  ;;  %v16522_v47 = vld [vmem:[#allocation3 + $0x90] sm:$0xff] }
 0x11a   : > { %815 = vst.msk [vmem:[#allocation2 + $0xd9] sm:$0xff] %vm742_vm1, %v663_v50  ;;  %13710 = vmatprep.mubr.msk.f32.mxu0 %vm742_vm1, %v997_v51  ;;  %v2457_v50 = vld [vmem:[#allocation3 + $0x92] sm:$0xff] }
 0x11b   : > { %13711 = vmatmul.mubr.msk.f32.gmra.mrb[46].mxu0 %vm742_vm1, %v998_v52  ;;  %v16530_v51 = vld [vmem:[#allocation3 + $0x98] sm:$0xff] }
 0x11c   : > { %v13668_v53 = vpop.f32.mrb[18].mxu0  ;;  %v2458_v52 = vld [vmem:[#allocation3 + $0x9a] sm:$0xff] }
 0x11d   : > { %818 = vst.msk [vmem:[#allocation2 + $0xf9] sm:$0xff] %vm742_vm1, %v13668_v53  ;;  %v673_v54 = vpop.f32.mrb[19].mxu0  ;;  %v999_v55 = vld [vmem:[#allocation2 + $0xc0] sm:$0xff]  ;;  %v1000_v56 = vld [vmem:[#allocation2 + $0xc8] sm:$0xff]  ;;  %v16532_v53 = vld [vmem:[#allocation3 + $0xa8] sm:$0xff] }
 0x11e   : > { %817 = vst.msk [vmem:[#allocation2 + $0xf1] sm:$0xff] %vm742_vm1, %v673_v54  ;;  %13713 = vmatprep.mubr.msk.f32.mxu0 %vm742_vm1, %v999_v55  ;;  %v2459_v54 = vld [vmem:[#allocation3 + $0xaa] sm:$0xff] }
 0x11f   : > { %13714 = vmatmul.mubr.msk.f32.gmra.mrb[48].mxu0 %vm742_vm1, %v1000_v56  ;;  %v16540_v55 = vld [vmem:[#allocation3 + $0xb0] sm:$0xff] }
 0x120   : > { %v13671_v57 = vpop.f32.mrb[20].mxu0  ;;  %v2460_v56 = vld [vmem:[#allocation3 + $0xb2] sm:$0xff] }
 0x121   : > { %820 = vst.msk [vmem:[#allocation2 + $0x111] sm:$0xff] %vm742_vm1, %v13671_v57  ;;  %v683_v58 = vpop.f32.mrb[21].mxu0  ;;  %v1001_v59 = vld [vmem:[#allocation2 + $0xd8] sm:$0xff]  ;;  %v1002_v60 = vld [vmem:[#allocation2 + $0xe0] sm:$0xff]  ;;  %v16542_v57 = vld [vmem:[#allocation3 + $0xc0] sm:$0xff] }
 0x122   : > { %819 = vst.msk [vmem:[#allocation2 + $0x109] sm:$0xff] %vm742_vm1, %v683_v58  ;;  %13716 = vmatprep.mubr.msk.f32.mxu0 %vm742_vm1, %v1001_v59  ;;  %v2461_v58 = vld [vmem:[#allocation3 + $0xc2] sm:$0xff] }
 0x123   : > { %13717 = vmatmul.mubr.msk.f32.gmra.mrb[50].mxu0 %vm742_vm1, %v1002_v60  ;;  %v16550_v59 = vld [vmem:[#allocation3 + $0xc8] sm:$0xff] }
 0x124   : > { %v13674_v61 = vpop.f32.mrb[22].mxu0  ;;  %v2462_v60 = vld [vmem:[#allocation3 + $0xca] sm:$0xff] }
 0x125   : > { %822 = vst.msk [vmem:[#allocation2 + $0x129] sm:$0xff] %vm742_vm1, %v13674_v61  ;;  %v693_v62 = vpop.f32.mrb[23].mxu0  ;;  %v1003_v63 = vld [vmem:[#allocation2 + $0xf0] sm:$0xff]  ;;  %v1004_v0 = vld [vmem:[#allocation2 + $0xf8] sm:$0xff]  ;;  %v16552_v61 = vld [vmem:[#allocation3 + $0xd8] sm:$0xff] }
 0x126   : > { %821 = vst.msk [vmem:[#allocation2 + $0x121] sm:$0xff] %vm742_vm1, %v693_v62  ;;  %13719 = vmatprep.mubr.msk.f32.mxu0 %vm742_vm1, %v1003_v63  ;;  %v2463_v62 = vld [vmem:[#allocation3 + $0xda] sm:$0xff] }
 0x127   : > { %13720 = vmatmul.mubr.msk.f32.gmra.mrb[52].mxu0 %vm742_vm1, %v1004_v0  ;;  %v16560_v63 = vld [vmem:[#allocation3 + $0xe0] sm:$0xff] }
 0x128   : > { %v13677_v1 = vpop.f32.mrb[24].mxu0  ;;  %v2464_v0 = vld [vmem:[#allocation3 + $0xe2] sm:$0xff] }
 0x129   : > { %824 = vst.msk [vmem:[#allocation2 + $0x141] sm:$0xff] %vm742_vm1, %v13677_v1  ;;  %v703_v2 = vpop.f32.mrb[25].mxu0  ;;  %v1005_v3 = vld [vmem:[#allocation2 + $0x108] sm:$0xff]  ;;  %v1006_v4 = vld [vmem:[#allocation2 + $0x110] sm:$0xff]  ;;  %v16562_v1 = vld [vmem:[#allocation3 + $0xf0] sm:$0xff] }
 0x12a   : > { %823 = vst.msk [vmem:[#allocation2 + $0x139] sm:$0xff] %vm742_vm1, %v703_v2  ;;  %13722 = vmatprep.mubr.msk.f32.mxu0 %vm742_vm1, %v1005_v3  ;;  %v2465_v2 = vld [vmem:[#allocation3 + $0xf2] sm:$0xff] }
 0x12b   : > { %13723 = vmatmul.mubr.msk.f32.gmra.mrb[54].mxu0 %vm742_vm1, %v1006_v4  ;;  %v16570_v3 = vld [vmem:[#allocation3 + $0xf8] sm:$0xff] }
 0x12c   : > { %v13680_v5 = vpop.f32.mrb[26].mxu0  ;;  %v2466_v4 = vld [vmem:[#allocation3 + $0xfa] sm:$0xff] }
 0x12d   : > { %826 = vst.msk [vmem:[#allocation2 + $0x159] sm:$0xff] %vm742_vm1, %v13680_v5  ;;  %v713_v6 = vpop.f32.mrb[27].mxu0  ;;  %v1007_v7 = vld [vmem:[#allocation2 + $0x120] sm:$0xff]  ;;  %v1008_v8 = vld [vmem:[#allocation2 + $0x128] sm:$0xff]  ;;  %v16572_v5 = vld [vmem:[#allocation3 + $0x108] sm:$0xff] }
 0x12e   : > { %825 = vst.msk [vmem:[#allocation2 + $0x151] sm:$0xff] %vm742_vm1, %v713_v6  ;;  %13725 = vmatprep.mubr.msk.f32.mxu0 %vm742_vm1, %v1007_v7  ;;  %v2467_v6 = vld [vmem:[#allocation3 + $0x10a] sm:$0xff] }
 0x12f   : > { %13726 = vmatmul.mubr.msk.f32.gmra.mrb[56].mxu0 %vm742_vm1, %v1008_v8  ;;  %v16580_v7 = vld [vmem:[#allocation3 + $0x110] sm:$0xff] }
 0x130   : > { %v13683_v9 = vpop.f32.mrb[28].mxu0  ;;  %v2468_v8 = vld [vmem:[#allocation3 + $0x112] sm:$0xff] }
 0x131   : > { %828 = vst.msk [vmem:[#allocation2 + $0x171] sm:$0xff] %vm742_vm1, %v13683_v9  ;;  %v723_v10 = vpop.f32.mrb[29].mxu0  ;;  %v1009_v11 = vld [vmem:[#allocation2 + $0x138] sm:$0xff]  ;;  %v1010_v12 = vld [vmem:[#allocation2 + $0x140] sm:$0xff]  ;;  %v16582_v9 = vld [vmem:[#allocation3 + $0x120] sm:$0xff] }
 0x132   : > { %827 = vst.msk [vmem:[#allocation2 + $0x169] sm:$0xff] %vm742_vm1, %v723_v10  ;;  %13728 = vmatprep.mubr.msk.f32.mxu0 %vm742_vm1, %v1009_v11  ;;  %v2469_v10 = vld [vmem:[#allocation3 + $0x122] sm:$0xff]  ;;  %v16787_v42 = vld [vmem:[#allocation2 + $0x142] sm:$0xff] }
 0x133   : > { %13729 = vmatmul.mubr.msk.f32.gmra.mrb[58].mxu0 %vm742_vm1, %v1010_v12  ;;  %v16590_v11 = vld [vmem:[#allocation3 + $0x128] sm:$0xff]  ;;  %19212 = vst [vmem:[#allocation10_spill] sm:$0xff] %v16787_v42 }
 0x134   : > { %v2084_v16 = vld [vmem:[#allocation2 + $0x159] sm:$0xff] }
 0x135   : > { %v1011_v13 = vld [vmem:[#allocation2 + $0x150] sm:$0xff]  ;;  %v1012_v15 = vld [vmem:[#allocation2 + $0x158] sm:$0xff] }
 0x136   : > { %v2083_v14 = vld [vmem:[#allocation2 + $0x151] sm:$0xff]  ;;  %13731 = vmatprep.mubr.msk.f32.mxu0 %vm742_vm1, %v1011_v13  ;;  %v2470_v12 = vld [vmem:[#allocation3 + $0x12a] sm:$0xff]  ;;  %v16592_v13 = vld [vmem:[#allocation3 + $0x138] sm:$0xff] }
 0x137   : > { %13881 = vmatprep.mubr.msk.f32.mxu1 %vm742_vm1, %v2083_v14  ;;  %13732 = vmatmul.mubr.msk.f32.gmra.mrb[60].mxu0 %vm742_vm1, %v1012_v15  ;;  %v2471_v14 = vld [vmem:[#allocation3 + $0x13a] sm:$0xff] }
 0x138   : > { %13882 = vmatmul.mubr.msk.f32.vlgmr.msra.gmra.mrb[0].mxu1 %vm742_vm1, %v2084_v16  ;;  %v2086_v24 = vld [vmem:[#allocation2 + $0x171] sm:$0xff] }
 0x139   : > { %13888 = vmatpush3.msk.msra.mxu1 %vm1112_vm3, %v16313_v49  ;;  %v1013_v21 = vld [vmem:[#allocation2 + $0x168] sm:$0xff]  ;;  %v1014_v23 = vld [vmem:[#allocation2 + $0x170] sm:$0xff]  ;;  %v951_v49 = vld [vmem:[#allocation3 + $0x8] sm:$0xff] }
 0x13a   : > { %v2085_v22 = vld [vmem:[#allocation2 + $0x169] sm:$0xff]  ;;  %13937 = vmatprep.subr.msk.mxu1 %vm1112_vm3, %v11945_v17  ;;  %13734 = vmatprep.mubr.msk.f32.mxu0 %vm742_vm1, %v1013_v21  ;;  %v2472_v16 = vld [vmem:[#allocation3 + $0x142] sm:$0xff] }
 0x13b   : > { %13884 = vmatprep.mubr.msk.f32.mxu1 %vm742_vm1, %v2085_v22  ;;  %13735 = vmatmul.mubr.msk.f32.gmra.mrb[62].mxu0 %vm742_vm1, %v1014_v23  ;;  %v16600_v15 = vld [vmem:[#allocation3 + $0x140] sm:$0xff]  ;;  %v16611_v21 = vld [vmem:[#allocation3 + $0x158] sm:$0xff]  ;;  %v916_v23 = vld [vmem:[%s16308_s18 + $0xf8] sm:$0xff] }
 0x13c   : > { %13885 = vmatmul.mubr.msk.f32.gmra.mrb[2].mxu1 %vm742_vm1, %v2086_v24  ;;  %13739 = vmatprep.mubr.msk.f32.mxu0 %vm742_vm1, %v950_v18  ;;  %v2473_v18 = vld [vmem:[#allocation3 + $0x152] sm:$0xff]  ;;  %v2474_v22 = vld [vmem:[#allocation3 + $0x15a] sm:$0xff]  ;;  %v16615_v24 = vld [vmem:[#allocation3 + $0x168] sm:$0xff]  ;;  %949 = vst.msk [vmem:[#allocation3 + $0x189] sm:$0xff] %vm742_vm1, %v916_v23 }
 0x13d   : > { %13889 = vmatprep.mubr.msk.f32.mxu1 %vm742_vm1, %v2445_v20  ;;  %v915_v20 = vld [vmem:[%s16308_s18 + $0xf0] sm:$0xff] }
 0x13e   : > { %948 = vst.msk [vmem:[#allocation3 + $0x181] sm:$0xff] %vm742_vm1, %v915_v20  ;;  %v16701_v20 = vld [vmem:[#allocation3 + $0xa9] sm:$0xff]  ;;  %v2849_v23 = vld [vmem:[#allocation2 + $0xaa] sm:$0xff] }
 0x13f   : > { %13740 = vmatmul.mubr.msk.f32.vlgmr.msra.gmra.mrb[32].mxu0 %vm742_vm1, %v951_v49  ;;  %v2475_v49 = vld [vmem:[#allocation3 + $0x16a] sm:$0xff] }
 0x140   : > { %13890 = vmatmul.mubr.msk.f32.vlgmr.msra.gmra.mrb[4].mxu1 %vm742_vm1, %v2446_v25  ;;  %13742 = vmatprep.mubr.msk.f32.mxu0 %vm742_vm1, %v16461_v26  ;;  %v16624_v25 = vld [vmem:[#allocation3 + $0x170] sm:$0xff] }
 0x141   : > { %13938 = vmatpush3.msk.msra.mxu1 %vm1112_vm3, %v11945_v17  ;;  %13892 = vmatprep.mubr.msk.f32.mxu1 %vm742_vm1, %v2447_v27  ;;  %v16602_v17 = vld [vmem:[#allocation3 + $0x150] sm:$0xff] }
 0x142   : > { %13788 = vmatpush3.msk.msra.mxu0 %vm1112_vm3, %v16387_v19  ;;  %13987 = vmatprep.subr.msk.mxu1 %vm1112_vm3, %v16468_v28  ;;  %v16492_v19 = vld [vmem:[#allocation3 + $0x48] sm:$0xff]  ;;  %v2476_v27 = vld [vmem:[#allocation3 + $0x172] sm:$0xff] }
 0x143   : > { %13837 = vmatprep.subr.msk.mxu0 %vm1112_vm3, %v16297_v48  ;;  %13743 = vmatmul.mubr.msk.f32.gmra.mrb[34].mxu0 %vm742_vm1, %v16473_v29 }
 0x144   : > { %13893 = vmatmul.mubr.msk.f32.gmra.mrb[6].mxu1 %vm742_vm1, %v2448_v30  ;;  %13745 = vmatprep.mubr.msk.f32.mxu0 %vm742_vm1, %v16476_v31  ;;  %v1665_v30 = vld [vmem:[#allocation3 + $0x1] sm:$0xff] }
 0x145   : > { %13895 = vmatprep.mubr.msk.f32.mxu1 %vm742_vm1, %v2449_v32  ;;  %v2835_v32 = vld [vmem:[#allocation2 + $0x2] sm:$0xff] }
 0x147   : > { %13746 = vmatmul.mubr.msk.f32.gmra.mrb[36].mxu0 %vm742_vm1, %v16490_v33 }
 0x148   : > { %13896 = vmatmul.mubr.msk.f32.gmra.mrb[8].mxu1 %vm742_vm1, %v2450_v34  ;;  %13748 = vmatprep.mubr.msk.f32.mxu0 %vm742_vm1, %v16492_v19  ;;  %v1666_v34 = vld [vmem:[#allocation3 + $0x9] sm:$0xff] }
 0x149   : > { %13898 = vmatprep.mubr.msk.f32.mxu1 %vm742_vm1, %v2451_v35  ;;  %v2836_v35 = vld [vmem:[#allocation2 + $0xa] sm:$0xff] }
 0x14b   : > { %13749 = vmatmul.mubr.msk.f32.gmra.mrb[38].mxu0 %vm742_vm1, %v16500_v36 }
 0x14c   : > { %13899 = vmatmul.mubr.msk.f32.gmra.mrb[10].mxu1 %vm742_vm1, %v2452_v37  ;;  %13751 = vmatprep.mubr.msk.f32.mxu0 %vm742_vm1, %v16502_v38  ;;  %v16631_v37 = vld [vmem:[#allocation3 + $0x19] sm:$0xff] }
 0x14d   : > { %13901 = vmatprep.mubr.msk.f32.mxu1 %vm742_vm1, %v2453_v39  ;;  %v2837_v39 = vld [vmem:[#allocation2 + $0x1a] sm:$0xff] }
 0x14f   : > { %13752 = vmatmul.mubr.msk.f32.gmra.mrb[40].mxu0 %vm742_vm1, %v16510_v40 }
 0x150   : > { %13902 = vmatmul.mubr.msk.f32.gmra.mrb[12].mxu1 %vm742_vm1, %v2454_v41  ;;  %13754 = vmatprep.mubr.msk.f32.mxu0 %vm742_vm1, %v16512_v43  ;;  %v16638_v41 = vld [vmem:[%s19097_s4 + $0xc] sm:$0xf] }
 0x151   : > { %13904 = vmatprep.mubr.msk.f32.mxu1 %vm742_vm1, %v2455_v44  ;;  %v16643_v44 = vld [vmem:[#allocation3 + $0x21] sm:$0xff] }
 0x153   : > { %13755 = vmatmul.mubr.msk.f32.gmra.mrb[42].mxu0 %vm742_vm1, %v16520_v45 }
 0x154   : > { %13905 = vmatmul.mubr.msk.f32.gmra.mrb[14].mxu1 %vm742_vm1, %v2456_v46  ;;  %13757 = vmatprep.mubr.msk.f32.mxu0 %vm742_vm1, %v16522_v47  ;;  %v16647_v46 = vld [vmem:[#allocation3 + $0x31] sm:$0xff] }
 0x155   : > { %13907 = vmatprep.mubr.msk.f32.mxu1 %vm742_vm1, %v2457_v50  ;;  %v2838_v50 = vld [vmem:[#allocation2 + $0x22] sm:$0xff] }
 0x157   : > { %13758 = vmatmul.mubr.msk.f32.gmra.mrb[44].mxu0 %vm742_vm1, %v16530_v51 }
 0x158   : > { %13908 = vmatmul.mubr.msk.f32.gmra.mrb[16].mxu1 %vm742_vm1, %v2458_v52  ;;  %13760 = vmatprep.mubr.msk.f32.mxu0 %vm742_vm1, %v16532_v53  ;;  %v16659_v52 = vld [vmem:[#allocation3 + $0x39] sm:$0xff] }
 0x159   : > { %13910 = vmatprep.mubr.msk.f32.mxu1 %vm742_vm1, %v2459_v54  ;;  %v16661_v54 = vld [vmem:[#allocation3 + $0x49] sm:$0xff] }
 0x15b   : > { %13761 = vmatmul.mubr.msk.f32.gmra.mrb[46].mxu0 %vm742_vm1, %v16540_v55 }
 0x15c   : > { %13911 = vmatmul.mubr.msk.f32.gmra.mrb[18].mxu1 %vm742_vm1, %v2460_v56  ;;  %13763 = vmatprep.mubr.msk.f32.mxu0 %vm742_vm1, %v16542_v57  ;;  %v2841_v56 = vld [vmem:[#allocation2 + $0x4a] sm:$0xff] }
 0x15d   : > { %13913 = vmatprep.mubr.msk.f32.mxu1 %vm742_vm1, %v2461_v58  ;;  %v16669_v58 = vld [vmem:[#allocation3 + $0x51] sm:$0xff] }
 0x15f   : > { %13764 = vmatmul.mubr.msk.f32.gmra.mrb[48].mxu0 %vm742_vm1, %v16550_v59 }
 0x160   : > { %13914 = vmatmul.mubr.msk.f32.gmra.mrb[20].mxu1 %vm742_vm1, %v2462_v60  ;;  %13766 = vmatprep.mubr.msk.f32.mxu0 %vm742_vm1, %v16552_v61  ;;  %v16671_v60 = vld [vmem:[#allocation3 + $0x61] sm:$0xff] }
 0x161   : > { %13916 = vmatprep.mubr.msk.f32.mxu1 %vm742_vm1, %v2463_v62  ;;  %v2842_v62 = vld [vmem:[#allocation2 + $0x52] sm:$0xff] }
 0x163   : > { %13767 = vmatmul.mubr.msk.f32.gmra.mrb[50].mxu0 %vm742_vm1, %v16560_v63 }
 0x164   : > { %13917 = vmatmul.mubr.msk.f32.gmra.mrb[22].mxu1 %vm742_vm1, %v2464_v0  ;;  %13769 = vmatprep.mubr.msk.f32.mxu0 %vm742_vm1, %v16562_v1  ;;  %v2843_v0 = vld [vmem:[#allocation2 + $0x62] sm:$0xff] }
 0x165   : > { %13919 = vmatprep.mubr.msk.f32.mxu1 %vm742_vm1, %v2465_v2  ;;  %v16679_v2 = vld [vmem:[#allocation3 + $0x69] sm:$0xff] }
 0x167   : > { %13770 = vmatmul.mubr.msk.f32.gmra.mrb[52].mxu0 %vm742_vm1, %v16570_v3 }
 0x168   : > { %13920 = vmatmul.mubr.msk.f32.gmra.mrb[24].mxu1 %vm742_vm1, %v2466_v4  ;;  %13772 = vmatprep.mubr.msk.f32.mxu0 %vm742_vm1, %v16572_v5  ;;  %v16681_v4 = vld [vmem:[#allocation3 + $0x79] sm:$0xff] }
 0x169   : > { %13922 = vmatprep.mubr.msk.f32.mxu1 %vm742_vm1, %v2467_v6  ;;  %v2844_v6 = vld [vmem:[#allocation2 + $0x6a] sm:$0xff] }
 0x16b   : > { %13773 = vmatmul.mubr.msk.f32.gmra.mrb[54].mxu0 %vm742_vm1, %v16580_v7 }
 0x16c   : > { %13923 = vmatmul.mubr.msk.f32.gmra.mrb[26].mxu1 %vm742_vm1, %v2468_v8  ;;  %13775 = vmatprep.mubr.msk.f32.mxu0 %vm742_vm1, %v16582_v9  ;;  %v2845_v8 = vld [vmem:[#allocation2 + $0x7a] sm:$0xff] }
 0x16d   : > { %13925 = vmatprep.mubr.msk.f32.mxu1 %vm742_vm1, %v2469_v10  ;;  %v16689_v10 = vld [vmem:[#allocation3 + $0x81] sm:$0xff] }
 0x16f   : > { %13776 = vmatmul.mubr.msk.f32.gmra.mrb[56].mxu0 %vm742_vm1, %v16590_v11 }
 0x170   : > { %13926 = vmatmul.mubr.msk.f32.gmra.mrb[28].mxu1 %vm742_vm1, %v2470_v12  ;;  %13778 = vmatprep.mubr.msk.f32.mxu0 %vm742_vm1, %v16592_v13  ;;  %v16691_v12 = vld [vmem:[#allocation3 + $0x91] sm:$0xff] }
 0x171   : > { %13928 = vmatprep.mubr.msk.f32.mxu1 %vm742_vm1, %v2471_v14  ;;  %v2846_v14 = vld [vmem:[#allocation2 + $0x82] sm:$0xff] }
 0x173   : > { %13779 = vmatmul.mubr.msk.f32.gmra.mrb[58].mxu0 %vm742_vm1, %v16600_v15 }
 0x174   : > { %13929 = vmatmul.mubr.msk.f32.gmra.mrb[30].mxu1 %vm742_vm1, %v2472_v16  ;;  %13781 = vmatprep.mubr.msk.f32.mxu0 %vm742_vm1, %v16602_v17  ;;  %v2847_v16 = vld [vmem:[#allocation2 + $0x92] sm:$0xff] }
 0x175   : > { %13931 = vmatprep.mubr.msk.f32.mxu1 %vm742_vm1, %v2473_v18  ;;  %v16699_v18 = vld [vmem:[#allocation3 + $0x99] sm:$0xff] }
 0x177   : > { %13782 = vmatmul.mubr.msk.f32.gmra.mrb[60].mxu0 %vm742_vm1, %v16611_v21 }
 0x178   : > { %13932 = vmatmul.mubr.msk.f32.gmra.mrb[0].mxu1 %vm742_vm1, %v2474_v22  ;;  %13784 = vmatprep.mubr.msk.f32.mxu0 %vm742_vm1, %v16615_v24  ;;  %v2848_v22 = vld [vmem:[#allocation2 + $0x9a] sm:$0xff] }
 0x179   : > { %13934 = vmatprep.mubr.msk.f32.mxu1 %vm742_vm1, %v2475_v49  ;;  %v16709_v49 = vld [vmem:[#allocation3 + $0xb1] sm:$0xff] }
 0x17b   : > { %13785 = vmatmul.mubr.msk.f32.gmra.mrb[62].mxu0 %vm742_vm1, %v16624_v25 }
 0x17c   : > { %13935 = vmatmul.mubr.msk.f32.gmra.mrb[2].mxu1 %vm742_vm1, %v2476_v27  ;;  %13789 = vmatprep.mubr.msk.f32.mxu0 %vm742_vm1, %v1665_v30  ;;  %v16711_v27 = vld [vmem:[#allocation3 + $0xc1] sm:$0xff] }
 0x17d   : > { %13939 = vmatprep.mubr.msk.f32.mxu1 %vm742_vm1, %v2835_v32  ;;  %v2850_v30 = vld [vmem:[#allocation2 + $0xb2] sm:$0xff]  ;;  %v2851_v32 = vld [vmem:[#allocation2 + $0xc2] sm:$0xff] }
 0x17f   : > { %13790 = vmatmul.mubr.msk.f32.vlgmr.msra.gmra.mrb[32].mxu0 %vm742_vm1, %v1666_v34  ;;  %v16719_v34 = vld [vmem:[#allocation3 + $0xc9] sm:$0xff] }
 0x180   : > { %13940 = vmatmul.mubr.msk.f32.vlgmr.msra.gmra.mrb[4].mxu1 %vm742_vm1, %v2836_v35  ;;  %13792 = vmatprep.mubr.msk.f32.mxu0 %vm742_vm1, %v16631_v37  ;;  %v16721_v35 = vld [vmem:[#allocation3 + $0xd9] sm:$0xff] }
 0x181   : > { %13988 = vmatpush3.msk.msra.mxu1 %vm1112_vm3, %v16468_v28  ;;  %13942 = vmatprep.mubr.msk.f32.mxu1 %vm742_vm1, %v2837_v39  ;;  %v2839_v28 = vld [vmem:[#allocation2 + $0x32] sm:$0xff]  ;;  %v2852_v39 = vld [vmem:[#allocation2 + $0xca] sm:$0xff] }
 0x182   : > { %13838 = vmatpush3.msk.msra.mxu0 %vm1112_vm3, %v16297_v48  ;;  %14037 = vmatprep.subr.msk.mxu1 %vm1112_vm3, %v16638_v41  ;;  %v2840_v48 = vld [vmem:[#allocation2 + $0x3a] sm:$0xff] }
 0x183   : > { %13793 = vmatmul.mubr.msk.f32.gmra.mrb[34].mxu0 %vm742_vm1, %v16643_v44 }
 0x184   : > { %13943 = vmatmul.mubr.msk.f32.gmra.mrb[6].mxu1 %vm742_vm1, %v2838_v50  ;;  %13795 = vmatprep.mubr.msk.f32.mxu0 %vm742_vm1, %v16647_v46  ;;  %v2853_v50 = vld [vmem:[#allocation2 + $0xda] sm:$0xff] }
 0x185   : > { %13945 = vmatprep.mubr.msk.f32.mxu1 %vm742_vm1, %v2839_v28  ;;  %v16729_v28 = vld [vmem:[#allocation3 + $0xe1] sm:$0xff] }
 0x187   : > { %13796 = vmatmul.mubr.msk.f32.gmra.mrb[36].mxu0 %vm742_vm1, %v16659_v52 }
 0x188   : > { %13946 = vmatmul.mubr.msk.f32.gmra.mrb[8].mxu1 %vm742_vm1, %v2840_v48  ;;  %13798 = vmatprep.mubr.msk.f32.mxu0 %vm742_vm1, %v16661_v54  ;;  %v16731_v48 = vld [vmem:[#allocation3 + $0xf1] sm:$0xff] }
 0x189   : > { %13948 = vmatprep.mubr.msk.f32.mxu1 %vm742_vm1, %v2841_v56  ;;  %v2854_v56 = vld [vmem:[#allocation2 + $0xe2] sm:$0xff] }
 0x18b   : > { %13799 = vmatmul.mubr.msk.f32.gmra.mrb[38].mxu0 %vm742_vm1, %v16669_v58 }
 0x18c   : > { %13949 = vmatmul.mubr.msk.f32.gmra.mrb[10].mxu1 %vm742_vm1, %v2842_v62  ;;  %13801 = vmatprep.mubr.msk.f32.mxu0 %vm742_vm1, %v16671_v60  ;;  %v2855_v62 = vld [vmem:[#allocation2 + $0xf2] sm:$0xff] }
 0x18d   : > { %13951 = vmatprep.mubr.msk.f32.mxu1 %vm742_vm1, %v2843_v0  ;;  %v16739_v0 = vld [vmem:[#allocation3 + $0xf9] sm:$0xff] }
 0x18f   : > { %13802 = vmatmul.mubr.msk.f32.gmra.mrb[40].mxu0 %vm742_vm1, %v16679_v2 }
 0x190   : > { %13952 = vmatmul.mubr.msk.f32.gmra.mrb[12].mxu1 %vm742_vm1, %v2844_v6  ;;  %13804 = vmatprep.mubr.msk.f32.mxu0 %vm742_vm1, %v16681_v4  ;;  %v16741_v6 = vld [vmem:[#allocation3 + $0x109] sm:$0xff] }
 0x191   : > { %13954 = vmatprep.mubr.msk.f32.mxu1 %vm742_vm1, %v2845_v8  ;;  %v2856_v8 = vld [vmem:[#allocation2 + $0xfa] sm:$0xff] }
 0x193   : > { %13805 = vmatmul.mubr.msk.f32.gmra.mrb[42].mxu0 %vm742_vm1, %v16689_v10 }
 0x194   : > { %13955 = vmatmul.mubr.msk.f32.gmra.mrb[14].mxu1 %vm742_vm1, %v2846_v14  ;;  %13807 = vmatprep.mubr.msk.f32.mxu0 %vm742_vm1, %v16691_v12  ;;  %v2857_v14 = vld [vmem:[#allocation2 + $0x10a] sm:$0xff] }
 0x195   : > { %13957 = vmatprep.mubr.msk.f32.mxu1 %vm742_vm1, %v2847_v16  ;;  %v16749_v16 = vld [vmem:[#allocation3 + $0x111] sm:$0xff] }
 0x197   : > { %13808 = vmatmul.mubr.msk.f32.gmra.mrb[44].mxu0 %vm742_vm1, %v16699_v18 }
 0x198   : > { %13958 = vmatmul.mubr.msk.f32.gmra.mrb[16].mxu1 %vm742_vm1, %v2848_v22  ;;  %13810 = vmatprep.mubr.msk.f32.mxu0 %vm742_vm1, %v16701_v20  ;;  %v16751_v22 = vld [vmem:[#allocation3 + $0x121] sm:$0xff] }
 0x199   : > { %13960 = vmatprep.mubr.msk.f32.mxu1 %vm742_vm1, %v2849_v23  ;;  %v16753_v23 = vld [vmem:[#allocation2 + $0x112] sm:$0xff] }
 0x19a   : > { %19207 = vst [vmem:[#allocation5_spill] sm:$0xff] %v16753_v23 }
 0x19b   : > { %13811 = vmatmul.mubr.msk.f32.gmra.mrb[46].mxu0 %vm742_vm1, %v16709_v49 }
 0x19c   : > { %13961 = vmatmul.mubr.msk.f32.gmra.mrb[18].mxu1 %vm742_vm1, %v2850_v30  ;;  %13813 = vmatprep.mubr.msk.f32.mxu0 %vm742_vm1, %v16711_v27  ;;  %v16759_v30 = vld [vmem:[#allocation2 + $0x122] sm:$0xff] }
 0x19d   : > { %13963 = vmatprep.mubr.msk.f32.mxu1 %vm742_vm1, %v2851_v32  ;;  %19208 = vst [vmem:[#allocation6_spill] sm:$0xff] %v16759_v30  ;;  %v16765_v32 = vld [vmem:[#allocation3 + $0x129] sm:$0xff] }
 0x19f   : > { %13814 = vmatmul.mubr.msk.f32.gmra.mrb[48].mxu0 %vm742_vm1, %v16719_v34 }
 0x1a0   : > { %13964 = vmatmul.mubr.msk.f32.gmra.mrb[20].mxu1 %vm742_vm1, %v2852_v39  ;;  %13816 = vmatprep.mubr.msk.f32.mxu0 %vm742_vm1, %v16721_v35  ;;  %v13686_v39 = vpop.f32.mrb[30].mxu0 }
 0x1a1   : > { %13966 = vmatprep.mubr.msk.f32.mxu1 %vm742_vm1, %v2853_v50  ;;  %v16767_v50 = vld [vmem:[#allocation3 + $0x139] sm:$0xff]  ;;  %830 = vst.msk [vmem:[#allocation2 + $0x189] sm:$0xff] %vm742_vm1, %v13686_v39  ;;  %v16785_v39 = vld [vmem:[#allocation3 + $0x151] sm:$0xff] }
 0x1a2   : > { %19211 = vst [vmem:[#allocation9_spill] sm:$0xff] %v16785_v39 }
 0x1a3   : > { %13817 = vmatmul.mubr.msk.f32.gmra.mrb[50].mxu0 %vm742_vm1, %v16729_v28 }
 0x1a4   : > { %13967 = vmatmul.mubr.msk.f32.gmra.mrb[22].mxu1 %vm742_vm1, %v2854_v56  ;;  %13819 = vmatprep.mubr.msk.f32.mxu0 %vm742_vm1, %v16731_v48  ;;  %v16770_v56 = vld [vmem:[#allocation2 + $0x12a] sm:$0xff] }
 0x1a5   : > { %13969 = vmatprep.mubr.msk.f32.mxu1 %vm742_vm1, %v2855_v62  ;;  %19209 = vst [vmem:[#allocation7_spill] sm:$0xff] %v16770_v56  ;;  %v16776_v62 = vld [vmem:[#allocation2 + $0x13a] sm:$0xff] }
 0x1a6   : > { %19210 = vst [vmem:[#allocation8_spill] sm:$0xff] %v16776_v62 }
 0x1a7   : > { %13820 = vmatmul.mubr.msk.f32.gmra.mrb[52].mxu0 %vm742_vm1, %v16739_v0 }
 0x1a8   : > { %13970 = vmatmul.mubr.msk.f32.gmra.mrb[24].mxu1 %vm742_vm1, %v2856_v8  ;;  %13822 = vmatprep.mubr.msk.f32.mxu0 %vm742_vm1, %v16741_v6  ;;  %v733_v8 = vpop.f32.mrb[31].mxu0 }
 0x1a9   : > { %13972 = vmatprep.mubr.msk.f32.mxu1 %vm742_vm1, %v2857_v14  ;;  %v16782_v14 = vld [vmem:[#allocation3 + $0x141] sm:$0xff]  ;;  %829 = vst.msk [vmem:[#allocation2 + $0x181] sm:$0xff] %vm742_vm1, %v733_v8  ;;  %v16801_v8 = vld [vmem:[#allocation3 + $0x169] sm:$0xff] }
 0x1ab   : > { %13823 = vmatmul.mubr.msk.f32.gmra.mrb[54].mxu0 %vm742_vm1, %v16749_v16 }
 0x1ac   : > { %13973 = vmatmul.mubr.msk.f32.gmra.mrb[26].mxu1 %vm742_vm1, %v16753_v23  ;;  %13825 = vmatprep.mubr.msk.f32.mxu0 %vm742_vm1, %v16751_v22  ;;  %v2055_v23 = vld [vmem:[#allocation2 + $0x1] sm:$0xff] }
 0x1ad   : > { %13975 = vmatprep.mubr.msk.f32.mxu1 %vm742_vm1, %v16759_v30  ;;  %v16803_v30 = vld [vmem:[#allocation2 + $0x15a] sm:$0xff] }
 0x1ae   : > { %19214 = vst [vmem:[#allocation12_spill] sm:$0xff] %v16803_v30 }
 0x1af   : > { %13826 = vmatmul.mubr.msk.f32.gmra.mrb[56].mxu0 %vm742_vm1, %v16765_v32 }
 0x1b0   : > { %13976 = vmatmul.mubr.msk.f32.gmra.mrb[28].mxu1 %vm742_vm1, %v16770_v56  ;;  %13828 = vmatprep.mubr.msk.f32.mxu0 %vm742_vm1, %v16767_v50  ;;  %v16793_v56 = vld [vmem:[#allocation2 + $0x152] sm:$0xff] }
 0x1b1   : > { %13978 = vmatprep.mubr.msk.f32.mxu1 %vm742_vm1, %v16776_v62  ;;  %19213 = vst [vmem:[#allocation11_spill] sm:$0xff] %v16793_v56  ;;  %v16799_v62 = vld [vmem:[#allocation3 + $0x159] sm:$0xff] }
 0x1b3   : > { %13829 = vmatmul.mubr.msk.f32.gmra.mrb[58].mxu0 %vm742_vm1, %v16782_v14 }
 0x1b4   : > { %13979 = vmatmul.mubr.msk.f32.gmra.mrb[30].mxu1 %vm742_vm1, %v16787_v42  ;;  %13831 = vmatprep.mubr.msk.f32.mxu0 %vm742_vm1, %v16785_v39  ;;  %v16809_v42 = vld [vmem:[#allocation2 + $0x16a] sm:$0xff]  ;;  %v16817_v39 = vld [vmem:[#allocation2 + $0x172] sm:$0xff] }
 0x1b5   : > { %13981 = vmatprep.mubr.msk.f32.mxu1 %vm742_vm1, %v16793_v56  ;;  %19215 = vst [vmem:[#allocation13_spill] sm:$0xff] %v16809_v42  ;;  %v16815_v56 = vld [vmem:[#allocation3 + $0x171] sm:$0xff] }
 0x1b6   : > { %19216 = vst [vmem:[#allocation14_spill] sm:$0xff] %v16815_v56 }
 0x1b7   : > { %13832 = vmatmul.mubr.msk.f32.gmra.mrb[60].mxu0 %vm742_vm1, %v16799_v62 }
 0x1b8   : > { %13982 = vmatmul.mubr.msk.f32.gmra.mrb[0].mxu1 %vm742_vm1, %v16803_v30  ;;  %13834 = vmatprep.mubr.msk.f32.mxu0 %vm742_vm1, %v16801_v8  ;;  %v16829_v30 = vld [vmem:[%s19096_s3 + $0x10] sm:$0xf] }
 0x1b9   : > { %13984 = vmatprep.mubr.msk.f32.mxu1 %vm742_vm1, %v16809_v42  ;;  %v2056_v42 = vld [vmem:[#allocation2 + $0x9] sm:$0xff] }
 0x1bb   : > { %13835 = vmatmul.mubr.msk.f32.gmra.mrb[62].mxu0 %vm742_vm1, %v16815_v56  ;;  %v16834_v56 = vld [vmem:[#allocation2 + $0x19] sm:$0xff] }
 0x1bc   : > { %13985 = vmatmul.mubr.msk.f32.gmra.mrb[2].mxu1 %vm742_vm1, %v16817_v39  ;;  %13839 = vmatprep.mubr.msk.f32.mxu0 %vm742_vm1, %v2055_v23  ;;  %v17025_v23 = vld [vmem:[#allocation2 + $0x48] sm:$0xff] }
 0x1bd   : > { %13989 = vmatprep.mubr.msk.f32.mxu1 %vm742_vm1, %v16461_v26  ;;  %v16844_v26 = vld [vmem:[#allocation2 + $0x21] sm:$0xff]  ;;  %19219 = vst [vmem:[#allocation17_spill] sm:$0xff] %v17025_v23 }
 0x1bf   : > { %13840 = vmatmul.mubr.msk.f32.vlgmr.msra.gmra.mrb[32].mxu0 %vm742_vm1, %v2056_v42  ;;  %v16850_v42 = vld [vmem:[#allocation2 + $0x31] sm:$0xff] }
 0x1c0   : > { %13990 = vmatmul.mubr.msk.f32.vlgmr.msra.gmra.mrb[4].mxu1 %vm742_vm1, %v16473_v29  ;;  %13842 = vmatprep.mubr.msk.f32.mxu0 %vm742_vm1, %v16834_v56  ;;  %v16856_v29 = vld [vmem:[#allocation2 + $0x39] sm:$0xff] }
 0x1c1   : > { %14038 = vmatpush3.msk.msra.mxu1 %vm1112_vm3, %v16638_v41  ;;  %13992 = vmatprep.mubr.msk.f32.mxu1 %vm742_vm1, %v16476_v31  ;;  %v16862_v31 = vld [vmem:[#allocation2 + $0x49] sm:$0xff]  ;;  %v17021_v41 = vld [vmem:[#allocation2 + $0x38] sm:$0xff] }
 0x1c2   : > { %14087 = vmatprep.subr.msk.mxu1 %vm1112_vm3, %v16829_v30  ;;  %19218 = vst [vmem:[#allocation16_spill] sm:$0xff] %v17021_v41 }
 0x1c3   : > { %13843 = vmatmul.mubr.msk.f32.gmra.mrb[34].mxu0 %vm742_vm1, %v16844_v26 }
 0x1c4   : > { %13993 = vmatmul.mubr.msk.f32.gmra.mrb[6].mxu1 %vm742_vm1, %v16490_v33  ;;  %13845 = vmatprep.mubr.msk.f32.mxu0 %vm742_vm1, %v16850_v42  ;;  %v16868_v33 = vld [vmem:[#allocation2 + $0x51] sm:$0xff] }
 0x1c5   : > { %13995 = vmatprep.mubr.msk.f32.mxu1 %vm742_vm1, %v16492_v19  ;;  %v16874_v19 = vld [vmem:[#allocation2 + $0x61] sm:$0xff] }
 0x1c7   : > { %13846 = vmatmul.mubr.msk.f32.gmra.mrb[36].mxu0 %vm742_vm1, %v16856_v29 }
 0x1c8   : > { %13996 = vmatmul.mubr.msk.f32.gmra.mrb[8].mxu1 %vm742_vm1, %v16500_v36  ;;  %13848 = vmatprep.mubr.msk.f32.mxu0 %vm742_vm1, %v16862_v31  ;;  %v16880_v36 = vld [vmem:[#allocation2 + $0x69] sm:$0xff] }
 0x1c9   : > { %13998 = vmatprep.mubr.msk.f32.mxu1 %vm742_vm1, %v16502_v38  ;;  %v16886_v38 = vld [vmem:[#allocation2 + $0x79] sm:$0xff] }
 0x1cb   : > { %13849 = vmatmul.mubr.msk.f32.gmra.mrb[38].mxu0 %vm742_vm1, %v16868_v33 }
 0x1cc   : > { %13999 = vmatmul.mubr.msk.f32.gmra.mrb[10].mxu1 %vm742_vm1, %v16510_v40  ;;  %13851 = vmatprep.mubr.msk.f32.mxu0 %vm742_vm1, %v16874_v19  ;;  %v16892_v40 = vld [vmem:[#allocation2 + $0x81] sm:$0xff] }
 0x1cd   : > { %14001 = vmatprep.mubr.msk.f32.mxu1 %vm742_vm1, %v16512_v43  ;;  %v16898_v43 = vld [vmem:[#allocation2 + $0x91] sm:$0xff] }
 0x1cf   : > { %13852 = vmatmul.mubr.msk.f32.gmra.mrb[40].mxu0 %vm742_vm1, %v16880_v36 }
 0x1d0   : > { %14002 = vmatmul.mubr.msk.f32.gmra.mrb[12].mxu1 %vm742_vm1, %v16520_v45  ;;  %13854 = vmatprep.mubr.msk.f32.mxu0 %vm742_vm1, %v16886_v38  ;;  %v16904_v45 = vld [vmem:[#allocation2 + $0x99] sm:$0xff] }
 0x1d1   : > { %14004 = vmatprep.mubr.msk.f32.mxu1 %vm742_vm1, %v16522_v47  ;;  %v16910_v47 = vld [vmem:[#allocation2 + $0xa9] sm:$0xff] }
 0x1d3   : > { %13855 = vmatmul.mubr.msk.f32.gmra.mrb[42].mxu0 %vm742_vm1, %v16892_v40 }
 0x1d4   : > { %14005 = vmatmul.mubr.msk.f32.gmra.mrb[14].mxu1 %vm742_vm1, %v16530_v51  ;;  %13857 = vmatprep.mubr.msk.f32.mxu0 %vm742_vm1, %v16898_v43  ;;  %v16916_v51 = vld [vmem:[#allocation2 + $0xb1] sm:$0xff] }
 0x1d5   : > { %14007 = vmatprep.mubr.msk.f32.mxu1 %vm742_vm1, %v16532_v53  ;;  %v16922_v53 = vld [vmem:[#allocation2 + $0xc1] sm:$0xff] }
 0x1d7   : > { %13858 = vmatmul.mubr.msk.f32.gmra.mrb[44].mxu0 %vm742_vm1, %v16904_v45 }
 0x1d8   : > { %14008 = vmatmul.mubr.msk.f32.gmra.mrb[16].mxu1 %vm742_vm1, %v16540_v55  ;;  %13860 = vmatprep.mubr.msk.f32.mxu0 %vm742_vm1, %v16910_v47  ;;  %v16928_v55 = vld [vmem:[#allocation2 + $0xc9] sm:$0xff] }
 0x1d9   : > { %14010 = vmatprep.mubr.msk.f32.mxu1 %vm742_vm1, %v16542_v57  ;;  %v16934_v57 = vld [vmem:[#allocation2 + $0xd9] sm:$0xff] }
 0x1db   : > { %13861 = vmatmul.mubr.msk.f32.gmra.mrb[46].mxu0 %vm742_vm1, %v16916_v51 }
 0x1dc   : > { %14011 = vmatmul.mubr.msk.f32.gmra.mrb[18].mxu1 %vm742_vm1, %v16550_v59  ;;  %13863 = vmatprep.mubr.msk.f32.mxu0 %vm742_vm1, %v16922_v53  ;;  %v16940_v59 = vld [vmem:[#allocation2 + $0xe1] sm:$0xff] }
 0x1dd   : > { %14013 = vmatprep.mubr.msk.f32.mxu1 %vm742_vm1, %v16552_v61  ;;  %v16946_v61 = vld [vmem:[#allocation2 + $0xf1] sm:$0xff] }
 0x1df   : > { %13864 = vmatmul.mubr.msk.f32.gmra.mrb[48].mxu0 %vm742_vm1, %v16928_v55 }
 0x1e0   : > { %14014 = vmatmul.mubr.msk.f32.gmra.mrb[20].mxu1 %vm742_vm1, %v16560_v63  ;;  %13866 = vmatprep.mubr.msk.f32.mxu0 %vm742_vm1, %v16934_v57  ;;  %v16952_v63 = vld [vmem:[#allocation2 + $0xf9] sm:$0xff] }
 0x1e1   : > { %14016 = vmatprep.mubr.msk.f32.mxu1 %vm742_vm1, %v16562_v1  ;;  %v16958_v1 = vld [vmem:[#allocation2 + $0x109] sm:$0xff] }
 0x1e3   : > { %13867 = vmatmul.mubr.msk.f32.gmra.mrb[50].mxu0 %vm742_vm1, %v16940_v59 }
 0x1e4   : > { %14017 = vmatmul.mubr.msk.f32.gmra.mrb[22].mxu1 %vm742_vm1, %v16570_v3  ;;  %13869 = vmatprep.mubr.msk.f32.mxu0 %vm742_vm1, %v16946_v61  ;;  %v16964_v3 = vld [vmem:[#allocation2 + $0x111] sm:$0xff] }
 0x1e5   : > { %14019 = vmatprep.mubr.msk.f32.mxu1 %vm742_vm1, %v16572_v5  ;;  %v16970_v5 = vld [vmem:[#allocation2 + $0x121] sm:$0xff] }
 0x1e7   : > { %13870 = vmatmul.mubr.msk.f32.gmra.mrb[52].mxu0 %vm742_vm1, %v16952_v63 }
 0x1e8   : > { %14020 = vmatmul.mubr.msk.f32.gmra.mrb[24].mxu1 %vm742_vm1, %v16580_v7  ;;  %13872 = vmatprep.mubr.msk.f32.mxu0 %vm742_vm1, %v16958_v1  ;;  %v16976_v7 = vld [vmem:[#allocation2 + $0x129] sm:$0xff] }
 0x1e9   : > { %14022 = vmatprep.mubr.msk.f32.mxu1 %vm742_vm1, %v16582_v9  ;;  %v16982_v9 = vld [vmem:[#allocation2 + $0x139] sm:$0xff] }
 0x1eb   : > { %13873 = vmatmul.mubr.msk.f32.gmra.mrb[54].mxu0 %vm742_vm1, %v16964_v3 }
 0x1ec   : > { %14023 = vmatmul.mubr.msk.f32.gmra.mrb[26].mxu1 %vm742_vm1, %v16590_v11  ;;  %13875 = vmatprep.mubr.msk.f32.mxu0 %vm742_vm1, %v16970_v5  ;;  %v16988_v11 = vld [vmem:[#allocation2 + $0x141] sm:$0xff] }
 0x1ed   : > { %14025 = vmatprep.mubr.msk.f32.mxu1 %vm742_vm1, %v16592_v13  ;;  %v16996_v13 = vld [vmem:[#allocation3 + $0x180] sm:$0xff] }
 0x1ef   : > { %13876 = vmatmul.mubr.msk.f32.gmra.mrb[56].mxu0 %vm742_vm1, %v16976_v7 }
 0x1f0   : > { %14026 = vmatmul.mubr.msk.f32.gmra.mrb[28].mxu1 %vm742_vm1, %v16600_v15  ;;  %13878 = vmatprep.mubr.msk.f32.mxu0 %vm742_vm1, %v16982_v9  ;;  %v17002_v15 = vld [vmem:[#allocation3 + $0x188] sm:$0xff] }
 0x1f1   : > { %14028 = vmatprep.mubr.msk.f32.mxu1 %vm742_vm1, %v16602_v17  ;;  %v3615_v17 = vld [vmem:[#allocation2 + $0x18] sm:$0xff] }
 0x1f3   : > { %13879 = vmatmul.mubr.msk.f32.gmra.mrb[58].mxu0 %vm742_vm1, %v16988_v11 }
 0x1f4   : > { %14029 = vmatmul.mubr.msk.f32.gmra.mrb[30].mxu1 %vm742_vm1, %v16611_v21  ;;  %v3616_v21 = vld [vmem:[#allocation2 + $0x20] sm:$0xff] }
 0x1f5   : > { %14031 = vmatprep.mubr.msk.f32.mxu1 %vm742_vm1, %v16615_v24  ;;  %v17010_v24 = vld [vmem:[%s19097_s4 + $0x10] sm:$0xf] }
 0x1f8   : > { %14032 = vmatmul.mubr.msk.f32.gmra.mrb[0].mxu1 %vm742_vm1, %v16624_v25  ;;  %v17013_v25 = vld [vmem:[#allocation2 + $0x30] sm:$0xff] }
 0x1f9   : > { %14034 = vmatprep.mubr.msk.f32.mxu1 %vm742_vm1, %v16996_v13  ;;  %19217 = vst [vmem:[#allocation15_spill] sm:$0xff] %v17013_v25 }
 0x1fc   : > { %14035 = vmatmul.mubr.msk.f32.gmra.mrb[2].mxu1 %vm742_vm1, %v17002_v15 }
 0x1fd   : > { %14039 = vmatprep.mubr.msk.f32.mxu1 %vm742_vm1, %v3615_v17  ;;  %v17029_v17 = vld [vmem:[#allocation2 + $0x50] sm:$0xff] }
 0x1fe   : > { %19220 = vst [vmem:[#allocation18_spill] sm:$0xff] %v17029_v17 }
 0x200   : > { %14040 = vmatmul.mubr.msk.f32.vlgmr.msra.gmra.mrb[4].mxu1 %vm742_vm1, %v3616_v21  ;;  %v17037_v21 = vld [vmem:[#allocation2 + $0x68] sm:$0xff] }
 0x201   : > { %14088 = vmatpush3.msk.msra.mxu1 %vm1112_vm3, %v16829_v30  ;;  %14042 = vmatprep.mubr.msk.f32.mxu1 %vm742_vm1, %v17013_v25  ;;  %v17033_v30 = vld [vmem:[#allocation2 + $0x60] sm:$0xff]  ;;  %19222 = vst [vmem:[#allocation20_spill] sm:$0xff] %v17037_v21  ;;  %v17127_v25 = vld [vmem:[#allocation2 + $0x170] sm:$0xff] }
 0x202   : > { %14137 = vmatprep.subr.msk.mxu1 %vm1112_vm3, %v17010_v24  ;;  %19221 = vst [vmem:[#allocation19_spill] sm:$0xff] %v17033_v30 }
 0x204   : > { %14043 = vmatmul.mubr.msk.f32.gmra.mrb[6].mxu1 %vm742_vm1, %v17021_v41  ;;  %v17041_v41 = vld [vmem:[#allocation2 + $0x78] sm:$0xff] }
 0x205   : > { %14045 = vmatprep.mubr.msk.f32.mxu1 %vm742_vm1, %v17025_v23  ;;  %19223 = vst [vmem:[#allocation21_spill] sm:$0xff] %v17041_v41  ;;  %v17045_v23 = vld [vmem:[#allocation2 + $0x80] sm:$0xff] }
 0x206   : > { %19224 = vst [vmem:[#allocation22_spill] sm:$0xff] %v17045_v23 }
 0x208   : > { %14046 = vmatmul.mubr.msk.f32.gmra.mrb[8].mxu1 %vm742_vm1, %v17029_v17  ;;  %v17049_v17 = vld [vmem:[#allocation2 + $0x90] sm:$0xff] }
 0x209   : > { %14048 = vmatprep.mubr.msk.f32.mxu1 %vm742_vm1, %v17033_v30  ;;  %19225 = vst [vmem:[#allocation23_spill] sm:$0xff] %v17049_v17  ;;  %v17053_v30 = vld [vmem:[#allocation2 + $0x98] sm:$0xff] }
 0x20a   : > { %19226 = vst [vmem:[#allocation24_spill] sm:$0xff] %v17053_v30 }
 0x20c   : > { %14049 = vmatmul.mubr.msk.f32.gmra.mrb[10].mxu1 %vm742_vm1, %v17037_v21  ;;  %v17057_v21 = vld [vmem:[#allocation2 + $0xa8] sm:$0xff] }
 0x20d   : > { %14051 = vmatprep.mubr.msk.f32.mxu1 %vm742_vm1, %v17041_v41  ;;  %19227 = vst [vmem:[#allocation25_spill] sm:$0xff] %v17057_v21  ;;  %v17061_v41 = vld [vmem:[#allocation2 + $0xb0] sm:$0xff] }
 0x20e   : > { %19228 = vst [vmem:[#allocation26_spill] sm:$0xff] %v17061_v41 }
 0x210   : > { %14052 = vmatmul.mubr.msk.f32.gmra.mrb[12].mxu1 %vm742_vm1, %v17045_v23  ;;  %v17065_v23 = vld [vmem:[#allocation2 + $0xc0] sm:$0xff] }
 0x211   : > { %14054 = vmatprep.mubr.msk.f32.mxu1 %vm742_vm1, %v17049_v17  ;;  %19229 = vst [vmem:[#allocation27_spill] sm:$0xff] %v17065_v23  ;;  %v17069_v17 = vld [vmem:[#allocation2 + $0xc8] sm:$0xff] }
 0x212   : > { %19230 = vst [vmem:[#allocation28_spill] sm:$0xff] %v17069_v17 }
 0x214   : > { %14055 = vmatmul.mubr.msk.f32.gmra.mrb[14].mxu1 %vm742_vm1, %v17053_v30  ;;  %v17073_v30 = vld [vmem:[#allocation2 + $0xd8] sm:$0xff] }
 0x215   : > { %14057 = vmatprep.mubr.msk.f32.mxu1 %vm742_vm1, %v17057_v21  ;;  %19231 = vst [vmem:[#allocation29_spill] sm:$0xff] %v17073_v30  ;;  %v17077_v21 = vld [vmem:[#allocation2 + $0xe0] sm:$0xff] }
 0x216   : > { %19232 = vst [vmem:[#allocation30_spill] sm:$0xff] %v17077_v21 }
 0x218   : > { %14058 = vmatmul.mubr.msk.f32.gmra.mrb[16].mxu1 %vm742_vm1, %v17061_v41  ;;  %v17081_v41 = vld [vmem:[#allocation2 + $0xf0] sm:$0xff] }
 0x219   : > { %14060 = vmatprep.mubr.msk.f32.mxu1 %vm742_vm1, %v17065_v23  ;;  %19233 = vst [vmem:[#allocation31_spill] sm:$0xff] %v17081_v41  ;;  %v17085_v23 = vld [vmem:[#allocation2 + $0xf8] sm:$0xff] }
 0x21a   : > { %19234 = vst [vmem:[#allocation32_spill] sm:$0xff] %v17085_v23 }
 0x21c   : > { %14061 = vmatmul.mubr.msk.f32.gmra.mrb[18].mxu1 %vm742_vm1, %v17069_v17  ;;  %v17089_v17 = vld [vmem:[#allocation2 + $0x108] sm:$0xff] }
 0x21d   : > { %14063 = vmatprep.mubr.msk.f32.mxu1 %vm742_vm1, %v17073_v30  ;;  %19235 = vst [vmem:[#allocation33_spill] sm:$0xff] %v17089_v17  ;;  %v17093_v30 = vld [vmem:[#allocation2 + $0x110] sm:$0xff] }
 0x21e   : > { %19236 = vst [vmem:[#allocation34_spill] sm:$0xff] %v17093_v30 }
 0x220   : > { %14064 = vmatmul.mubr.msk.f32.gmra.mrb[20].mxu1 %vm742_vm1, %v17077_v21  ;;  %v17097_v21 = vld [vmem:[#allocation2 + $0x120] sm:$0xff] }
 0x221   : > { %14066 = vmatprep.mubr.msk.f32.mxu1 %vm742_vm1, %v17081_v41  ;;  %19237 = vst [vmem:[#allocation35_spill] sm:$0xff] %v17097_v21  ;;  %v17101_v41 = vld [vmem:[#allocation2 + $0x128] sm:$0xff] }
 0x222   : > { %19238 = vst [vmem:[#allocation36_spill] sm:$0xff] %v17101_v41 }
 0x224   : > { %14067 = vmatmul.mubr.msk.f32.gmra.mrb[22].mxu1 %vm742_vm1, %v17085_v23  ;;  %v17105_v23 = vld [vmem:[#allocation2 + $0x138] sm:$0xff] }
 0x225   : > { %14069 = vmatprep.mubr.msk.f32.mxu1 %vm742_vm1, %v17089_v17  ;;  %19239 = vst [vmem:[#allocation37_spill] sm:$0xff] %v17105_v23  ;;  %v17109_v17 = vld [vmem:[#allocation2 + $0x140] sm:$0xff] }
 0x228   : > { %14070 = vmatmul.mubr.msk.f32.gmra.mrb[24].mxu1 %vm742_vm1, %v17093_v30  ;;  %v17113_v30 = vld [vmem:[#allocation2 + $0x150] sm:$0xff] }
 0x229   : > { %14072 = vmatprep.mubr.msk.f32.mxu1 %vm742_vm1, %v17097_v21  ;;  %19240 = vst [vmem:[#allocation38_spill] sm:$0xff] %v17113_v30  ;;  %v17117_v21 = vld [vmem:[#allocation2 + $0x158] sm:$0xff] }
 0x22c   : > { %14073 = vmatmul.mubr.msk.f32.gmra.mrb[26].mxu1 %vm742_vm1, %v17101_v41  ;;  %v17121_v41 = vld [vmem:[#allocation2 + $0x168] sm:$0xff] }
 0x22d   : > { %14075 = vmatprep.mubr.msk.f32.mxu1 %vm742_vm1, %v17105_v23  ;;  %19241 = vst [vmem:[#allocation39_spill] sm:$0xff] %v17121_v41  ;;  %v17125_v23 = vld [vmem:[#allocation2 + $0x180] sm:$0xff] }
 0x230   : > { %14076 = vmatmul.mubr.msk.f32.gmra.mrb[28].mxu1 %vm742_vm1, %v17109_v17 }
 0x231   : > { %14078 = vmatprep.mubr.msk.f32.mxu1 %vm742_vm1, %v17113_v30  ;;  %v17133_v30 = vld [vmem:[#allocation2 + $0x188] sm:$0xff] }
 0x234   : > { %14079 = vmatmul.mubr.msk.f32.gmra.mrb[30].mxu1 %vm742_vm1, %v17117_v21 }
 0x235   : > { %14081 = vmatprep.mubr.msk.f32.mxu1 %vm742_vm1, %v17121_v41  ;;  %v12115_v41 = vld [vmem:[%s19096_s3 + $0x14] sm:$0xf] }
 0x238   : > { %14082 = vmatmul.mubr.msk.f32.gmra.mrb[0].mxu1 %vm742_vm1, %v17127_v25 }
 0x239   : > { %14084 = vmatprep.mubr.msk.f32.mxu1 %vm742_vm1, %v17125_v23 }
 0x23c   : > { %14085 = vmatmul.mubr.msk.f32.gmra.mrb[2].mxu1 %vm742_vm1, %v17133_v30 }
 0x23d   : > { %14089 = vmatprep.mubr.msk.f32.mxu1 %vm742_vm1, %v16631_v37  ;;  %v19242_v37 = vld [vmem:[#allocation9_spill] sm:$0xff] }
 0x240   : > { %14090 = vmatmul.mubr.msk.f32.vlgmr.msra.gmra.mrb[4].mxu1 %vm742_vm1, %v16643_v44  ;;  %v17201_v44 = vld [vmem:[#allocation3 + $0x181] sm:$0xff] }
 0x241   : > { %14138 = vmatpush3.msk.msra.mxu1 %vm1112_vm3, %v17010_v24  ;;  %14092 = vmatprep.mubr.msk.f32.mxu1 %vm742_vm1, %v16647_v46  ;;  %v19243_v46 = vld [vmem:[#allocation14_spill] sm:$0xff]  ;;  %v17400_v24 = vld [vmem:[#allocation3 + $0x92] sm:$0xff] }
 0x242   : > { %14187 = vmatprep.subr.msk.mxu1 %vm1112_vm3, %v12115_v41 }
 0x244   : > { %14093 = vmatmul.mubr.msk.f32.gmra.mrb[6].mxu1 %vm742_vm1, %v16659_v52  ;;  %v17207_v52 = vld [vmem:[#allocation3 + $0x189] sm:$0xff] }
 0x245   : > { %14095 = vmatprep.mubr.msk.f32.mxu1 %vm742_vm1, %v16661_v54  ;;  %v17216_v54 = vld [vmem:[%s19097_s4 + $0x14] sm:$0xf] }
 0x248   : > { %14096 = vmatmul.mubr.msk.f32.gmra.mrb[8].mxu1 %vm742_vm1, %v16669_v58 }
 0x249   : > { %14098 = vmatprep.mubr.msk.f32.mxu1 %vm742_vm1, %v16671_v60 }
 0x24c   : > { %14099 = vmatmul.mubr.msk.f32.gmra.mrb[10].mxu1 %vm742_vm1, %v16679_v2 }
 0x24d   : > { %14101 = vmatprep.mubr.msk.f32.mxu1 %vm742_vm1, %v16681_v4 }
 0x250   : > { %14102 = vmatmul.mubr.msk.f32.gmra.mrb[12].mxu1 %vm742_vm1, %v16689_v10 }
 0x251   : > { %14104 = vmatprep.mubr.msk.f32.mxu1 %vm742_vm1, %v16691_v12 }
 0x254   : > { %14105 = vmatmul.mubr.msk.f32.gmra.mrb[14].mxu1 %vm742_vm1, %v16699_v18 }
 0x255   : > { %14107 = vmatprep.mubr.msk.f32.mxu1 %vm742_vm1, %v16701_v20 }
 0x258   : > { %14108 = vmatmul.mubr.msk.f32.gmra.mrb[16].mxu1 %vm742_vm1, %v16709_v49 }
 0x259   : > { %14110 = vmatprep.mubr.msk.f32.mxu1 %vm742_vm1, %v16711_v27 }
 0x25c   : > { %14111 = vmatmul.mubr.msk.f32.gmra.mrb[18].mxu1 %vm742_vm1, %v16719_v34 }
 0x25d   : > { %14113 = vmatprep.mubr.msk.f32.mxu1 %vm742_vm1, %v16721_v35 }
 0x260   : > { %14114 = vmatmul.mubr.msk.f32.gmra.mrb[20].mxu1 %vm742_vm1, %v16729_v28 }
 0x261   : > { %14116 = vmatprep.mubr.msk.f32.mxu1 %vm742_vm1, %v16731_v48 }
 0x264   : > { %14117 = vmatmul.mubr.msk.f32.gmra.mrb[22].mxu1 %vm742_vm1, %v16739_v0 }
 0x265   : > { %14119 = vmatprep.mubr.msk.f32.mxu1 %vm742_vm1, %v16741_v6 }
 0x268   : > { %14120 = vmatmul.mubr.msk.f32.gmra.mrb[24].mxu1 %vm742_vm1, %v16749_v16 }
 0x269   : > { %14122 = vmatprep.mubr.msk.f32.mxu1 %vm742_vm1, %v16751_v22 }
 0x26c   : > { %14123 = vmatmul.mubr.msk.f32.gmra.mrb[26].mxu1 %vm742_vm1, %v16765_v32 }
 0x26d   : > { %14125 = vmatprep.mubr.msk.f32.mxu1 %vm742_vm1, %v16767_v50 }
 0x270   : > { %14126 = vmatmul.mubr.msk.f32.gmra.mrb[28].mxu1 %vm742_vm1, %v16782_v14  ;;  %v17317_v14 = vld [vmem:[#allocation2 + $0x159] sm:$0xff] }
 0x271   : > { %14128 = vmatprep.mubr.msk.f32.mxu1 %vm742_vm1, %v19242_v37  ;;  %v17408_v37 = vld [vmem:[#allocation3 + $0xaa] sm:$0xff] }
 0x274   : > { %14129 = vmatmul.mubr.msk.f32.gmra.mrb[30].mxu1 %vm742_vm1, %v16799_v62 }
 0x275   : > { %14131 = vmatprep.mubr.msk.f32.mxu1 %vm742_vm1, %v16801_v8 }
 0x278   : > { %14132 = vmatmul.mubr.msk.f32.gmra.mrb[0].mxu1 %vm742_vm1, %v19243_v46  ;;  %v17414_v46 = vld [vmem:[#allocation3 + $0xb2] sm:$0xff] }
 0x279   : > { %14134 = vmatprep.mubr.msk.f32.mxu1 %vm742_vm1, %v17201_v44 }
 0x27c   : > { %14135 = vmatmul.mubr.msk.f32.gmra.mrb[2].mxu1 %vm742_vm1, %v17207_v52 }
 0x27d   : > { %14139 = vmatprep.mubr.msk.f32.mxu1 %vm742_vm1, %v16834_v56  ;;  %v17311_v56 = vld [vmem:[#allocation2 + $0x151] sm:$0xff] }
 0x280   : > { %14140 = vmatmul.mubr.msk.f32.vlgmr.msra.gmra.mrb[4].mxu1 %vm742_vm1, %v16844_v26  ;;  %v17323_v26 = vld [vmem:[#allocation2 + $0x169] sm:$0xff] }
 0x281   : > { %14188 = vmatpush3.msk.msra.mxu1 %vm1112_vm3, %v12115_v41  ;;  %14142 = vmatprep.mubr.msk.f32.mxu1 %vm742_vm1, %v16850_v42  ;;  %v17406_v41 = vld [vmem:[#allocation3 + $0x9a] sm:$0xff] }
 0x282   : > { %14237 = vmatprep.subr.msk.mxu1 %vm1112_vm3, %v17216_v54 }
 0x284   : > { %14143 = vmatmul.mubr.msk.f32.gmra.mrb[6].mxu1 %vm742_vm1, %v16856_v29  ;;  %v17329_v29 = vld [vmem:[#allocation2 + $0x171] sm:$0xff] }
 0x285   : > { %14145 = vmatprep.mubr.msk.f32.mxu1 %vm742_vm1, %v16862_v31 }
 0x288   : > { %14146 = vmatmul.mubr.msk.f32.gmra.mrb[8].mxu1 %vm742_vm1, %v16868_v33  ;;  %v17335_v33 = vld [vmem:[#allocation2 + $0x181] sm:$0xff] }
 0x289   : > { %14148 = vmatprep.mubr.msk.f32.mxu1 %vm742_vm1, %v16874_v19  ;;  %v4785_v19 = vld [vmem:[#allocation3 + $0x1a] sm:$0xff] }
 0x28a   : > { %v17233_v58 = vpop.f32.mrb[60].mxu0 }
 0x28b   : > { %19244 = vst [vmem:[#allocation9_spill] sm:$0xff] %v17233_v58  ;;  %v17235_v60 = vpop.f32.mrb[61].mxu0  ;;  %v17440_v58 = vld [vmem:[#allocation3 + $0x10a] sm:$0xff] }
 0x28c   : > { %19245 = vst [vmem:[#allocation14_spill] sm:$0xff] %v17235_v60  ;;  %14149 = vmatmul.mubr.msk.f32.gmra.mrb[10].mxu1 %vm742_vm1, %v16880_v36  ;;  %v17438_v60 = vld [vmem:[#allocation3 + $0xfa] sm:$0xff] }
 0x28d   : > { %14151 = vmatprep.mubr.msk.f32.mxu1 %vm742_vm1, %v16886_v38  ;;  %v17341_v38 = vld [vmem:[#allocation2 + $0x189] sm:$0xff] }
 0x28e   : > { %v17241_v2 = vpop.f32.mrb[62].mxu0 }
 0x28f   : > { %19246 = vst [vmem:[#allocation40_spill] sm:$0xff] %v17241_v2  ;;  %v17243_v4 = vpop.f32.mrb[63].mxu0  ;;  %v17432_v2 = vld [vmem:[#allocation3 + $0xf2] sm:$0xff] }
 0x290   : > { %19247 = vst [vmem:[#allocation41_spill] sm:$0xff] %v17243_v4  ;;  %14152 = vmatmul.mubr.msk.f32.gmra.mrb[12].mxu1 %vm742_vm1, %v16892_v40  ;;  %v17430_v4 = vld [vmem:[#allocation3 + $0xe2] sm:$0xff] }
 0x291   : > { %14154 = vmatprep.mubr.msk.f32.mxu1 %vm742_vm1, %v16898_v43  ;;  %v4786_v43 = vld [vmem:[#allocation3 + $0x22] sm:$0xff] }
 0x292   : > { %v17249_v10 = vpop.f32.mrb[32].mxu0 }
 0x293   : > { %19248 = vst [vmem:[#allocation42_spill] sm:$0xff] %v17249_v10  ;;  %v17253_v12 = vpop.f32.mrb[33].mxu0  ;;  %v17562_v10 = vld [vmem:[#allocation2 + $0xf2] sm:$0xff] }
 0x294   : > { %14155 = vmatmul.mubr.msk.f32.gmra.mrb[14].mxu1 %vm742_vm1, %v16904_v45  ;;  %19249 = vst [vmem:[#allocation43_spill] sm:$0xff] %v17253_v12  ;;  %v17348_v45 = vld [vmem:[#allocation3 + $0x32] sm:$0xff]  ;;  %19283 = vst [vmem:[#allocation77_spill] sm:$0xff] %v17562_v10 }
 0x295   : > { %14157 = vmatprep.mubr.msk.f32.mxu1 %vm742_vm1, %v16910_v47  ;;  %v17558_v12 = vld [vmem:[#allocation2 + $0xe2] sm:$0xff] }
 0x296   : > { %v17257_v18 = vpop.f32.mrb[34].mxu0  ;;  %19282 = vst [vmem:[#allocation76_spill] sm:$0xff] %v17558_v12 }
 0x297   : > { %19250 = vst [vmem:[#allocation44_spill] sm:$0xff] %v17257_v18  ;;  %v17259_v20 = vpop.f32.mrb[35].mxu0  ;;  %v17554_v18 = vld [vmem:[#allocation2 + $0xda] sm:$0xff] }
 0x298   : > { %19251 = vst [vmem:[#allocation45_spill] sm:$0xff] %v17259_v20  ;;  %14158 = vmatmul.mubr.msk.f32.gmra.mrb[16].mxu1 %vm742_vm1, %v16916_v51  ;;  %v17355_v51 = vld [vmem:[%s19096_s3 + $0x18] sm:$0xf]  ;;  %v17550_v20 = vld [vmem:[#allocation2 + $0xca] sm:$0xff]  ;;  %19281 = vst [vmem:[#allocation75_spill] sm:$0xff] %v17554_v18 }
 0x299   : > { %14160 = vmatprep.mubr.msk.f32.mxu1 %vm742_vm1, %v16922_v53  ;;  %19280 = vst [vmem:[#allocation74_spill] sm:$0xff] %v17550_v20 }
 0x29a   : > { %v17265_v49 = vpop.f32.mrb[36].mxu0 }
 0x29b   : > { %19252 = vst [vmem:[#allocation46_spill] sm:$0xff] %v17265_v49  ;;  %v17267_v27 = vpop.f32.mrb[37].mxu0  ;;  %v17546_v49 = vld [vmem:[#allocation2 + $0xc2] sm:$0xff] }
 0x29c   : > { %19253 = vst [vmem:[#allocation47_spill] sm:$0xff] %v17267_v27  ;;  %14161 = vmatmul.mubr.msk.f32.gmra.mrb[18].mxu1 %vm742_vm1, %v16928_v55  ;;  %v17364_v55 = vld [vmem:[#allocation3 + $0x3a] sm:$0xff]  ;;  %v17542_v27 = vld [vmem:[#allocation2 + $0xb2] sm:$0xff]  ;;  %19279 = vst [vmem:[#allocation73_spill] sm:$0xff] %v17546_v49 }
 0x29d   : > { %14163 = vmatprep.mubr.msk.f32.mxu1 %vm742_vm1, %v16934_v57  ;;  %v17366_v57 = vld [vmem:[#allocation3 + $0x4a] sm:$0xff]  ;;  %19278 = vst [vmem:[#allocation72_spill] sm:$0xff] %v17542_v27 }
 0x29e   : > { %v17273_v34 = vpop.f32.mrb[38].mxu0 }
 0x29f   : > { %19254 = vst [vmem:[#allocation48_spill] sm:$0xff] %v17273_v34  ;;  %v17275_v35 = vpop.f32.mrb[39].mxu0  ;;  %v17538_v34 = vld [vmem:[#allocation2 + $0xaa] sm:$0xff] }
 0x2a0   : > { %19255 = vst [vmem:[#allocation49_spill] sm:$0xff] %v17275_v35  ;;  %14164 = vmatmul.mubr.msk.f32.gmra.mrb[20].mxu1 %vm742_vm1, %v16940_v59  ;;  %v17534_v35 = vld [vmem:[#allocation2 + $0x9a] sm:$0xff]  ;;  %19277 = vst [vmem:[#allocation71_spill] sm:$0xff] %v17538_v34 }
 0x2a1   : > { %14166 = vmatprep.mubr.msk.f32.mxu1 %vm742_vm1, %v16946_v61  ;;  %19276 = vst [vmem:[#allocation70_spill] sm:$0xff] %v17534_v35 }
 0x2a2   : > { %v17281_v28 = vpop.f32.mrb[40].mxu0 }
 0x2a3   : > { %19256 = vst [vmem:[#allocation50_spill] sm:$0xff] %v17281_v28  ;;  %v17283_v48 = vpop.f32.mrb[41].mxu0  ;;  %v17530_v28 = vld [vmem:[#allocation2 + $0x92] sm:$0xff] }
 0x2a4   : > { %19257 = vst [vmem:[#allocation51_spill] sm:$0xff] %v17283_v48  ;;  %14167 = vmatmul.mubr.msk.f32.gmra.mrb[22].mxu1 %vm742_vm1, %v16952_v63  ;;  %v17378_v63 = vld [vmem:[#allocation3 + $0x52] sm:$0xff] }
 0x2a5   : > { %14169 = vmatprep.mubr.msk.f32.mxu1 %vm742_vm1, %v16958_v1  ;;  %v17380_v1 = vld [vmem:[#allocation3 + $0x62] sm:$0xff]  ;;  %v17526_v48 = vld [vmem:[#allocation2 + $0x82] sm:$0xff] }
 0x2a6   : > { %v17289_v0 = vpop.f32.mrb[42].mxu0 }
 0x2a7   : > { %19258 = vst [vmem:[#allocation52_spill] sm:$0xff] %v17289_v0  ;;  %v17291_v6 = vpop.f32.mrb[43].mxu0  ;;  %v17522_v0 = vld [vmem:[#allocation2 + $0x7a] sm:$0xff] }
 0x2a8   : > { %19259 = vst [vmem:[#allocation53_spill] sm:$0xff] %v17291_v6  ;;  %14170 = vmatmul.mubr.msk.f32.gmra.mrb[24].mxu1 %vm742_vm1, %v16964_v3  ;;  %v17518_v6 = vld [vmem:[#allocation2 + $0x6a] sm:$0xff] }
 0x2a9   : > { %14172 = vmatprep.mubr.msk.f32.mxu1 %vm742_vm1, %v16970_v5 }
 0x2aa   : > { %v17297_v16 = vpop.f32.mrb[44].mxu0 }
 0x2ab   : > { %19260 = vst [vmem:[#allocation54_spill] sm:$0xff] %v17297_v16  ;;  %v17299_v22 = vpop.f32.mrb[45].mxu0  ;;  %v17502_v16 = vld [vmem:[#allocation2 + $0x3a] sm:$0xff] }
 0x2ac   : > { %19261 = vst [vmem:[#allocation55_spill] sm:$0xff] %v17299_v22  ;;  %14173 = vmatmul.mubr.msk.f32.gmra.mrb[26].mxu1 %vm742_vm1, %v16976_v7  ;;  %v17390_v7 = vld [vmem:[#allocation3 + $0x6a] sm:$0xff]  ;;  %v17495_v22 = vld [vmem:[#allocation2 + $0x32] sm:$0xff] }
 0x2ad   : > { %14175 = vmatprep.mubr.msk.f32.mxu1 %vm742_vm1, %v16982_v9  ;;  %v17392_v9 = vld [vmem:[#allocation3 + $0x7a] sm:$0xff] }
 0x2ae   : > { %v17305_v32 = vpop.f32.mrb[46].mxu0 }
 0x2af   : > { %19262 = vst [vmem:[#allocation56_spill] sm:$0xff] %v17305_v32  ;;  %v17307_v50 = vpop.f32.mrb[47].mxu0  ;;  %v12217_v32 = vld [vmem:[%s19097_s4 + $0x18] sm:$0xf] }
 0x2b0   : > { %19263 = vst [vmem:[#allocation57_spill] sm:$0xff] %v17307_v50  ;;  %14176 = vmatmul.mubr.msk.f32.gmra.mrb[28].mxu1 %vm742_vm1, %v16988_v11  ;;  %v17398_v11 = vld [vmem:[#allocation3 + $0x82] sm:$0xff]  ;;  %v5176_v50 = vld [vmem:[#allocation2 + $0x22] sm:$0xff] }
 0x2b1   : > { %14178 = vmatprep.mubr.msk.f32.mxu1 %vm742_vm1, %v17311_v56 }
 0x2b2   : > { %v17315_v62 = vpop.f32.mrb[48].mxu0 }
 0x2b3   : > { %19264 = vst [vmem:[#allocation58_spill] sm:$0xff] %v17315_v62  ;;  %v17319_v8 = vpop.f32.mrb[49].mxu0  ;;  %v5175_v62 = vld [vmem:[#allocation2 + $0x1a] sm:$0xff] }
 0x2b4   : > { %19265 = vst [vmem:[#allocation59_spill] sm:$0xff] %v17319_v8  ;;  %14179 = vmatmul.mubr.msk.f32.gmra.mrb[30].mxu1 %vm742_vm1, %v17317_v14  ;;  %v17486_v8 = vld [vmem:[#allocation3 + $0x18a] sm:$0xff] }
 0x2b5   : > { %14181 = vmatprep.mubr.msk.f32.mxu1 %vm742_vm1, %v17323_v26 }
 0x2b6   : > { %v17327_v42 = vpop.f32.mrb[50].mxu0 }
 0x2b7   : > { %19266 = vst [vmem:[#allocation60_spill] sm:$0xff] %v17327_v42  ;;  %v17331_v31 = vpop.f32.mrb[51].mxu0  ;;  %v17480_v42 = vld [vmem:[#allocation3 + $0x182] sm:$0xff] }
 0x2b8   : > { %19267 = vst [vmem:[#allocation61_spill] sm:$0xff] %v17331_v31  ;;  %14182 = vmatmul.mubr.msk.f32.gmra.mrb[0].mxu1 %vm742_vm1, %v17329_v29  ;;  %v17478_v31 = vld [vmem:[#allocation3 + $0x172] sm:$0xff] }
 0x2b9   : > { %14184 = vmatprep.mubr.msk.f32.mxu1 %vm742_vm1, %v17335_v33 }
 0x2ba   : > { %v17339_v36 = vpop.f32.mrb[52].mxu0 }
 0x2bb   : > { %19268 = vst [vmem:[#allocation62_spill] sm:$0xff] %v17339_v36  ;;  %v17343_v40 = vpop.f32.mrb[53].mxu0  ;;  %v17472_v36 = vld [vmem:[#allocation3 + $0x16a] sm:$0xff] }
 0x2bc   : > { %19269 = vst [vmem:[#allocation63_spill] sm:$0xff] %v17343_v40  ;;  %14185 = vmatmul.mubr.msk.f32.gmra.mrb[2].mxu1 %vm742_vm1, %v17341_v38  ;;  %v17470_v40 = vld [vmem:[#allocation3 + $0x15a] sm:$0xff] }
 0x2bd   : > { %14189 = vmatprep.mubr.msk.f32.mxu1 %vm742_vm1, %v4785_v19  ;;  %v17422_v19 = vld [vmem:[#allocation3 + $0xca] sm:$0xff] }
 0x2be   : > { %v17350_v47 = vpop.f32.mrb[54].mxu0 }
 0x2bf   : > { %19270 = vst [vmem:[#allocation64_spill] sm:$0xff] %v17350_v47  ;;  %v17357_v53 = vpop.f32.mrb[55].mxu0  ;;  %v17464_v47 = vld [vmem:[#allocation3 + $0x152] sm:$0xff] }
 0x2c0   : > { %19271 = vst [vmem:[#allocation65_spill] sm:$0xff] %v17357_v53  ;;  %14190 = vmatmul.mubr.msk.f32.vlgmr.msra.gmra.mrb[4].mxu1 %vm742_vm1, %v4786_v43  ;;  %v17424_v43 = vld [vmem:[#allocation3 + $0xda] sm:$0xff]  ;;  %v17462_v53 = vld [vmem:[#allocation3 + $0x142] sm:$0xff] }
 0x2c1   : > { %14238 = vmatpush3.msk.msra.mxu1 %vm1112_vm3, %v17216_v54  ;;  %14192 = vmatprep.mubr.msk.f32.mxu1 %vm742_vm1, %v17348_v45  ;;  %v17416_v54 = vld [vmem:[#allocation3 + $0xc2] sm:$0xff] }
 0x2c2   : > { %14287 = vmatprep.subr.msk.mxu1 %vm1112_vm3, %v17355_v51  ;;  %v17370_v59 = vpop.f32.mrb[56].mxu0 }
 0x2c3   : > { %19272 = vst [vmem:[#allocation66_spill] sm:$0xff] %v17370_v59  ;;  %v17372_v61 = vpop.f32.mrb[57].mxu0  ;;  %v17456_v59 = vld [vmem:[#allocation3 + $0x13a] sm:$0xff] }
 0x2c4   : > { %19273 = vst [vmem:[#allocation67_spill] sm:$0xff] %v17372_v61  ;;  %14193 = vmatmul.mubr.msk.f32.gmra.mrb[6].mxu1 %vm742_vm1, %v17364_v55  ;;  %v17454_v61 = vld [vmem:[#allocation3 + $0x12a] sm:$0xff] }
 0x2c5   : > { %14195 = vmatprep.mubr.msk.f32.mxu1 %vm742_vm1, %v17366_v57 }
 0x2c6   : > { %v17382_v3 = vpop.f32.mrb[58].mxu0 }
 0x2c7   : > { %19274 = vst [vmem:[#allocation68_spill] sm:$0xff] %v17382_v3  ;;  %v17384_v5 = vpop.f32.mrb[59].mxu0  ;;  %v17448_v3 = vld [vmem:[#allocation3 + $0x122] sm:$0xff] }
 0x2c8   : > { %19275 = vst [vmem:[#allocation69_spill] sm:$0xff] %v17384_v5  ;;  %14196 = vmatmul.mubr.msk.f32.gmra.mrb[8].mxu1 %vm742_vm1, %v17378_v63  ;;  %v17446_v5 = vld [vmem:[#allocation3 + $0x112] sm:$0xff] }
 0x2c9   : > { %14198 = vmatprep.mubr.msk.f32.mxu1 %vm742_vm1, %v17380_v1 }
 0x2cc   : > { %14199 = vmatmul.mubr.msk.f32.gmra.mrb[10].mxu1 %vm742_vm1, %v17390_v7 }
 0x2cd   : > { %14201 = vmatprep.mubr.msk.f32.mxu1 %vm742_vm1, %v17392_v9 }
 0x2d0   : > { %14202 = vmatmul.mubr.msk.f32.gmra.mrb[12].mxu1 %vm742_vm1, %v17398_v11 }
 0x2d1   : > { %14204 = vmatprep.mubr.msk.f32.mxu1 %vm742_vm1, %v17400_v24 }
 0x2d4   : > { %14205 = vmatmul.mubr.msk.f32.gmra.mrb[14].mxu1 %vm742_vm1, %v17406_v41 }
 0x2d5   : > { %14207 = vmatprep.mubr.msk.f32.mxu1 %vm742_vm1, %v17408_v37 }
 0x2d8   : > { %14208 = vmatmul.mubr.msk.f32.gmra.mrb[16].mxu1 %vm742_vm1, %v17414_v46 }
 0x2d9   : > { %14210 = vmatprep.mubr.msk.f32.mxu1 %vm742_vm1, %v17416_v54 }
 0x2dc   : > { %14211 = vmatmul.mubr.msk.f32.gmra.mrb[18].mxu1 %vm742_vm1, %v17422_v19 }
 0x2dd   : > { %14213 = vmatprep.mubr.msk.f32.mxu1 %vm742_vm1, %v17424_v43 }
 0x2e0   : > { %14214 = vmatmul.mubr.msk.f32.gmra.mrb[20].mxu1 %vm742_vm1, %v17430_v4 }
 0x2e1   : > { %14216 = vmatprep.mubr.msk.f32.mxu1 %vm742_vm1, %v17432_v2 }
 0x2e4   : > { %14217 = vmatmul.mubr.msk.f32.gmra.mrb[22].mxu1 %vm742_vm1, %v17438_v60 }
 0x2e5   : > { %14219 = vmatprep.mubr.msk.f32.mxu1 %vm742_vm1, %v17440_v58 }
 0x2e8   : > { %14220 = vmatmul.mubr.msk.f32.gmra.mrb[24].mxu1 %vm742_vm1, %v17446_v5 }
 0x2e9   : > { %14222 = vmatprep.mubr.msk.f32.mxu1 %vm742_vm1, %v17448_v3 }
 0x2ec   : > { %14223 = vmatmul.mubr.msk.f32.gmra.mrb[26].mxu1 %vm742_vm1, %v17454_v61 }
 0x2ed   : > { %14225 = vmatprep.mubr.msk.f32.mxu1 %vm742_vm1, %v17456_v59 }
 0x2f0   : > { %14226 = vmatmul.mubr.msk.f32.gmra.mrb[28].mxu1 %vm742_vm1, %v17462_v53 }
 0x2f1   : > { %14228 = vmatprep.mubr.msk.f32.mxu1 %vm742_vm1, %v17464_v47 }
 0x2f4   : > { %14229 = vmatmul.mubr.msk.f32.gmra.mrb[30].mxu1 %vm742_vm1, %v17470_v40 }
 0x2f5   : > { %14231 = vmatprep.mubr.msk.f32.mxu1 %vm742_vm1, %v17472_v36 }
 0x2f8   : > { %14232 = vmatmul.mubr.msk.f32.gmra.mrb[0].mxu1 %vm742_vm1, %v17478_v31 }
 0x2f9   : > { %14234 = vmatprep.mubr.msk.f32.mxu1 %vm742_vm1, %v17480_v42 }
 0x2fc   : > { %14235 = vmatmul.mubr.msk.f32.gmra.mrb[2].mxu1 %vm742_vm1, %v17486_v8 }
 0x2fd   : > { %14239 = vmatprep.mubr.msk.f32.mxu1 %vm742_vm1, %v5175_v62  ;;  %v17506_v62 = vld [vmem:[#allocation2 + $0x4a] sm:$0xff] }
 0x300   : > { %14240 = vmatmul.mubr.msk.f32.vlgmr.msra.gmra.mrb[4].mxu1 %vm742_vm1, %v5176_v50  ;;  %v17510_v50 = vld [vmem:[#allocation2 + $0x52] sm:$0xff] }
 0x301   : > { %14288 = vmatpush3.msk.msra.mxu1 %vm1112_vm3, %v17355_v51  ;;  %14242 = vmatprep.mubr.msk.f32.mxu1 %vm742_vm1, %v17495_v22  ;;  %v17514_v51 = vld [vmem:[#allocation2 + $0x62] sm:$0xff] }
 0x302   : > { %14337 = vmatprep.subr.msk.mxu1 %vm1112_vm3, %v12217_v32 }
 0x304   : > { %14243 = vmatmul.mubr.msk.f32.gmra.mrb[6].mxu1 %vm742_vm1, %v17502_v16 }
 0x305   : > { %14245 = vmatprep.mubr.msk.f32.mxu1 %vm742_vm1, %v17506_v62 }
 0x308   : > { %14246 = vmatmul.mubr.msk.f32.gmra.mrb[8].mxu1 %vm742_vm1, %v17510_v50 }
 0x309   : > { %14248 = vmatprep.mubr.msk.f32.mxu1 %vm742_vm1, %v17514_v51 }
 0x30c   : > { %14249 = vmatmul.mubr.msk.f32.gmra.mrb[10].mxu1 %vm742_vm1, %v17518_v6 }
 0x30d   : > { %14251 = vmatprep.mubr.msk.f32.mxu1 %vm742_vm1, %v17522_v0 }
 0x310   : > { %14252 = vmatmul.mubr.msk.f32.gmra.mrb[12].mxu1 %vm742_vm1, %v17526_v48 }
 0x311   : > { %14254 = vmatprep.mubr.msk.f32.mxu1 %vm742_vm1, %v17530_v28 }
 0x314   : > { %14255 = vmatmul.mubr.msk.f32.gmra.mrb[14].mxu1 %vm742_vm1, %v17534_v35  ;;  %v19292_v35 = vld [vmem:[#allocation12_spill] sm:$0xff] }
 0x315   : > { %14257 = vmatprep.mubr.msk.f32.mxu1 %vm742_vm1, %v17538_v34  ;;  %v19290_v34 = vld [vmem:[#allocation10_spill] sm:$0xff] }
 0x318   : > { %14258 = vmatmul.mubr.msk.f32.gmra.mrb[16].mxu1 %vm742_vm1, %v17542_v27  ;;  %v19287_v27 = vld [vmem:[#allocation6_spill] sm:$0xff] }
 0x319   : > { %14260 = vmatprep.mubr.msk.f32.mxu1 %vm742_vm1, %v17546_v49  ;;  %v17566_v49 = vld [vmem:[#allocation2 + $0xfa] sm:$0xff] }
 0x31a   : > { %19284 = vst [vmem:[#allocation78_spill] sm:$0xff] %v17566_v49 }
 0x31c   : > { %14261 = vmatmul.mubr.msk.f32.gmra.mrb[18].mxu1 %vm742_vm1, %v17550_v20  ;;  %v17570_v20 = vld [vmem:[#allocation2 + $0x10a] sm:$0xff] }
 0x31d   : > { %14263 = vmatprep.mubr.msk.f32.mxu1 %vm742_vm1, %v17554_v18  ;;  %19285 = vst [vmem:[#allocation79_spill] sm:$0xff] %v17570_v20  ;;  %v19286_v18 = vld [vmem:[#allocation5_spill] sm:$0xff] }
 0x320   : > { %14264 = vmatmul.mubr.msk.f32.gmra.mrb[20].mxu1 %vm742_vm1, %v17558_v12  ;;  %v19288_v12 = vld [vmem:[#allocation7_spill] sm:$0xff] }
 0x321   : > { %14266 = vmatprep.mubr.msk.f32.mxu1 %vm742_vm1, %v17562_v10  ;;  %v19289_v10 = vld [vmem:[#allocation8_spill] sm:$0xff] }
 0x324   : > { %14267 = vmatmul.mubr.msk.f32.gmra.mrb[22].mxu1 %vm742_vm1, %v17566_v49  ;;  %v19291_v49 = vld [vmem:[#allocation11_spill] sm:$0xff] }
 0x325   : > { %14269 = vmatprep.mubr.msk.f32.mxu1 %vm742_vm1, %v17570_v20  ;;  %v19293_v20 = vld [vmem:[#allocation13_spill] sm:$0xff] }
 0x328   : > { %14270 = vmatmul.mubr.msk.f32.gmra.mrb[24].mxu1 %vm742_vm1, %v19286_v18  ;;  %v17592_v18 = vld [vmem:[#allocation2 + $0x182] sm:$0xff] }
 0x329   : > { %14272 = vmatprep.mubr.msk.f32.mxu1 %vm742_vm1, %v19287_v27  ;;  %v5568_v27 = vld [vmem:[#allocation3 + $0x48] sm:$0xff] }
 0x32c   : > { %14273 = vmatmul.mubr.msk.f32.gmra.mrb[26].mxu1 %vm742_vm1, %v19288_v12  ;;  %v17596_v12 = vld [vmem:[#allocation2 + $0x18a] sm:$0xff] }
 0x32d   : > { %14275 = vmatprep.mubr.msk.f32.mxu1 %vm742_vm1, %v19289_v10  ;;  %v5566_v10 = vld [vmem:[#allocation3 + $0x30] sm:$0xff]  ;;  %19294 = vst [vmem:[#allocation5_spill] sm:$0xff] %v17596_v12 }
 0x330   : > { %14276 = vmatmul.mubr.msk.f32.gmra.mrb[28].mxu1 %vm742_vm1, %v19290_v34  ;;  %v5570_v34 = vld [vmem:[#allocation3 + $0x60] sm:$0xff] }
 0x331   : > { %14278 = vmatprep.mubr.msk.f32.mxu1 %vm742_vm1, %v19291_v49  ;;  %v5567_v49 = vld [vmem:[#allocation3 + $0x38] sm:$0xff] }
 0x334   : > { %14279 = vmatmul.mubr.msk.f32.gmra.mrb[30].mxu1 %vm742_vm1, %v19292_v35  ;;  %v5571_v35 = vld [vmem:[#allocation3 + $0x68] sm:$0xff] }
 0x335   : > { %14281 = vmatprep.mubr.msk.f32.mxu1 %vm742_vm1, %v19293_v20  ;;  %v17604_v20 = vld [vmem:[%s19096_s3 + $0x1c] sm:$0xf] }
 0x338   : > { %14282 = vmatmul.mubr.msk.f32.gmra.mrb[0].mxu1 %vm742_vm1, %v16817_v39  ;;  %v5569_v39 = vld [vmem:[#allocation3 + $0x50] sm:$0xff] }
 0x339   : > { %14284 = vmatprep.mubr.msk.f32.mxu1 %vm742_vm1, %v17592_v18 }
 0x33c   : > { %14285 = vmatmul.mubr.msk.f32.gmra.mrb[2].mxu1 %vm742_vm1, %v17596_v12  ;;  %v5574_v12 = vld [vmem:[#allocation3 + $0x90] sm:$0xff] }
 0x33d   : > { %14289 = vmatprep.mubr.msk.f32.mxu1 %vm742_vm1, %v5566_v10  ;;  %v5572_v10 = vld [vmem:[#allocation3 + $0x78] sm:$0xff] }
 0x340   : > { %14290 = vmatmul.mubr.msk.f32.vlgmr.msra.gmra.mrb[4].mxu1 %vm742_vm1, %v5567_v49  ;;  %v5573_v49 = vld [vmem:[#allocation3 + $0x80] sm:$0xff] }
 0x341   : > { %14338 = vmatpush3.msk.msra.mxu1 %vm1112_vm3, %v12217_v32  ;;  %14292 = vmatprep.mubr.msk.f32.mxu1 %vm742_vm1, %v5568_v27  ;;  %v5575_v32 = vld [vmem:[#allocation3 + $0x98] sm:$0xff]  ;;  %v5576_v27 = vld [vmem:[#allocation3 + $0xa8] sm:$0xff] }
 0x342   : > { %14387 = vmatprep.subr.msk.mxu1 %vm1112_vm3, %v17604_v20 }
 0x344   : > { %14293 = vmatmul.mubr.msk.f32.gmra.mrb[6].mxu1 %vm742_vm1, %v5569_v39  ;;  %v5577_v39 = vld [vmem:[#allocation3 + $0xb0] sm:$0xff] }
 0x345   : > { %14295 = vmatprep.mubr.msk.f32.mxu1 %vm742_vm1, %v5570_v34  ;;  %v5578_v34 = vld [vmem:[#allocation3 + $0xc0] sm:$0xff] }
 0x348   : > { %14296 = vmatmul.mubr.msk.f32.gmra.mrb[8].mxu1 %vm742_vm1, %v5571_v35  ;;  %v5579_v35 = vld [vmem:[#allocation3 + $0xc8] sm:$0xff] }
 0x349   : > { %14298 = vmatprep.mubr.msk.f32.mxu1 %vm742_vm1, %v5572_v10  ;;  %v5580_v10 = vld [vmem:[#allocation3 + $0xd8] sm:$0xff] }
 0x34c   : > { %14299 = vmatmul.mubr.msk.f32.gmra.mrb[10].mxu1 %vm742_vm1, %v5573_v49  ;;  %v5581_v49 = vld [vmem:[#allocation3 + $0xe0] sm:$0xff] }
 0x34d   : > { %14301 = vmatprep.mubr.msk.f32.mxu1 %vm742_vm1, %v5574_v12  ;;  %v5582_v12 = vld [vmem:[#allocation3 + $0xf0] sm:$0xff] }
 0x350   : > { %14302 = vmatmul.mubr.msk.f32.gmra.mrb[12].mxu1 %vm742_vm1, %v5575_v32  ;;  %v5583_v32 = vld [vmem:[#allocation3 + $0xf8] sm:$0xff] }
 0x351   : > { %14304 = vmatprep.mubr.msk.f32.mxu1 %vm742_vm1, %v5576_v27  ;;  %v5584_v27 = vld [vmem:[#allocation3 + $0x108] sm:$0xff] }
 0x354   : > { %14305 = vmatmul.mubr.msk.f32.gmra.mrb[14].mxu1 %vm742_vm1, %v5577_v39  ;;  %v5585_v39 = vld [vmem:[#allocation3 + $0x110] sm:$0xff] }
 0x355   : > { %14307 = vmatprep.mubr.msk.f32.mxu1 %vm742_vm1, %v5578_v34  ;;  %v5586_v34 = vld [vmem:[#allocation3 + $0x120] sm:$0xff] }
 0x358   : > { %14308 = vmatmul.mubr.msk.f32.gmra.mrb[16].mxu1 %vm742_vm1, %v5579_v35  ;;  %v5587_v35 = vld [vmem:[#allocation3 + $0x128] sm:$0xff] }
 0x359   : > { %14310 = vmatprep.mubr.msk.f32.mxu1 %vm742_vm1, %v5580_v10  ;;  %v5588_v10 = vld [vmem:[#allocation3 + $0x138] sm:$0xff] }
 0x35c   : > { %14311 = vmatmul.mubr.msk.f32.gmra.mrb[18].mxu1 %vm742_vm1, %v5581_v49  ;;  %v5589_v49 = vld [vmem:[#allocation3 + $0x140] sm:$0xff] }
 0x35d   : > { %14313 = vmatprep.mubr.msk.f32.mxu1 %vm742_vm1, %v5582_v12  ;;  %v5590_v12 = vld [vmem:[#allocation3 + $0x150] sm:$0xff] }
 0x360   : > { %14314 = vmatmul.mubr.msk.f32.gmra.mrb[20].mxu1 %vm742_vm1, %v5583_v32  ;;  %v5591_v32 = vld [vmem:[#allocation3 + $0x158] sm:$0xff] }
 0x361   : > { %14316 = vmatprep.mubr.msk.f32.mxu1 %vm742_vm1, %v5584_v27  ;;  %v5592_v27 = vld [vmem:[#allocation3 + $0x168] sm:$0xff] }
 0x364   : > { %14317 = vmatmul.mubr.msk.f32.gmra.mrb[22].mxu1 %vm742_vm1, %v5585_v39  ;;  %v5593_v39 = vld [vmem:[#allocation3 + $0x170] sm:$0xff] }
 0x365   : > { %14319 = vmatprep.mubr.msk.f32.mxu1 %vm742_vm1, %v5586_v34  ;;  %v5596_v34 = vld [vmem:[#allocation3 + $0x198] sm:$0xff] }
 0x368   : > { %14320 = vmatmul.mubr.msk.f32.gmra.mrb[24].mxu1 %vm742_vm1, %v5587_v35  ;;  %v5597_v35 = vld [vmem:[#allocation3 + $0x1a0] sm:$0xff] }
 0x369   : > { %14322 = vmatprep.mubr.msk.f32.mxu1 %vm742_vm1, %v5588_v10  ;;  %v19295_v10 = vld [vmem:[#allocation15_spill] sm:$0xff] }
 0x36c   : > { %14323 = vmatmul.mubr.msk.f32.gmra.mrb[26].mxu1 %vm742_vm1, %v5589_v49  ;;  %v12285_v49 = vld [vmem:[%s19097_s4 + $0x1c] sm:$0xf] }
 0x36d   : > { %14325 = vmatprep.mubr.msk.f32.mxu1 %vm742_vm1, %v5590_v12  ;;  %v19296_v12 = vld [vmem:[#allocation16_spill] sm:$0xff] }
 0x370   : > { %14326 = vmatmul.mubr.msk.f32.gmra.mrb[28].mxu1 %vm742_vm1, %v5591_v32  ;;  %v19299_v32 = vld [vmem:[#allocation19_spill] sm:$0xff] }
 0x371   : > { %14328 = vmatprep.mubr.msk.f32.mxu1 %vm742_vm1, %v5592_v27  ;;  %v19300_v27 = vld [vmem:[#allocation20_spill] sm:$0xff] }
 0x374   : > { %14329 = vmatmul.mubr.msk.f32.gmra.mrb[30].mxu1 %vm742_vm1, %v5593_v39  ;;  %v19301_v39 = vld [vmem:[#allocation21_spill] sm:$0xff] }
 0x375   : > { %14331 = vmatprep.mubr.msk.f32.mxu1 %vm742_vm1, %v16996_v13  ;;  %v19297_v13 = vld [vmem:[#allocation17_spill] sm:$0xff] }
 0x378   : > { %14332 = vmatmul.mubr.msk.f32.gmra.mrb[0].mxu1 %vm742_vm1, %v17002_v15  ;;  %v19298_v15 = vld [vmem:[#allocation18_spill] sm:$0xff] }
 0x379   : > { %14334 = vmatprep.mubr.msk.f32.mxu1 %vm742_vm1, %v5596_v34  ;;  %v19302_v34 = vld [vmem:[#allocation22_spill] sm:$0xff] }
 0x37c   : > { %14335 = vmatmul.mubr.msk.f32.gmra.mrb[2].mxu1 %vm742_vm1, %v5597_v35  ;;  %v19304_v35 = vld [vmem:[#allocation24_spill] sm:$0xff] }
 0x37d   : > { %14339 = vmatprep.mubr.msk.f32.mxu1 %vm742_vm1, %v19295_v10  ;;  %v19305_v10 = vld [vmem:[#allocation25_spill] sm:$0xff] }
 0x380   : > { %14340 = vmatmul.mubr.msk.f32.vlgmr.msra.gmra.mrb[4].mxu1 %vm742_vm1, %v19296_v12  ;;  %v19306_v12 = vld [vmem:[#allocation26_spill] sm:$0xff] }
 0x381   : > { %14388 = vmatpush3.msk.msra.mxu1 %vm1112_vm3, %v17604_v20  ;;  %14342 = vmatprep.mubr.msk.f32.mxu1 %vm742_vm1, %v19297_v13  ;;  %v19303_v20 = vld [vmem:[#allocation23_spill] sm:$0xff] }
 0x382   : > { %14437 = vmatprep.subr.msk.mxu1 %vm1112_vm3, %v12285_v49  ;;  %v19307_v13 = vld [vmem:[#allocation27_spill] sm:$0xff] }
 0x384   : > { %14343 = vmatmul.mubr.msk.f32.gmra.mrb[6].mxu1 %vm742_vm1, %v19298_v15  ;;  %v19308_v15 = vld [vmem:[#allocation28_spill] sm:$0xff] }
 0x385   : > { %14345 = vmatprep.mubr.msk.f32.mxu1 %vm742_vm1, %v19299_v32  ;;  %v19309_v32 = vld [vmem:[#allocation29_spill] sm:$0xff] }
 0x388   : > { %14346 = vmatmul.mubr.msk.f32.gmra.mrb[8].mxu1 %vm742_vm1, %v19300_v27  ;;  %v19310_v27 = vld [vmem:[#allocation30_spill] sm:$0xff] }
 0x389   : > { %14348 = vmatprep.mubr.msk.f32.mxu1 %vm742_vm1, %v19301_v39  ;;  %v19311_v39 = vld [vmem:[#allocation31_spill] sm:$0xff] }
 0x38c   : > { %14349 = vmatmul.mubr.msk.f32.gmra.mrb[10].mxu1 %vm742_vm1, %v19302_v34  ;;  %v19312_v34 = vld [vmem:[#allocation32_spill] sm:$0xff] }
 0x38d   : > { %14351 = vmatprep.mubr.msk.f32.mxu1 %vm742_vm1, %v19303_v20  ;;  %v19313_v20 = vld [vmem:[#allocation33_spill] sm:$0xff] }
 0x390   : > { %14352 = vmatmul.mubr.msk.f32.gmra.mrb[12].mxu1 %vm742_vm1, %v19304_v35  ;;  %v19314_v35 = vld [vmem:[#allocation34_spill] sm:$0xff] }
 0x391   : > { %14354 = vmatprep.mubr.msk.f32.mxu1 %vm742_vm1, %v19305_v10  ;;  %v19315_v10 = vld [vmem:[#allocation35_spill] sm:$0xff] }
 0x394   : > { %14355 = vmatmul.mubr.msk.f32.gmra.mrb[14].mxu1 %vm742_vm1, %v19306_v12  ;;  %v19316_v12 = vld [vmem:[#allocation36_spill] sm:$0xff] }
 0x395   : > { %14357 = vmatprep.mubr.msk.f32.mxu1 %vm742_vm1, %v19307_v13  ;;  %v19317_v13 = vld [vmem:[#allocation37_spill] sm:$0xff] }
 0x398   : > { %14358 = vmatmul.mubr.msk.f32.gmra.mrb[16].mxu1 %vm742_vm1, %v19308_v15  ;;  %v19318_v15 = vld [vmem:[#allocation38_spill] sm:$0xff] }
 0x399   : > { %14360 = vmatprep.mubr.msk.f32.mxu1 %vm742_vm1, %v19309_v32  ;;  %v19319_v32 = vld [vmem:[#allocation39_spill] sm:$0xff] }
 0x39c   : > { %14361 = vmatmul.mubr.msk.f32.gmra.mrb[18].mxu1 %vm742_vm1, %v19310_v27  ;;  %v5987_v27 = vld [vmem:[#allocation2 + $0x198] sm:$0xff] }
 0x39d   : > { %14363 = vmatprep.mubr.msk.f32.mxu1 %vm742_vm1, %v19311_v39  ;;  %v6347_v39 = vld [vmem:[#allocation3 + $0x31] sm:$0xff] }
 0x3a0   : > { %14364 = vmatmul.mubr.msk.f32.gmra.mrb[20].mxu1 %vm742_vm1, %v19312_v34  ;;  %v6349_v34 = vld [vmem:[#allocation3 + $0x49] sm:$0xff] }
 0x3a1   : > { %14366 = vmatprep.mubr.msk.f32.mxu1 %vm742_vm1, %v19313_v20  ;;  %v6352_v20 = vld [vmem:[#allocation3 + $0x69] sm:$0xff] }
 0x3a4   : > { %14367 = vmatmul.mubr.msk.f32.gmra.mrb[22].mxu1 %vm742_vm1, %v19314_v35  ;;  %v6353_v35 = vld [vmem:[#allocation3 + $0x79] sm:$0xff] }
 0x3a5   : > { %14369 = vmatprep.mubr.msk.f32.mxu1 %vm742_vm1, %v19315_v10  ;;  %v6354_v10 = vld [vmem:[#allocation3 + $0x81] sm:$0xff] }
 0x3a8   : > { %14370 = vmatmul.mubr.msk.f32.gmra.mrb[24].mxu1 %vm742_vm1, %v19316_v12  ;;  %v6355_v12 = vld [vmem:[#allocation3 + $0x91] sm:$0xff] }
 0x3a9   : > { %14372 = vmatprep.mubr.msk.f32.mxu1 %vm742_vm1, %v19317_v13  ;;  %v6357_v13 = vld [vmem:[#allocation3 + $0xa9] sm:$0xff] }
 0x3ac   : > { %14373 = vmatmul.mubr.msk.f32.gmra.mrb[26].mxu1 %vm742_vm1, %v17109_v17  ;;  %v5988_v17 = vld [vmem:[#allocation2 + $0x1a0] sm:$0xff] }
 0x3ad   : > { %14375 = vmatprep.mubr.msk.f32.mxu1 %vm742_vm1, %v19318_v15  ;;  %v6358_v15 = vld [vmem:[#allocation3 + $0xb1] sm:$0xff] }
 0x3b0   : > { %14376 = vmatmul.mubr.msk.f32.gmra.mrb[28].mxu1 %vm742_vm1, %v17117_v21  ;;  %v6348_v21 = vld [vmem:[#allocation3 + $0x39] sm:$0xff] }
 0x3b1   : > { %14378 = vmatprep.mubr.msk.f32.mxu1 %vm742_vm1, %v19319_v32  ;;  %v6359_v32 = vld [vmem:[#allocation3 + $0xc1] sm:$0xff] }
 0x3b4   : > { %14379 = vmatmul.mubr.msk.f32.gmra.mrb[30].mxu1 %vm742_vm1, %v17127_v25  ;;  %v17714_v25 = vld [vmem:[%s19096_s3 + $0x20] sm:$0xf] }
 0x3b5   : > { %14381 = vmatprep.mubr.msk.f32.mxu1 %vm742_vm1, %v17125_v23  ;;  %v6350_v23 = vld [vmem:[#allocation3 + $0x51] sm:$0xff] }
 0x3b8   : > { %14382 = vmatmul.mubr.msk.f32.gmra.mrb[0].mxu1 %vm742_vm1, %v17133_v30  ;;  %v6351_v30 = vld [vmem:[#allocation3 + $0x61] sm:$0xff] }
 0x3b9   : > { %14384 = vmatprep.mubr.msk.f32.mxu1 %vm742_vm1, %v5987_v27  ;;  %v6360_v27 = vld [vmem:[#allocation3 + $0xc9] sm:$0xff] }
 0x3bc   : > { %14385 = vmatmul.mubr.msk.f32.gmra.mrb[2].mxu1 %vm742_vm1, %v5988_v17  ;;  %v6361_v17 = vld [vmem:[#allocation3 + $0xd9] sm:$0xff] }
 0x3bd   : > { %14389 = vmatprep.mubr.msk.f32.mxu1 %vm742_vm1, %v6347_v39  ;;  %v6362_v39 = vld [vmem:[#allocation3 + $0xe1] sm:$0xff] }
 0x3c0   : > { %14390 = vmatmul.mubr.msk.f32.vlgmr.msra.gmra.mrb[4].mxu1 %vm742_vm1, %v6348_v21  ;;  %v6363_v21 = vld [vmem:[#allocation3 + $0xf1] sm:$0xff] }
 0x3c1   : > { %14438 = vmatpush3.msk.msra.mxu1 %vm1112_vm3, %v12285_v49  ;;  %14392 = vmatprep.mubr.msk.f32.mxu1 %vm742_vm1, %v6349_v34  ;;  %v6356_v49 = vld [vmem:[#allocation3 + $0x99] sm:$0xff] }
 0x3c2   : > { %14487 = vmatprep.subr.msk.mxu1 %vm1112_vm3, %v17714_v25  ;;  %v6364_v34 = vld [vmem:[#allocation3 + $0xf9] sm:$0xff] }
 0x3c4   : > { %14393 = vmatmul.mubr.msk.f32.gmra.mrb[6].mxu1 %vm742_vm1, %v6350_v23  ;;  %v6365_v23 = vld [vmem:[#allocation3 + $0x109] sm:$0xff] }
 0x3c5   : > { %14395 = vmatprep.mubr.msk.f32.mxu1 %vm742_vm1, %v6351_v30  ;;  %v6366_v30 = vld [vmem:[#allocation3 + $0x111] sm:$0xff] }
 0x3c8   : > { %14396 = vmatmul.mubr.msk.f32.gmra.mrb[8].mxu1 %vm742_vm1, %v6352_v20  ;;  %v6367_v20 = vld [vmem:[#allocation3 + $0x121] sm:$0xff] }
 0x3c9   : > { %14398 = vmatprep.mubr.msk.f32.mxu1 %vm742_vm1, %v6353_v35  ;;  %v6368_v35 = vld [vmem:[#allocation3 + $0x129] sm:$0xff] }
 0x3cc   : > { %14399 = vmatmul.mubr.msk.f32.gmra.mrb[10].mxu1 %vm742_vm1, %v6354_v10  ;;  %v6369_v10 = vld [vmem:[#allocation3 + $0x139] sm:$0xff] }
 0x3cd   : > { %14401 = vmatprep.mubr.msk.f32.mxu1 %vm742_vm1, %v6355_v12  ;;  %v6370_v12 = vld [vmem:[#allocation3 + $0x141] sm:$0xff] }
 0x3d0   : > { %14402 = vmatmul.mubr.msk.f32.gmra.mrb[12].mxu1 %vm742_vm1, %v6356_v49  ;;  %v6371_v49 = vld [vmem:[#allocation3 + $0x151] sm:$0xff] }
 0x3d1   : > { %14404 = vmatprep.mubr.msk.f32.mxu1 %vm742_vm1, %v6357_v13  ;;  %v6372_v13 = vld [vmem:[#allocation3 + $0x159] sm:$0xff] }
 0x3d4   : > { %14405 = vmatmul.mubr.msk.f32.gmra.mrb[14].mxu1 %vm742_vm1, %v6358_v15  ;;  %v6373_v15 = vld [vmem:[#allocation3 + $0x169] sm:$0xff] }
 0x3d5   : > { %14407 = vmatprep.mubr.msk.f32.mxu1 %vm742_vm1, %v6359_v32  ;;  %v6374_v32 = vld [vmem:[#allocation3 + $0x171] sm:$0xff] }
 0x3d8   : > { %14408 = vmatmul.mubr.msk.f32.gmra.mrb[16].mxu1 %vm742_vm1, %v6360_v27  ;;  %v6377_v27 = vld [vmem:[#allocation3 + $0x199] sm:$0xff] }
 0x3d9   : > { %14410 = vmatprep.mubr.msk.f32.mxu1 %vm742_vm1, %v6361_v17  ;;  %v6378_v17 = vld [vmem:[#allocation3 + $0x1a1] sm:$0xff] }
 0x3dc   : > { %14411 = vmatmul.mubr.msk.f32.gmra.mrb[18].mxu1 %vm742_vm1, %v6362_v39  ;;  %v6737_v39 = vld [vmem:[#allocation2 + $0x31] sm:$0xff] }
 0x3dd   : > { %14413 = vmatprep.mubr.msk.f32.mxu1 %vm742_vm1, %v6363_v21  ;;  %v6738_v21 = vld [vmem:[#allocation2 + $0x39] sm:$0xff] }
 0x3e0   : > { %14414 = vmatmul.mubr.msk.f32.gmra.mrb[20].mxu1 %vm742_vm1, %v6364_v34  ;;  %v17756_v34 = vld [vmem:[%s19097_s4 + $0x20] sm:$0xf] }
 0x3e1   : > { %14416 = vmatprep.mubr.msk.f32.mxu1 %vm742_vm1, %v6365_v23  ;;  %v6741_v23 = vld [vmem:[#allocation2 + $0x61] sm:$0xff] }
 0x3e4   : > { %14417 = vmatmul.mubr.msk.f32.gmra.mrb[22].mxu1 %vm742_vm1, %v6366_v30  ;;  %v6742_v30 = vld [vmem:[#allocation2 + $0x69] sm:$0xff] }
 0x3e5   : > { %14419 = vmatprep.mubr.msk.f32.mxu1 %vm742_vm1, %v6367_v20  ;;  %v6743_v20 = vld [vmem:[#allocation2 + $0x79] sm:$0xff] }
 0x3e8   : > { %14420 = vmatmul.mubr.msk.f32.gmra.mrb[24].mxu1 %vm742_vm1, %v6368_v35  ;;  %v6744_v35 = vld [vmem:[#allocation2 + $0x81] sm:$0xff] }
 0x3e9   : > { %14422 = vmatprep.mubr.msk.f32.mxu1 %vm742_vm1, %v6369_v10  ;;  %v6746_v10 = vld [vmem:[#allocation2 + $0x99] sm:$0xff] }
 0x3ec   : > { %14423 = vmatmul.mubr.msk.f32.gmra.mrb[26].mxu1 %vm742_vm1, %v6370_v12  ;;  %v6747_v12 = vld [vmem:[#allocation2 + $0xa9] sm:$0xff] }
 0x3ed   : > { %14425 = vmatprep.mubr.msk.f32.mxu1 %vm742_vm1, %v6371_v49  ;;  %v6748_v49 = vld [vmem:[#allocation2 + $0xb1] sm:$0xff] }
 0x3f0   : > { %14426 = vmatmul.mubr.msk.f32.gmra.mrb[28].mxu1 %vm742_vm1, %v6372_v13  ;;  %v6749_v13 = vld [vmem:[#allocation2 + $0xc1] sm:$0xff] }
 0x3f1   : > { %14428 = vmatprep.mubr.msk.f32.mxu1 %vm742_vm1, %v6373_v15  ;;  %v6750_v15 = vld [vmem:[#allocation2 + $0xc9] sm:$0xff] }
 0x3f4   : > { %14429 = vmatmul.mubr.msk.f32.gmra.mrb[30].mxu1 %vm742_vm1, %v6374_v32  ;;  %v6751_v32 = vld [vmem:[#allocation2 + $0xd9] sm:$0xff] }
 0x3f5   : > { %14431 = vmatprep.mubr.msk.f32.mxu1 %vm742_vm1, %v17201_v44  ;;  %v6739_v44 = vld [vmem:[#allocation2 + $0x49] sm:$0xff] }
 0x3f8   : > { %14432 = vmatmul.mubr.msk.f32.gmra.mrb[0].mxu1 %vm742_vm1, %v17207_v52  ;;  %v6740_v52 = vld [vmem:[#allocation2 + $0x51] sm:$0xff] }
 0x3f9   : > { %14434 = vmatprep.mubr.msk.f32.mxu1 %vm742_vm1, %v6377_v27  ;;  %v6752_v27 = vld [vmem:[#allocation2 + $0xe1] sm:$0xff] }
 0x3fc   : > { %14435 = vmatmul.mubr.msk.f32.gmra.mrb[2].mxu1 %vm742_vm1, %v6378_v17  ;;  %v6753_v17 = vld [vmem:[#allocation2 + $0xf1] sm:$0xff] }
 0x3fd   : > { %14439 = vmatprep.mubr.msk.f32.mxu1 %vm742_vm1, %v6737_v39  ;;  %v6754_v39 = vld [vmem:[#allocation2 + $0xf9] sm:$0xff] }
 0x400   : > { %14440 = vmatmul.mubr.msk.f32.vlgmr.msra.gmra.mrb[4].mxu1 %vm742_vm1, %v6738_v21  ;;  %v6755_v21 = vld [vmem:[#allocation2 + $0x109] sm:$0xff] }
 0x401   : > { %14488 = vmatpush3.msk.msra.mxu1 %vm1112_vm3, %v17714_v25  ;;  %14442 = vmatprep.mubr.msk.f32.mxu1 %vm742_vm1, %v6739_v44  ;;  %v6745_v25 = vld [vmem:[#allocation2 + $0x91] sm:$0xff] }
 0x402   : > { %14537 = vmatprep.subr.msk.mxu1 %vm1112_vm3, %v17756_v34  ;;  %v6756_v44 = vld [vmem:[#allocation2 + $0x111] sm:$0xff] }
 0x404   : > { %14443 = vmatmul.mubr.msk.f32.gmra.mrb[6].mxu1 %vm742_vm1, %v6740_v52  ;;  %v6757_v52 = vld [vmem:[#allocation2 + $0x121] sm:$0xff] }
 0x405   : > { %14445 = vmatprep.mubr.msk.f32.mxu1 %vm742_vm1, %v6741_v23  ;;  %v6758_v23 = vld [vmem:[#allocation2 + $0x129] sm:$0xff] }
 0x408   : > { %14446 = vmatmul.mubr.msk.f32.gmra.mrb[8].mxu1 %vm742_vm1, %v6742_v30  ;;  %v6759_v30 = vld [vmem:[#allocation2 + $0x139] sm:$0xff] }
 0x409   : > { %14448 = vmatprep.mubr.msk.f32.mxu1 %vm742_vm1, %v6743_v20  ;;  %v6760_v20 = vld [vmem:[#allocation2 + $0x141] sm:$0xff] }
 0x40c   : > { %14449 = vmatmul.mubr.msk.f32.gmra.mrb[10].mxu1 %vm742_vm1, %v6744_v35  ;;  %v6767_v35 = vld [vmem:[#allocation2 + $0x199] sm:$0xff] }
 0x40d   : > { %14451 = vmatprep.mubr.msk.f32.mxu1 %vm742_vm1, %v6745_v25  ;;  %v6768_v25 = vld [vmem:[#allocation2 + $0x1a1] sm:$0xff] }
 0x410   : > { %14452 = vmatmul.mubr.msk.f32.gmra.mrb[12].mxu1 %vm742_vm1, %v6746_v10 }
 0x411   : > { %14454 = vmatprep.mubr.msk.f32.mxu1 %vm742_vm1, %v6747_v12 }
 0x414   : > { %14455 = vmatmul.mubr.msk.f32.gmra.mrb[14].mxu1 %vm742_vm1, %v6748_v49 }
 0x415   : > { %14457 = vmatprep.mubr.msk.f32.mxu1 %vm742_vm1, %v6749_v13 }
 0x418   : > { %14458 = vmatmul.mubr.msk.f32.gmra.mrb[16].mxu1 %vm742_vm1, %v6750_v15 }
 0x419   : > { %14460 = vmatprep.mubr.msk.f32.mxu1 %vm742_vm1, %v6751_v32 }
 0x41c   : > { %14461 = vmatmul.mubr.msk.f32.gmra.mrb[18].mxu1 %vm742_vm1, %v6752_v27 }
 0x41d   : > { %14463 = vmatprep.mubr.msk.f32.mxu1 %vm742_vm1, %v6753_v17  ;;  %v19336_v17 = vld [vmem:[#allocation46_spill] sm:$0xff] }
 0x420   : > { %14464 = vmatmul.mubr.msk.f32.gmra.mrb[20].mxu1 %vm742_vm1, %v6754_v39 }
 0x421   : > { %14466 = vmatprep.mubr.msk.f32.mxu1 %vm742_vm1, %v6755_v21 }
 0x424   : > { %14467 = vmatmul.mubr.msk.f32.gmra.mrb[22].mxu1 %vm742_vm1, %v6756_v44 }
 0x425   : > { %14469 = vmatprep.mubr.msk.f32.mxu1 %vm742_vm1, %v6757_v52  ;;  %v19337_v52 = vld [vmem:[#allocation47_spill] sm:$0xff] }
 0x428   : > { %14470 = vmatmul.mubr.msk.f32.gmra.mrb[24].mxu1 %vm742_vm1, %v6758_v23 }
 0x429   : > { %14472 = vmatprep.mubr.msk.f32.mxu1 %vm742_vm1, %v6759_v30 }
 0x42c   : > { %14473 = vmatmul.mubr.msk.f32.gmra.mrb[26].mxu1 %vm742_vm1, %v6760_v20 }
 0x42d   : > { %14475 = vmatprep.mubr.msk.f32.mxu1 %vm742_vm1, %v17311_v56  ;;  %v12389_v56 = vld [vmem:[%s19100_s7 + $0x8] sm:$0xff] }
 0x42e   : > { %14587 = vmatprep.subr.mxu0 %v12389_v56 }
 0x42f   : > { %14588 = vmatpush3.msra.mxu0 %v12389_v56 }
 0x430   : > { %14476 = vmatmul.mubr.msk.f32.gmra.mrb[28].mxu1 %vm742_vm1, %v17317_v14  ;;  %v19328_v14 = vld [vmem:[#allocation78_spill] sm:$0xff] }
 0x431   : > { %14478 = vmatprep.mubr.msk.f32.mxu1 %vm742_vm1, %v17323_v26  ;;  %v7536_v26 = vld [vmem:[#allocation2 + $0x112] sm:$0xff] }
 0x434   : > { %14479 = vmatmul.mubr.msk.f32.gmra.mrb[30].mxu1 %vm742_vm1, %v17329_v29  ;;  %v7538_v29 = vld [vmem:[#allocation2 + $0x12a] sm:$0xff] }
 0x435   : > { %14481 = vmatprep.mubr.msk.f32.mxu1 %vm742_vm1, %v17335_v33  ;;  %v7540_v33 = vld [vmem:[#allocation2 + $0x142] sm:$0xff] }
 0x438   : > { %14482 = vmatmul.mubr.msk.f32.gmra.mrb[0].mxu1 %vm742_vm1, %v17341_v38  ;;  %v7542_v38 = vld [vmem:[#allocation2 + $0x15a] sm:$0xff] }
 0x439   : > { %14484 = vmatprep.mubr.msk.f32.mxu1 %vm742_vm1, %v6767_v35 }
 0x43c   : > { %14485 = vmatmul.mubr.msk.f32.gmra.mrb[2].mxu1 %vm742_vm1, %v6768_v25 }
 0x43d   : > { %14489 = vmatprep.mubr.msk.f32.mxu1 %vm742_vm1, %v17348_v45  ;;  %v7544_v45 = vld [vmem:[#allocation2 + $0x172] sm:$0xff] }
 0x440   : > { %14490 = vmatmul.mubr.msk.f32.vlgmr.msra.gmra.mrb[4].mxu1 %vm742_vm1, %v17364_v55  ;;  %v7548_v55 = vld [vmem:[#allocation2 + $0x1a2] sm:$0xff] }
 0x441   : > { %14538 = vmatpush3.msk.msra.mxu1 %vm1112_vm3, %v17756_v34  ;;  %14492 = vmatprep.mubr.msk.f32.mxu1 %vm742_vm1, %v17366_v57  ;;  %v19331_v57 = vmov 0.0   ;;  %v19335_v34 = vld [vmem:[#allocation45_spill] sm:$0xff] }
 0x442   : > { %8023 = vst.msk [vmem:[#allocation4 + $0x20] sm:$0xff] %vm8017_vm4, %v19331_v57  ;;  %8018 = vst.msk [vmem:[#allocation4] sm:$0xff] %vm8017_vm4, %v19331_v57 }
 0x443   : > { %8024 = vst.msk [vmem:[#allocation4 + $0x28] sm:$0x3] %vm8020_vm5, %v19331_v57  ;;  %8021 = vst.msk [vmem:[#allocation4 + $0x10] sm:$0x3] %vm8020_vm5, %v19331_v57 }
 0x444   : > { %14493 = vmatmul.mubr.msk.f32.gmra.mrb[6].mxu1 %vm742_vm1, %v17378_v63  ;;  %8019 = vst.msk [vmem:[#allocation4 + $0x8] sm:$0xff] %vm8017_vm4, %v19331_v57  ;;  %8022 = vst.msk [vmem:[#allocation4 + $0x18] sm:$0xff] %vm8017_vm4, %v19331_v57 }
 0x445   : > { %14495 = vmatprep.mubr.msk.f32.mxu1 %vm742_vm1, %v17380_v1  ;;  %8025 = vst.msk [vmem:[#allocation4 + $0x30] sm:$0xff] %vm8017_vm4, %v19331_v57  ;;  %8026 = vst.msk [vmem:[#allocation4 + $0x38] sm:$0xff] %vm8017_vm4, %v19331_v57  ;;  %v18035_v1 = vld [vmem:[%s19100_s7 + $0x10] sm:$0xff] }
 0x446   : > { %8027 = vst.msk [vmem:[#allocation4 + $0x40] sm:$0x3] %vm8020_vm5, %v19331_v57  ;;  %8030 = vst.msk [vmem:[#allocation4 + $0x58] sm:$0x3] %vm8020_vm5, %v19331_v57 }
 0x447   : > { %8028 = vst.msk [vmem:[#allocation4 + $0x48] sm:$0xff] %vm8017_vm4, %v19331_v57  ;;  %8029 = vst.msk [vmem:[#allocation4 + $0x50] sm:$0xff] %vm8017_vm4, %v19331_v57 }
 0x448   : > { %14496 = vmatmul.mubr.msk.f32.gmra.mrb[8].mxu1 %vm742_vm1, %v17390_v7  ;;  %8031 = vst.msk [vmem:[#allocation4 + $0x60] sm:$0xff] %vm8017_vm4, %v19331_v57  ;;  %8032 = vst.msk [vmem:[#allocation4 + $0x68] sm:$0xff] %vm8017_vm4, %v19331_v57  ;;  %v19332_v7 = vld [vmem:[#allocation42_spill] sm:$0xff] }
 0x449   : > { %14498 = vmatprep.mubr.msk.f32.mxu1 %vm742_vm1, %v17392_v9  ;;  %8033 = vst.msk [vmem:[#allocation4 + $0x70] sm:$0x3] %vm8020_vm5, %v19331_v57  ;;  %8036 = vst.msk [vmem:[#allocation4 + $0x88] sm:$0x3] %vm8020_vm5, %v19331_v57 }
 0x44a   : > { %8034 = vst.msk [vmem:[#allocation4 + $0x78] sm:$0xff] %vm8017_vm4, %v19331_v57  ;;  %8035 = vst.msk [vmem:[#allocation4 + $0x80] sm:$0xff] %vm8017_vm4, %v19331_v57 }
 0x44b   : > { %8037 = vst.msk [vmem:[#allocation4 + $0x90] sm:$0xff] %vm8017_vm4, %v19331_v57  ;;  %8038 = vst.msk [vmem:[#allocation4 + $0x98] sm:$0xff] %vm8017_vm4, %v19331_v57  ;;  %v8140_v63 = vld [vmem:[#allocation4 + $0x9] sm:$0xff] }
 0x44c   : > { %14499 = vmatmul.mubr.msk.f32.gmra.mrb[10].mxu1 %vm742_vm1, %v17398_v11  ;;  %8039 = vst.msk [vmem:[#allocation4 + $0xa0] sm:$0x3] %vm8020_vm5, %v19331_v57  ;;  %8042 = vst.msk [vmem:[#allocation4 + $0xb8] sm:$0x3] %vm8020_vm5, %v19331_v57 }
 0x44d   : > { %14501 = vmatprep.mubr.msk.f32.mxu1 %vm742_vm1, %v17400_v24  ;;  %8040 = vst.msk [vmem:[#allocation4 + $0xa8] sm:$0xff] %vm8017_vm4, %v19331_v57  ;;  %8041 = vst.msk [vmem:[#allocation4 + $0xb0] sm:$0xff] %vm8017_vm4, %v19331_v57  ;;  %v18047_v24 = vld [vmem:[%s19099_s6] ss:$0 sm:$0xff] }
 0x44e   : > { %8043 = vst.msk [vmem:[#allocation4 + $0xc0] sm:$0xff] %vm8017_vm4, %v19331_v57  ;;  %8044 = vst.msk [vmem:[#allocation4 + $0xc8] sm:$0xff] %vm8017_vm4, %v19331_v57 }
 0x44f   : > { %8045 = vst.msk [vmem:[#allocation4 + $0xd0] sm:$0x3] %vm8020_vm5, %v19331_v57  ;;  %8048 = vst.msk [vmem:[#allocation4 + $0xe8] sm:$0x3] %vm8020_vm5, %v19331_v57 }
 0x450   : > { %14502 = vmatmul.mubr.msk.f32.gmra.mrb[12].mxu1 %vm742_vm1, %v17406_v41  ;;  %8046 = vst.msk [vmem:[#allocation4 + $0xd8] sm:$0xff] %vm8017_vm4, %v19331_v57  ;;  %8047 = vst.msk [vmem:[#allocation4 + $0xe0] sm:$0xff] %vm8017_vm4, %v19331_v57  ;;  %v19333_v41 = vld [vmem:[#allocation43_spill] sm:$0xff] }
 0x451   : > { %14504 = vmatprep.mubr.msk.f32.mxu1 %vm742_vm1, %v17408_v37  ;;  %8049 = vst.msk [vmem:[#allocation4 + $0xf0] sm:$0xff] %vm8017_vm4, %v19331_v57  ;;  %8050 = vst.msk [vmem:[#allocation4 + $0xf8] sm:$0xff] %vm8017_vm4, %v19331_v57 }
 0x452   : > { %8051 = vst.msk [vmem:[#allocation4 + $0x100] sm:$0x3] %vm8020_vm5, %v19331_v57  ;;  %8054 = vst.msk [vmem:[#allocation4 + $0x118] sm:$0x3] %vm8020_vm5, %v19331_v57 }
 0x453   : > { %8052 = vst.msk [vmem:[#allocation4 + $0x108] sm:$0xff] %vm8017_vm4, %v19331_v57  ;;  %8053 = vst.msk [vmem:[#allocation4 + $0x110] sm:$0xff] %vm8017_vm4, %v19331_v57 }
 0x454   : > { %14505 = vmatmul.mubr.msk.f32.gmra.mrb[14].mxu1 %vm742_vm1, %v17414_v46  ;;  %8055 = vst.msk [vmem:[#allocation4 + $0x120] sm:$0xff] %vm8017_vm4, %v19331_v57  ;;  %8056 = vst.msk [vmem:[#allocation4 + $0x128] sm:$0xff] %vm8017_vm4, %v19331_v57 }
 0x455   : > { %14507 = vmatprep.mubr.msk.f32.mxu1 %vm742_vm1, %v17416_v54  ;;  %8057 = vst.msk [vmem:[#allocation4 + $0x130] sm:$0x3] %vm8020_vm5, %v19331_v57  ;;  %8060 = vst.msk [vmem:[#allocation4 + $0x148] sm:$0x3] %vm8020_vm5, %v19331_v57 }
 0x456   : > { %8058 = vst.msk [vmem:[#allocation4 + $0x138] sm:$0xff] %vm8017_vm4, %v19331_v57  ;;  %8059 = vst.msk [vmem:[#allocation4 + $0x140] sm:$0xff] %vm8017_vm4, %v19331_v57 }
 0x457   : > { %8061 = vst.msk [vmem:[#allocation4 + $0x150] sm:$0xff] %vm8017_vm4, %v19331_v57  ;;  %8062 = vst.msk [vmem:[#allocation4 + $0x158] sm:$0xff] %vm8017_vm4, %v19331_v57 }
 0x458   : > { %14508 = vmatmul.mubr.msk.f32.gmra.mrb[16].mxu1 %vm742_vm1, %v17422_v19  ;;  %8063 = vst.msk [vmem:[#allocation4 + $0x160] sm:$0x3] %vm8020_vm5, %v19331_v57  ;;  %8066 = vst.msk [vmem:[#allocation4 + $0x178] sm:$0x3] %vm8020_vm5, %v19331_v57 }
 0x459   : > { %14510 = vmatprep.mubr.msk.f32.mxu1 %vm742_vm1, %v17424_v43  ;;  %8064 = vst.msk [vmem:[#allocation4 + $0x168] sm:$0xff] %vm8017_vm4, %v19331_v57  ;;  %8065 = vst.msk [vmem:[#allocation4 + $0x170] sm:$0xff] %vm8017_vm4, %v19331_v57 }
 0x45a   : > { %8067 = vst.msk [vmem:[#allocation4 + $0x180] sm:$0xff] %vm8017_vm4, %v19331_v57  ;;  %8068 = vst.msk [vmem:[#allocation4 + $0x188] sm:$0xff] %vm8017_vm4, %v19331_v57 }
 0x45b   : > { %8069 = vst.msk [vmem:[#allocation4 + $0x190] sm:$0x3] %vm8020_vm5, %v19331_v57  ;;  %8072 = vst.msk [vmem:[#allocation4 + $0x1a8] sm:$0x3] %vm8020_vm5, %v19331_v57 }
 0x45c   : > { %14511 = vmatmul.mubr.msk.f32.gmra.mrb[18].mxu1 %vm742_vm1, %v17430_v4  ;;  %v19321_v4 = vld [vmem:[#allocation71_spill] sm:$0xff]  ;;  %8070 = vst.msk [vmem:[#allocation4 + $0x198] sm:$0xff] %vm8017_vm4, %v19331_v57  ;;  %8071 = vst.msk [vmem:[#allocation4 + $0x1a0] sm:$0xff] %vm8017_vm4, %v19331_v57 }
 0x45d   : > { %14513 = vmatprep.mubr.msk.f32.mxu1 %vm742_vm1, %v17432_v2  ;;  %v19320_v2 = vld [vmem:[#allocation70_spill] sm:$0xff] }
 0x460   : > { %14514 = vmatmul.mubr.msk.f32.gmra.mrb[20].mxu1 %vm742_vm1, %v17438_v60  ;;  %v7158_v60 = vld [vmem:[#allocation3 + $0x1a2] sm:$0xff] }
 0x461   : > { %14516 = vmatprep.mubr.msk.f32.mxu1 %vm742_vm1, %v17440_v58  ;;  %v7157_v58 = vld [vmem:[#allocation3 + $0x19a] sm:$0xff] }
 0x464   : > { %14517 = vmatmul.mubr.msk.f32.gmra.mrb[22].mxu1 %vm742_vm1, %v17446_v5  ;;  %v18041_v5 = vld [vmem:[%s19098_s5] ss:$0 sm:$0xff] }
 0x465   : > { %14519 = vmatprep.mubr.msk.f32.mxu1 %vm742_vm1, %v17448_v3 }
 0x468   : > { %14520 = vmatmul.mubr.msk.f32.gmra.mrb[24].mxu1 %vm742_vm1, %v17454_v61  ;;  %v8138_v61 = vld [vmem:[%s19100_s7] sm:$0xff] }
 0x469   : > { %14522 = vmatprep.mubr.msk.f32.mxu1 %vm742_vm1, %v17456_v59  ;;  %v8139_v59 = vld [vmem:[#allocation4 + $0x1] sm:$0xff]  ;;  %14637 = vmatprep.subr.mxu0 %v8138_v61 }
 0x46a   : > { %14589 = vmatprep.mubr.msk.f32.mxu0 %vm8017_vm4, %v8139_v59 }
 0x46b   : > { %14590 = vmatmul.mubr.msk.f32.vlgmr.msra.gmra.mrb[64].mxu0 %vm8017_vm4, %v8140_v63  ;;  %v19342_v63 = vld [vmem:[#allocation52_spill] sm:$0xff] }
 0x46c   : > { %14523 = vmatmul.mubr.msk.f32.gmra.mrb[26].mxu1 %vm742_vm1, %v17462_v53  ;;  %v19330_v53 = vld [vmem:[#allocation5_spill] sm:$0xff]  ;;  %14638 = vmatpush3.msra.mxu0 %v8138_v61 }
 0x46d   : > { %14525 = vmatprep.mubr.msk.f32.mxu1 %vm742_vm1, %v17464_v47  ;;  %v7547_v47 = vld [vmem:[#allocation2 + $0x19a] sm:$0xff]  ;;  %14687 = vmatprep.subr.mxu0 %v18035_v1 }
 0x470   : > { %14526 = vmatmul.mubr.msk.f32.gmra.mrb[28].mxu1 %vm742_vm1, %v17470_v40  ;;  %v7543_v40 = vld [vmem:[#allocation2 + $0x16a] sm:$0xff] }
 0x471   : > { %14528 = vmatprep.mubr.msk.f32.mxu1 %vm742_vm1, %v17472_v36  ;;  %v7541_v36 = vld [vmem:[#allocation2 + $0x152] sm:$0xff] }
 0x474   : > { %14529 = vmatmul.mubr.msk.f32.gmra.mrb[30].mxu1 %vm742_vm1, %v17478_v31  ;;  %v7539_v31 = vld [vmem:[#allocation2 + $0x13a] sm:$0xff] }
 0x475   : > { %14531 = vmatprep.mubr.msk.f32.mxu1 %vm742_vm1, %v17480_v42  ;;  %v7537_v42 = vld [vmem:[#allocation2 + $0x122] sm:$0xff] }
 0x478   : > { %14532 = vmatmul.mubr.msk.f32.gmra.mrb[0].mxu1 %vm742_vm1, %v17486_v8  ;;  %v19329_v8 = vld [vmem:[#allocation79_spill] sm:$0xff] }
 0x479   : > { %14534 = vmatprep.mubr.msk.f32.mxu1 %vm742_vm1, %v7157_v58 }
 0x47c   : > { %14535 = vmatmul.mubr.msk.f32.gmra.mrb[2].mxu1 %vm742_vm1, %v7158_v60  ;;  %v19338_v60 = vld [vmem:[#allocation48_spill] sm:$0xff] }
 0x47d   : > { %14539 = vmatprep.mubr.msk.f32.mxu1 %vm742_vm1, %v17495_v22  ;;  %v19323_v22 = vld [vmem:[#allocation73_spill] sm:$0xff] }
 0x480   : > { %14540 = vmatmul.mubr.msk.f32.vlgmr.msra.gmra.mrb[4].mxu1 %vm742_vm1, %v17502_v16  ;;  %v19322_v16 = vld [vmem:[#allocation72_spill] sm:$0xff] }
 0x481   : > { %14542 = vmatprep.mubr.msk.f32.mxu1 %vm742_vm1, %v17506_v62  ;;  %v19334_v62 = vld [vmem:[#allocation44_spill] sm:$0xff] }
 0x484   : > { %14543 = vmatmul.mubr.msk.f32.gmra.mrb[6].mxu1 %vm742_vm1, %v17510_v50 }
 0x485   : > { %14545 = vmatprep.mubr.msk.f32.mxu1 %vm742_vm1, %v17514_v51 }
 0x488   : > { %14546 = vmatmul.mubr.msk.f32.gmra.mrb[8].mxu1 %vm742_vm1, %v17518_v6  ;;  %v19324_v6 = vld [vmem:[#allocation74_spill] sm:$0xff] }
 0x489   : > { %14548 = vmatprep.mubr.msk.f32.mxu1 %vm742_vm1, %v17522_v0  ;;  %v19325_v0 = vld [vmem:[#allocation75_spill] sm:$0xff] }
 0x48c   : > { %14549 = vmatmul.mubr.msk.f32.gmra.mrb[10].mxu1 %vm742_vm1, %v17526_v48  ;;  %v19326_v48 = vld [vmem:[#allocation76_spill] sm:$0xff] }
 0x48d   : > { %14551 = vmatprep.mubr.msk.f32.mxu1 %vm742_vm1, %v17530_v28  ;;  %v19327_v28 = vld [vmem:[#allocation77_spill] sm:$0xff] }
 0x490   : > { %14552 = vmatmul.mubr.msk.f32.gmra.mrb[12].mxu1 %vm742_vm1, %v19320_v2 }
 0x491   : > { %14554 = vmatprep.mubr.msk.f32.mxu1 %vm742_vm1, %v19321_v4 }
 0x494   : > { %14555 = vmatmul.mubr.msk.f32.gmra.mrb[14].mxu1 %vm742_vm1, %v19322_v16 }
 0x495   : > { %14557 = vmatprep.mubr.msk.f32.mxu1 %vm742_vm1, %v19323_v22  ;;  %v19339_v22 = vld [vmem:[#allocation49_spill] sm:$0xff] }
 0x498   : > { %14558 = vmatmul.mubr.msk.f32.gmra.mrb[16].mxu1 %vm742_vm1, %v19324_v6 }
 0x499   : > { %14560 = vmatprep.mubr.msk.f32.mxu1 %vm742_vm1, %v19325_v0 }
 0x49c   : > { %14561 = vmatmul.mubr.msk.f32.gmra.mrb[18].mxu1 %vm742_vm1, %v19326_v48 }
 0x49d   : > { %14563 = vmatprep.mubr.msk.f32.mxu1 %vm742_vm1, %v19327_v28 }
 0x4a0   : > { %14564 = vmatmul.mubr.msk.f32.gmra.mrb[20].mxu1 %vm742_vm1, %v19328_v14 }
 0x4a1   : > { %14566 = vmatprep.mubr.msk.f32.mxu1 %vm742_vm1, %v19329_v8 }
 0x4a4   : > { %14567 = vmatmul.mubr.msk.f32.gmra.mrb[22].mxu1 %vm742_vm1, %v7536_v26 }
 0x4a5   : > { %14569 = vmatprep.mubr.msk.f32.mxu1 %vm742_vm1, %v7537_v42  ;;  %v19340_v42 = vld [vmem:[#allocation50_spill] sm:$0xff] }
 0x4a8   : > { %14570 = vmatmul.mubr.msk.f32.gmra.mrb[24].mxu1 %vm742_vm1, %v7538_v29 }
 0x4a9   : > { %14572 = vmatprep.mubr.msk.f32.mxu1 %vm742_vm1, %v7539_v31 }
 0x4ac   : > { %14573 = vmatmul.mubr.msk.f32.gmra.mrb[26].mxu1 %vm742_vm1, %v7540_v33 }
 0x4ad   : > { %14575 = vmatprep.mubr.msk.f32.mxu1 %vm742_vm1, %v7541_v36 }
 0x4b0   : > { %14576 = vmatmul.mubr.msk.f32.gmra.mrb[28].mxu1 %vm742_vm1, %v7542_v38  ;;  %v19341_v38 = vld [vmem:[#allocation51_spill] sm:$0xff] }
 0x4b1   : > { %14578 = vmatprep.mubr.msk.f32.mxu1 %vm742_vm1, %v7543_v40 }
 0x4b4   : > { %14579 = vmatmul.mubr.msk.f32.gmra.mrb[30].mxu1 %vm742_vm1, %v7544_v45 }
 0x4b5   : > { %14581 = vmatprep.mubr.msk.f32.mxu1 %vm742_vm1, %v17592_v18 }
 0x4b8   : > { %14582 = vmatmul.mubr.msk.f32.gmra.mrb[0].mxu1 %vm742_vm1, %v19330_v53 }
 0x4b9   : > { %14584 = vmatprep.mubr.msk.f32.mxu1 %vm742_vm1, %v7547_v47 }
 0x4bc   : > { %14585 = vmatmul.mubr.msk.f32.gmra.mrb[2].mxu1 %vm742_vm1, %v7548_v55 }
 0x553   : > { %v14541_v3 = vpop.f32.mrb[4].mxu1 }
 0x554   : > { %v15055_v9 = vadd.f32 %v14541_v3, %v19332_v7  ;;  %v7716_v11 = vpop.f32.mrb[5].mxu1 }
 0x555   : > { %v15056_v37 = vadd.f32 %v7716_v11, %v19333_v41  ;;  %v19343_v41 = vld [vmem:[#allocation53_spill] sm:$0xff] }
 0x556   : > { %v7915_v46 = vmul.f32 %v15055_v9, %v18041_v5 }
 0x557   : > { %v7914_v54 = vmul.f32 %v15056_v37, %v18041_v5  ;;  %v14544_v19 = vpop.f32.mrb[6].mxu1 }
 0x558   : > { %v7954_v43 = vadd.f32 %v18047_v24, %v7915_v46  ;;  %v15057_v50 = vadd.f32 %v14544_v19, %v19334_v62  ;;  %v7726_v51 = vpop.f32.mrb[7].mxu1 }
 0x559   : > { %v7953_v18 = vadd.f32 %v18047_v24, %v7914_v54  ;;  %v15058_v10 = vadd.f32 %v7726_v51, %v19335_v34 }
 0x55a   : > { %v7986_v12 = vmax.f32 %v7954_v43, 0.0  ;;  %v7917_v49 = vmul.f32 %v15057_v50, %v18041_v5 }
 0x55b   : > { %v7985_v13 = vmax.f32 %v7953_v18, 0.0  ;;  %v7916_v15 = vmul.f32 %v15058_v10, %v18041_v5  ;;  %v14547_v32 = vpop.f32.mrb[8].mxu1  ;;  %v19344_v18 = vld [vmem:[#allocation54_spill] sm:$0xff] }
 0x55c   : > { %8075 = vst.msk [vmem:[#allocation4 + $0x21] sm:$0xff] %vm8017_vm4, %v7986_v12  ;;  %v7956_v27 = vadd.f32 %v18047_v24, %v7917_v49  ;;  %v15059_v39 = vadd.f32 %v14547_v32, %v19336_v17  ;;  %v7736_v21 = vpop.f32.mrb[9].mxu1 }
 0x55d   : > { %8074 = vst.msk [vmem:[#allocation4 + $0x19] sm:$0xff] %vm8017_vm4, %v7985_v13  ;;  %v7955_v44 = vadd.f32 %v18047_v24, %v7916_v15  ;;  %v15060_v23 = vadd.f32 %v7736_v21, %v19337_v52  ;;  %v19345_v13 = vld [vmem:[#allocation55_spill] sm:$0xff] }
 0x55e   : > { %v7988_v30 = vmax.f32 %v7956_v27, 0.0  ;;  %v7919_v20 = vmul.f32 %v15059_v39, %v18041_v5 }
 0x55f   : > { %v7987_v35 = vmax.f32 %v7955_v44, 0.0  ;;  %v7918_v25 = vmul.f32 %v15060_v23, %v18041_v5  ;;  %v14550_v56 = vpop.f32.mrb[10].mxu1  ;;  %v19346_v23 = vld [vmem:[#allocation56_spill] sm:$0xff] }
 0x560   : > { %8077 = vst.msk [vmem:[#allocation4 + $0x39] sm:$0xff] %vm8017_vm4, %v7988_v30  ;;  %v7958_v58 = vadd.f32 %v18047_v24, %v7919_v20  ;;  %v15061_v2 = vadd.f32 %v14550_v56, %v19338_v60  ;;  %v7746_v4 = vpop.f32.mrb[11].mxu1  ;;  %v19347_v56 = vld [vmem:[#allocation57_spill] sm:$0xff] }
 0x561   : > { %8076 = vst.msk [vmem:[#allocation4 + $0x31] sm:$0xff] %vm8017_vm4, %v7987_v35  ;;  %v7957_v16 = vadd.f32 %v18047_v24, %v7918_v25  ;;  %v15062_v6 = vadd.f32 %v7746_v4, %v19339_v22 }
 0x562   : > { %v7990_v0 = vmax.f32 %v7958_v58, 0.0  ;;  %v7921_v48 = vmul.f32 %v15061_v2, %v18041_v5 }
 0x563   : > { %v7989_v28 = vmax.f32 %v7957_v16, 0.0  ;;  %v7920_v14 = vmul.f32 %v15062_v6, %v18041_v5  ;;  %v14553_v8 = vpop.f32.mrb[12].mxu1  ;;  %v18084_v45 = vld [vmem:[#allocation4 + $0x21] sm:$0xff] }
 0x564   : > { %8079 = vst.msk [vmem:[#allocation4 + $0x51] sm:$0xff] %vm8017_vm4, %v7990_v0  ;;  %v7960_v26 = vadd.f32 %v18047_v24, %v7921_v48  ;;  %v15063_v29 = vadd.f32 %v14553_v8, %v19340_v42  ;;  %v7756_v31 = vpop.f32.mrb[13].mxu1  ;;  %v18077_v33 = vld [vmem:[#allocation4 + $0x19] sm:$0xff] }
 0x565   : > { %8078 = vst.msk [vmem:[#allocation4 + $0x49] sm:$0xff] %vm8017_vm4, %v7989_v28  ;;  %v7959_v36 = vadd.f32 %v18047_v24, %v7920_v14  ;;  %v15064_v40 = vadd.f32 %v7756_v31, %v19341_v38  ;;  %14592 = vmatprep.mubr.msk.f32.mxu0 %vm8017_vm4, %v18077_v33  ;;  %v19348_v48 = vld [vmem:[#allocation58_spill] sm:$0xff]  ;;  %v19349_v42 = vld [vmem:[#allocation59_spill] sm:$0xff] }
 0x566   : > { %v7992_v47 = vmax.f32 %v7960_v26, 0.0  ;;  %v7923_v53 = vmul.f32 %v15063_v29, %v18041_v5  ;;  %14593 = vmatmul.mubr.msk.f32.gmra.mrb[66].mxu0 %vm8017_vm4, %v18084_v45 }
 0x567   : > { %v7991_v55 = vmax.f32 %v7959_v36, 0.0  ;;  %v7922_v57 = vmul.f32 %v15064_v40, %v18041_v5  ;;  %v14556_v59 = vpop.f32.mrb[14].mxu1  ;;  %v18100_v46 = vld [vmem:[#allocation4 + $0x39] sm:$0xff] }
 0x568   : > { %8081 = vst.msk [vmem:[#allocation4 + $0x69] sm:$0xff] %vm8017_vm4, %v7992_v47  ;;  %v7962_v61 = vadd.f32 %v18047_v24, %v7923_v53  ;;  %v15065_v3 = vadd.f32 %v14556_v59, %v19342_v63  ;;  %v7766_v7 = vpop.f32.mrb[15].mxu1  ;;  %v18093_v9 = vld [vmem:[#allocation4 + $0x31] sm:$0xff] }
 0x569   : > { %8080 = vst.msk [vmem:[#allocation4 + $0x61] sm:$0xff] %vm8017_vm4, %v7991_v55  ;;  %v7961_v11 = vadd.f32 %v18047_v24, %v7922_v57  ;;  %v15066_v37 = vadd.f32 %v7766_v7, %v19343_v41  ;;  %14595 = vmatprep.mubr.msk.f32.mxu0 %vm8017_vm4, %v18093_v9  ;;  %v19350_v57 = vld [vmem:[#allocation60_spill] sm:$0xff]  ;;  %v19351_v7 = vld [vmem:[#allocation61_spill] sm:$0xff] }
 0x56a   : > { %v7994_v54 = vmax.f32 %v7962_v61, 0.0  ;;  %v7925_v19 = vmul.f32 %v15065_v3, %v18041_v5  ;;  %14596 = vmatmul.mubr.msk.f32.gmra.mrb[68].mxu0 %vm8017_vm4, %v18100_v46 }
 0x56b   : > { %v7993_v43 = vmax.f32 %v7961_v11, 0.0  ;;  %v7924_v62 = vmul.f32 %v15066_v37, %v18041_v5  ;;  %v14559_v50 = vpop.f32.mrb[16].mxu1  ;;  %v18116_v32 = vld [vmem:[#allocation4 + $0x51] sm:$0xff] }
 0x56c   : > { %8083 = vst.msk [vmem:[#allocation4 + $0x81] sm:$0xff] %vm8017_vm4, %v7994_v54  ;;  %v7964_v51 = vadd.f32 %v18047_v24, %v7925_v19  ;;  %v15067_v34 = vadd.f32 %v14559_v50, %v19344_v18  ;;  %v7776_v10 = vpop.f32.mrb[17].mxu1  ;;  %v18109_v12 = vld [vmem:[#allocation4 + $0x49] sm:$0xff] }
 0x56d   : > { %8082 = vst.msk [vmem:[#allocation4 + $0x79] sm:$0xff] %vm8017_vm4, %v7993_v43  ;;  %v7963_v49 = vadd.f32 %v18047_v24, %v7924_v62  ;;  %v15068_v15 = vadd.f32 %v7776_v10, %v19345_v13  ;;  %14598 = vmatprep.mubr.msk.f32.mxu0 %vm8017_vm4, %v18109_v12  ;;  %v19353_v13 = vld [vmem:[#allocation63_spill] sm:$0xff] }
 0x56e   : > { %v7996_v27 = vmax.f32 %v7964_v51, 0.0  ;;  %v7927_v17 = vmul.f32 %v15067_v34, %v18041_v5  ;;  %14599 = vmatmul.mubr.msk.f32.gmra.mrb[70].mxu0 %vm8017_vm4, %v18116_v32  ;;  %v19352_v51 = vld [vmem:[#allocation62_spill] sm:$0xff] }
 0x56f   : > { %v7995_v39 = vmax.f32 %v7963_v49, 0.0  ;;  %v7926_v21 = vmul.f32 %v15068_v15, %v18041_v5  ;;  %v14562_v44 = vpop.f32.mrb[18].mxu1  ;;  %v18132_v60 = vld [vmem:[#allocation4 + $0x69] sm:$0xff] }
 0x570   : > { %8085 = vst.msk [vmem:[#allocation4 + $0x99] sm:$0xff] %vm8017_vm4, %v7996_v27  ;;  %v7966_v52 = vadd.f32 %v18047_v24, %v7927_v17  ;;  %v15069_v30 = vadd.f32 %v14562_v44, %v19346_v23  ;;  %v7786_v20 = vpop.f32.mrb[19].mxu1  ;;  %v18125_v35 = vld [vmem:[#allocation4 + $0x61] sm:$0xff] }
 0x571   : > { %8084 = vst.msk [vmem:[#allocation4 + $0x91] sm:$0xff] %vm8017_vm4, %v7995_v39  ;;  %v7965_v25 = vadd.f32 %v18047_v24, %v7926_v21  ;;  %v15070_v58 = vadd.f32 %v7786_v20, %v19347_v56  ;;  %14601 = vmatprep.mubr.msk.f32.mxu0 %vm8017_vm4, %v18125_v35 }
 0x572   : > { %v7998_v2 = vmax.f32 %v7966_v52, 0.0  ;;  %v7929_v4 = vmul.f32 %v15069_v30, %v18041_v5  ;;  %14602 = vmatmul.mubr.msk.f32.gmra.mrb[72].mxu0 %vm8017_vm4, %v18132_v60  ;;  %v19354_v30 = vld [vmem:[#allocation64_spill] sm:$0xff] }
 0x573   : > { %v7997_v16 = vmax.f32 %v7965_v25, 0.0  ;;  %v7928_v22 = vmul.f32 %v15070_v58, %v18041_v5  ;;  %v14565_v6 = vpop.f32.mrb[20].mxu1  ;;  %v18148_v31 = vld [vmem:[#allocation4 + $0x81] sm:$0xff] }
 0x574   : > { %8087 = vst.msk [vmem:[#allocation4 + $0xb1] sm:$0xff] %vm8017_vm4, %v7998_v2  ;;  %v7968_v0 = vadd.f32 %v18047_v24, %v7929_v4  ;;  %v15071_v28 = vadd.f32 %v14565_v6, %v19348_v48  ;;  %v7796_v14 = vpop.f32.mrb[21].mxu1  ;;  %v18141_v8 = vld [vmem:[#allocation4 + $0x79] sm:$0xff]  ;;  %v19355_v2 = vld [vmem:[#allocation65_spill] sm:$0xff] }
 0x575   : > { %8086 = vst.msk [vmem:[#allocation4 + $0xa9] sm:$0xff] %vm8017_vm4, %v7997_v16  ;;  %v7967_v26 = vadd.f32 %v18047_v24, %v7928_v22  ;;  %v15072_v29 = vadd.f32 %v7796_v14, %v19349_v42  ;;  %14604 = vmatprep.mubr.msk.f32.mxu0 %vm8017_vm4, %v18141_v8 }
 0x576   : > { %v8000_v36 = vmax.f32 %v7968_v0, 0.0  ;;  %v7931_v38 = vmul.f32 %v15071_v28, %v18041_v5  ;;  %14605 = vmatmul.mubr.msk.f32.gmra.mrb[74].mxu0 %vm8017_vm4, %v18148_v31 }
 0x577   : > { %v7999_v40 = vmax.f32 %v7967_v26, 0.0  ;;  %v7930_v47 = vmul.f32 %v15072_v29, %v18041_v5  ;;  %v14568_v53 = vpop.f32.mrb[22].mxu1  ;;  %v18164_v41 = vld [vmem:[#allocation4 + $0x99] sm:$0xff] }
 0x578   : > { %8089 = vst.msk [vmem:[#allocation4 + $0xc9] sm:$0xff] %vm8017_vm4, %v8000_v36  ;;  %v7970_v55 = vadd.f32 %v18047_v24, %v7931_v38  ;;  %v15073_v59 = vadd.f32 %v14568_v53, %v19350_v57  ;;  %v7806_v61 = vpop.f32.mrb[23].mxu1  ;;  %v18157_v63 = vld [vmem:[#allocation4 + $0x91] sm:$0xff] }
 0x579   : > { %8088 = vst.msk [vmem:[#allocation4 + $0xc1] sm:$0xff] %vm8017_vm4, %v7999_v40  ;;  %v7969_v3 = vadd.f32 %v18047_v24, %v7930_v47  ;;  %v15074_v11 = vadd.f32 %v7806_v61, %v19351_v7  ;;  %14607 = vmatprep.mubr.msk.f32.mxu0 %vm8017_vm4, %v18157_v63  ;;  %v19356_v26 = vld [vmem:[#allocation66_spill] sm:$0xff]  ;;  %v19357_v40 = vld [vmem:[#allocation67_spill] sm:$0xff] }
 0x57a   : > { %v8002_v37 = vmax.f32 %v7970_v55, 0.0  ;;  %v7933_v54 = vmul.f32 %v15073_v59, %v18041_v5  ;;  %14608 = vmatmul.mubr.msk.f32.gmra.mrb[76].mxu0 %vm8017_vm4, %v18164_v41 }
 0x57b   : > { %v8001_v19 = vmax.f32 %v7969_v3, 0.0  ;;  %v7932_v43 = vmul.f32 %v15074_v11, %v18041_v5  ;;  %v14571_v62 = vpop.f32.mrb[24].mxu1  ;;  %v18180_v27 = vld [vmem:[#allocation4 + $0xb1] sm:$0xff]  ;;  %v19358_v11 = vld [vmem:[#allocation68_spill] sm:$0xff] }
 0x57c   : > { %8091 = vst.msk [vmem:[#allocation4 + $0xe1] sm:$0xff] %vm8017_vm4, %v8002_v37  ;;  %v7972_v50 = vadd.f32 %v18047_v24, %v7933_v54  ;;  %v15075_v18 = vadd.f32 %v14571_v62, %v19352_v51  ;;  %v7816_v34 = vpop.f32.mrb[25].mxu1  ;;  %v18173_v10 = vld [vmem:[#allocation4 + $0xa9] sm:$0xff] }
 0x57d   : > { %8090 = vst.msk [vmem:[#allocation4 + $0xd9] sm:$0xff] %vm8017_vm4, %v8001_v19  ;;  %v7971_v49 = vadd.f32 %v18047_v24, %v7932_v43  ;;  %v15076_v15 = vadd.f32 %v7816_v34, %v19353_v13  ;;  %14610 = vmatprep.mubr.msk.f32.mxu0 %vm8017_vm4, %v18173_v10  ;;  %v19359_v62 = vld [vmem:[#allocation69_spill] sm:$0xff] }
 0x57e   : > { %v8004_v17 = vmax.f32 %v7972_v50, 0.0  ;;  %v7935_v39 = vmul.f32 %v15075_v18, %v18041_v5  ;;  %14611 = vmatmul.mubr.msk.f32.gmra.mrb[78].mxu0 %vm8017_vm4, %v18180_v27 }
 0x57f   : > { %v8003_v21 = vmax.f32 %v7971_v49, 0.0  ;;  %v7934_v44 = vmul.f32 %v15076_v15, %v18041_v5  ;;  %v14574_v52 = vpop.f32.mrb[26].mxu1  ;;  %v18196_v16 = vld [vmem:[#allocation4 + $0xc9] sm:$0xff] }
 0x580   : > { %8093 = vst.msk [vmem:[#allocation4 + $0xf9] sm:$0xff] %vm8017_vm4, %v8004_v17  ;;  %v7974_v23 = vadd.f32 %v18047_v24, %v7935_v39  ;;  %v15077_v20 = vadd.f32 %v14574_v52, %v19354_v30  ;;  %v7826_v25 = vpop.f32.mrb[27].mxu1  ;;  %v18189_v56 = vld [vmem:[#allocation4 + $0xc1] sm:$0xff]  ;;  %v19360_v39 = vld [vmem:[#allocation9_spill] sm:$0xff]  ;;  %v19361_v30 = vld [vmem:[#allocation14_spill] sm:$0xff] }
 0x581   : > { %8092 = vst.msk [vmem:[#allocation4 + $0xf1] sm:$0xff] %vm8017_vm4, %v8003_v21  ;;  %v7973_v58 = vadd.f32 %v18047_v24, %v7934_v44  ;;  %v15078_v4 = vadd.f32 %v7826_v25, %v19355_v2  ;;  %14613 = vmatprep.mubr.msk.f32.mxu0 %vm8017_vm4, %v18189_v56 }
 0x582   : > { %v8006_v22 = vmax.f32 %v7974_v23, 0.0  ;;  %v7937_v6 = vmul.f32 %v15077_v20, %v18041_v5  ;;  %14614 = vmatmul.mubr.msk.f32.gmra.mrb[80].mxu0 %vm8017_vm4, %v18196_v16 }
 0x583   : > { %v8005_v0 = vmax.f32 %v7973_v58, 0.0  ;;  %v7936_v48 = vmul.f32 %v15078_v4, %v18041_v5  ;;  %v14577_v28 = vpop.f32.mrb[28].mxu1  ;;  %v18212_v53 = vld [vmem:[#allocation4 + $0xe1] sm:$0xff] }
 0x584   : > { %8095 = vst.msk [vmem:[#allocation4 + $0x111] sm:$0xff] %vm8017_vm4, %v8006_v22  ;;  %v7976_v14 = vadd.f32 %v18047_v24, %v7937_v6  ;;  %v15079_v42 = vadd.f32 %v14577_v28, %v19356_v26  ;;  %v7836_v29 = vpop.f32.mrb[29].mxu1  ;;  %v18205_v36 = vld [vmem:[#allocation4 + $0xd9] sm:$0xff] }
 0x585   : > { %8094 = vst.msk [vmem:[#allocation4 + $0x109] sm:$0xff] %vm8017_vm4, %v8005_v0  ;;  %v7975_v38 = vadd.f32 %v18047_v24, %v7936_v48  ;;  %v15080_v47 = vadd.f32 %v7836_v29, %v19357_v40  ;;  %14616 = vmatprep.mubr.msk.f32.mxu0 %vm8017_vm4, %v18205_v36  ;;  %v19362_v48 = vld [vmem:[#allocation40_spill] sm:$0xff]  ;;  %v19363_v29 = vld [vmem:[#allocation41_spill] sm:$0xff] }
 0x586   : > { %v8008_v55 = vmax.f32 %v7976_v14, 0.0  ;;  %v7939_v57 = vmul.f32 %v15079_v42, %v18041_v5  ;;  %14617 = vmatmul.mubr.msk.f32.gmra.mrb[82].mxu0 %vm8017_vm4, %v18212_v53 }
 0x587   : > { %v8007_v59 = vmax.f32 %v7975_v38, 0.0  ;;  %v7938_v61 = vmul.f32 %v15080_v47, %v18041_v5  ;;  %v14580_v3 = vpop.f32.mrb[30].mxu1  ;;  %v18228_v51 = vld [vmem:[#allocation4 + $0xf9] sm:$0xff] }
 0x588   : > { %8097 = vst.msk [vmem:[#allocation4 + $0x129] sm:$0xff] %vm8017_vm4, %v8008_v55  ;;  %v7978_v7 = vadd.f32 %v18047_v24, %v7939_v57  ;;  %v15081_v37 = vadd.f32 %v14580_v3, %v19358_v11  ;;  %v7846_v54 = vpop.f32.mrb[31].mxu1  ;;  %v18221_v19 = vld [vmem:[#allocation4 + $0xf1] sm:$0xff] }
 0x589   : > { %8096 = vst.msk [vmem:[#allocation4 + $0x121] sm:$0xff] %vm8017_vm4, %v8007_v59  ;;  %v7977_v43 = vadd.f32 %v18047_v24, %v7938_v61  ;;  %v15082_v50 = vadd.f32 %v7846_v54, %v19359_v62  ;;  %14619 = vmatprep.mubr.msk.f32.mxu0 %vm8017_vm4, %v18221_v19  ;;  %v8106_v62 = vld [vmem:[#allocation4] sm:$0xff] }
 0x58a   : > { %v8010_v18 = vmax.f32 %v7978_v7, 0.0  ;;  %v7941_v34 = vmul.f32 %v15081_v37, %v18041_v5  ;;  %14620 = vmatmul.mubr.msk.f32.gmra.mrb[84].mxu0 %vm8017_vm4, %v18228_v51 }
 0x58b   : > { %v8009_v49 = vmax.f32 %v7977_v43, 0.0  ;;  %v7940_v13 = vmul.f32 %v15082_v50, %v18041_v5  ;;  %v14583_v15 = vpop.f32.mrb[0].mxu1  ;;  %v18244_v25 = vld [vmem:[#allocation4 + $0x111] sm:$0xff] }
 0x58c   : > { %8099 = vst.msk [vmem:[#allocation4 + $0x141] sm:$0xff] %vm8017_vm4, %v8010_v18  ;;  %v7980_v17 = vadd.f32 %v18047_v24, %v7941_v34  ;;  %v15083_v21 = vadd.f32 %v14583_v15, %v19360_v39  ;;  %v7856_v44 = vpop.f32.mrb[1].mxu1  ;;  %v18237_v52 = vld [vmem:[#allocation4 + $0x109] sm:$0xff]  ;;  %v18300_v34 = vld [vmem:[%s19100_s7 + $0x18] sm:$0xff] }
 0x58d   : > { %8098 = vst.msk [vmem:[#allocation4 + $0x139] sm:$0xff] %vm8017_vm4, %v8009_v49  ;;  %v7979_v23 = vadd.f32 %v18047_v24, %v7940_v13  ;;  %v15084_v20 = vadd.f32 %v7856_v44, %v19361_v30  ;;  %14622 = vmatprep.mubr.msk.f32.mxu0 %vm8017_vm4, %v18237_v52  ;;  %v8107_v18 = vld [vmem:[#allocation4 + $0x8] sm:$0xff]  ;;  %v18303_v49 = vld [vmem:[#allocation4 + $0x18] sm:$0xff]  ;;  %v18309_v13 = vld [vmem:[#allocation4 + $0x20] sm:$0xff] }
 0x58e   : > { %v8012_v58 = vmax.f32 %v7980_v17, 0.0  ;;  %v7943_v2 = vmul.f32 %v15083_v21, %v18041_v5  ;;  %14623 = vmatmul.mubr.msk.f32.gmra.mrb[86].mxu0 %vm8017_vm4, %v18244_v25  ;;  %v18313_v15 = vld [vmem:[#allocation4 + $0x30] sm:$0xff]  ;;  %v18317_v17 = vld [vmem:[#allocation4 + $0x38] sm:$0xff]  ;;  %v18329_v21 = vld [vmem:[#allocation4 + $0x60] sm:$0xff] }
 0x58f   : > { %v8011_v4 = vmax.f32 %v7979_v23, 0.0  ;;  %v7942_v22 = vmul.f32 %v15084_v20, %v18041_v5  ;;  %v14586_v6 = vpop.f32.mrb[2].mxu1  ;;  %v18260_v40 = vld [vmem:[#allocation4 + $0x129] sm:$0xff]  ;;  %v18337_v23 = vld [vmem:[#allocation4 + $0x78] sm:$0xff]  ;;  %v18341_v30 = vld [vmem:[#allocation4 + $0x80] sm:$0xff] }
 0x590   : > { %8101 = vst.msk [vmem:[#allocation4 + $0x159] sm:$0xff] %vm8017_vm4, %v8012_v58  ;;  %v7982_v0 = vadd.f32 %v18047_v24, %v7943_v2  ;;  %v15085_v28 = vadd.f32 %v14586_v6, %v19362_v48  ;;  %v7866_v14 = vpop.f32.mrb[3].mxu1  ;;  %v18253_v26 = vld [vmem:[#allocation4 + $0x121] sm:$0xff]  ;;  %v18325_v39 = vld [vmem:[#allocation4 + $0x50] sm:$0xff]  ;;  %v18349_v58 = vld [vmem:[#allocation4 + $0x98] sm:$0xff] }
 0x591   : > { %8100 = vst.msk [vmem:[#allocation4 + $0x151] sm:$0xff] %vm8017_vm4, %v8011_v4  ;;  %v7981_v42 = vadd.f32 %v18047_v24, %v7942_v22  ;;  %v15086_v38 = vadd.f32 %v7866_v14, %v19363_v29  ;;  %14625 = vmatprep.mubr.msk.f32.mxu0 %vm8017_vm4, %v18253_v26  ;;  %v18333_v44 = vld [vmem:[#allocation4 + $0x68] sm:$0xff]  ;;  %v18345_v20 = vld [vmem:[#allocation4 + $0x90] sm:$0xff]  ;;  %v18361_v22 = vld [vmem:[#allocation4 + $0xc0] sm:$0xff] }
 0x592   : > { %v8014_v47 = vmax.f32 %v7982_v0, 0.0  ;;  %v7945_v55 = vmul.f32 %v15085_v28, %v18041_v5  ;;  %14626 = vmatmul.mubr.msk.f32.gmra.mrb[88].mxu0 %vm8017_vm4, %v18260_v40  ;;  %v18353_v2 = vld [vmem:[#allocation4 + $0xa8] sm:$0xff]  ;;  %v18357_v4 = vld [vmem:[#allocation4 + $0xb0] sm:$0xff]  ;;  %v18369_v0 = vld [vmem:[#allocation4 + $0xd8] sm:$0xff] }
 0x593   : > { %v8013_v57 = vmax.f32 %v7981_v42, 0.0  ;;  %v7944_v59 = vmul.f32 %v15086_v38, %v18041_v5  ;;  %v18274_v11 = vld [vmem:[#allocation4 + $0x141] sm:$0xff]  ;;  %v18377_v28 = vld [vmem:[#allocation4 + $0xf0] sm:$0xff]  ;;  %v18381_v14 = vld [vmem:[#allocation4 + $0xf8] sm:$0xff] }
 0x594   : > { %8103 = vst.msk [vmem:[#allocation4 + $0x171] sm:$0xff] %vm8017_vm4, %v8014_v47  ;;  %v7984_v61 = vadd.f32 %v18047_v24, %v7945_v55  ;;  %v18268_v3 = vld [vmem:[#allocation4 + $0x139] sm:$0xff]  ;;  %v18365_v6 = vld [vmem:[#allocation4 + $0xc8] sm:$0xff]  ;;  %v18389_v29 = vld [vmem:[#allocation4 + $0x110] sm:$0xff] }
 0x595   : > { %8102 = vst.msk [vmem:[#allocation4 + $0x169] sm:$0xff] %vm8017_vm4, %v8013_v57  ;;  %v7983_v7 = vadd.f32 %v18047_v24, %v7944_v59  ;;  %14628 = vmatprep.mubr.msk.f32.mxu0 %vm8017_vm4, %v18268_v3  ;;  %v18373_v48 = vld [vmem:[#allocation4 + $0xe0] sm:$0xff]  ;;  %v18385_v42 = vld [vmem:[#allocation4 + $0x108] sm:$0xff]  ;;  %v18401_v55 = vld [vmem:[#allocation4 + $0x138] sm:$0xff] }
 0x596   : > { %v8016_v37 = vmax.f32 %v7984_v61, 0.0  ;;  %14629 = vmatmul.mubr.msk.f32.gmra.mrb[90].mxu0 %vm8017_vm4, %v18274_v11  ;;  %v18393_v38 = vld [vmem:[#allocation4 + $0x120] sm:$0xff]  ;;  %v18397_v47 = vld [vmem:[#allocation4 + $0x128] sm:$0xff] }
 0x597   : > { %v8015_v5 = vmax.f32 %v7983_v7, 0.0  ;;  %v18284_v24 = vld [vmem:[#allocation4 + $0x159] sm:$0xff] }
 0x598   : > { %8105 = vst.msk [vmem:[#allocation4 + $0x189] sm:$0xff] %vm8017_vm4, %v8016_v37  ;;  %v18279_v54 = vld [vmem:[#allocation4 + $0x151] sm:$0xff]  ;;  %v18405_v57 = vld [vmem:[#allocation4 + $0x140] sm:$0xff] }
 0x599   : > { %8104 = vst.msk [vmem:[#allocation4 + $0x181] sm:$0xff] %vm8017_vm4, %v8015_v5  ;;  %14631 = vmatprep.mubr.msk.f32.mxu0 %vm8017_vm4, %v18279_v54  ;;  %v18409_v59 = vld [vmem:[#allocation4 + $0x150] sm:$0xff]  ;;  %v18413_v61 = vld [vmem:[#allocation4 + $0x158] sm:$0xff]  ;;  %v8815_v37 = vld [vmem:[#allocation4 + $0x2] sm:$0xff] }
 0x59a   : > { %14632 = vmatmul.mubr.msk.f32.gmra.mrb[92].mxu0 %vm8017_vm4, %v18284_v24 }
 0x59b   : > { %v18292_v50 = vld [vmem:[#allocation4 + $0x171] sm:$0xff] }
 0x59c   : > { %v18288_v43 = vld [vmem:[#allocation4 + $0x169] sm:$0xff]  ;;  %19365 = vst [vmem:[#allocation7_spill] sm:$0xff] %v18292_v50 }
 0x59d   : > { %19364 = vst [vmem:[#allocation6_spill] sm:$0xff] %v18288_v43  ;;  %14634 = vmatprep.mubr.msk.f32.mxu0 %vm8017_vm4, %v18288_v43  ;;  %v18417_v7 = vld [vmem:[#allocation4 + $0x168] sm:$0xff]  ;;  %v18421_v5 = vld [vmem:[#allocation4 + $0x170] sm:$0xff] }
 0x59e   : > { %14635 = vmatmul.mubr.msk.f32.gmra.mrb[94].mxu0 %vm8017_vm4, %v18292_v50  ;;  %v18432_v50 = vld [vmem:[#allocation4 + $0x1a] sm:$0xff]  ;;  %v18438_v43 = vld [vmem:[#allocation4 + $0x22] sm:$0xff] }
 0x59f   : > { %14639 = vmatprep.mubr.msk.f32.mxu0 %vm8017_vm4, %v8106_v62  ;;  %v8816_v62 = vld [vmem:[#allocation4 + $0xa] sm:$0xff]  ;;  %19366 = vst [vmem:[#allocation8_spill] sm:$0xff] %v18432_v50  ;;  %19367 = vst [vmem:[#allocation10_spill] sm:$0xff] %v18438_v43 }
 0x5a2   : > { %14640 = vmatmul.mubr.msk.f32.vlgmr.msra.gmra.mrb[64].mxu0 %vm8017_vm4, %v8107_v18  ;;  %v18429_v18 = vld [vmem:[%s19100_s7 + $0x20] sm:$0xff] }
 0x5a3   : > { %14688 = vmatpush3.msra.mxu0 %v18035_v1  ;;  %14642 = vmatprep.mubr.msk.f32.mxu0 %vm8017_vm4, %v18303_v49  ;;  %v18321_v1 = vld [vmem:[#allocation4 + $0x48] sm:$0xff] }
 0x5a4   : > { %14737 = vmatprep.subr.mxu0 %v18300_v34 }
 0x5a6   : > { %14643 = vmatmul.mubr.msk.f32.gmra.mrb[66].mxu0 %vm8017_vm4, %v18309_v13 }
 0x5a7   : > { %14645 = vmatprep.mubr.msk.f32.mxu0 %vm8017_vm4, %v18313_v15 }
 0x5aa   : > { %14646 = vmatmul.mubr.msk.f32.gmra.mrb[68].mxu0 %vm8017_vm4, %v18317_v17 }
 0x5ab   : > { %14648 = vmatprep.mubr.msk.f32.mxu0 %vm8017_vm4, %v18321_v1 }
 0x5ae   : > { %14649 = vmatmul.mubr.msk.f32.gmra.mrb[70].mxu0 %vm8017_vm4, %v18325_v39 }
 0x5af   : > { %14651 = vmatprep.mubr.msk.f32.mxu0 %vm8017_vm4, %v18329_v21 }
 0x5b2   : > { %14652 = vmatmul.mubr.msk.f32.gmra.mrb[72].mxu0 %vm8017_vm4, %v18333_v44 }
 0x5b3   : > { %14654 = vmatprep.mubr.msk.f32.mxu0 %vm8017_vm4, %v18337_v23 }
 0x5b6   : > { %14655 = vmatmul.mubr.msk.f32.gmra.mrb[74].mxu0 %vm8017_vm4, %v18341_v30 }
 0x5b7   : > { %14657 = vmatprep.mubr.msk.f32.mxu0 %vm8017_vm4, %v18345_v20 }
 0x5ba   : > { %14658 = vmatmul.mubr.msk.f32.gmra.mrb[76].mxu0 %vm8017_vm4, %v18349_v58 }
 0x5bb   : > { %14660 = vmatprep.mubr.msk.f32.mxu0 %vm8017_vm4, %v18353_v2 }
 0x5be   : > { %14661 = vmatmul.mubr.msk.f32.gmra.mrb[78].mxu0 %vm8017_vm4, %v18357_v4 }
 0x5bf   : > { %14663 = vmatprep.mubr.msk.f32.mxu0 %vm8017_vm4, %v18361_v22 }
 0x5c2   : > { %14664 = vmatmul.mubr.msk.f32.gmra.mrb[80].mxu0 %vm8017_vm4, %v18365_v6 }
 0x5c3   : > { %14666 = vmatprep.mubr.msk.f32.mxu0 %vm8017_vm4, %v18369_v0 }
 0x5c6   : > { %14667 = vmatmul.mubr.msk.f32.gmra.mrb[82].mxu0 %vm8017_vm4, %v18373_v48 }
 0x5c7   : > { %14669 = vmatprep.mubr.msk.f32.mxu0 %vm8017_vm4, %v18377_v28 }
 0x5ca   : > { %14670 = vmatmul.mubr.msk.f32.gmra.mrb[84].mxu0 %vm8017_vm4, %v18381_v14 }
 0x5cb   : > { %14672 = vmatprep.mubr.msk.f32.mxu0 %vm8017_vm4, %v18385_v42 }
 0x5ce   : > { %14673 = vmatmul.mubr.msk.f32.gmra.mrb[86].mxu0 %vm8017_vm4, %v18389_v29 }
 0x5cf   : > { %14675 = vmatprep.mubr.msk.f32.mxu0 %vm8017_vm4, %v18393_v38 }
 0x5d2   : > { %14676 = vmatmul.mubr.msk.f32.gmra.mrb[88].mxu0 %vm8017_vm4, %v18397_v47 }
 0x5d3   : > { %14678 = vmatprep.mubr.msk.f32.mxu0 %vm8017_vm4, %v18401_v55 }
 0x5d6   : > { %14679 = vmatmul.mubr.msk.f32.gmra.mrb[90].mxu0 %vm8017_vm4, %v18405_v57 }
 0x5d7   : > { %14681 = vmatprep.mubr.msk.f32.mxu0 %vm8017_vm4, %v18409_v59 }
 0x5da   : > { %14682 = vmatmul.mubr.msk.f32.gmra.mrb[92].mxu0 %vm8017_vm4, %v18413_v61 }
 0x5db   : > { %14684 = vmatprep.mubr.msk.f32.mxu0 %vm8017_vm4, %v18417_v7 }
 0x5de   : > { %14685 = vmatmul.mubr.msk.f32.gmra.mrb[94].mxu0 %vm8017_vm4, %v18421_v5 }
 0x5df   : > { %14689 = vmatprep.mubr.msk.f32.mxu0 %vm8017_vm4, %v8815_v37  ;;  %v18442_v37 = vld [vmem:[#allocation4 + $0x32] sm:$0xff] }
 0x5e0   : > { %19368 = vst [vmem:[#allocation11_spill] sm:$0xff] %v18442_v37 }
 0x5e2   : > { %14690 = vmatmul.mubr.msk.f32.vlgmr.msra.gmra.mrb[64].mxu0 %vm8017_vm4, %v8816_v62  ;;  %v18446_v62 = vld [vmem:[#allocation4 + $0x3a] sm:$0xff] }
 0x5e3   : > { %14738 = vmatpush3.msra.mxu0 %v18300_v34  ;;  %14692 = vmatprep.mubr.msk.f32.mxu0 %vm8017_vm4, %v18432_v50  ;;  %19369 = vst [vmem:[#allocation12_spill] sm:$0xff] %v18446_v62  ;;  %v18450_v34 = vld [vmem:[#allocation4 + $0x4a] sm:$0xff]  ;;  %v18454_v50 = vld [vmem:[#allocation4 + $0x52] sm:$0xff] }
 0x5e4   : > { %14787 = vmatprep.subr.mxu0 %v18429_v18  ;;  %19370 = vst [vmem:[#allocation13_spill] sm:$0xff] %v18450_v34  ;;  %19371 = vst [vmem:[#allocation15_spill] sm:$0xff] %v18454_v50 }
 0x5e6   : > { %14693 = vmatmul.mubr.msk.f32.gmra.mrb[66].mxu0 %vm8017_vm4, %v18438_v43  ;;  %v18458_v43 = vld [vmem:[#allocation4 + $0x62] sm:$0xff] }
 0x5e7   : > { %14695 = vmatprep.mubr.msk.f32.mxu0 %vm8017_vm4, %v18442_v37  ;;  %19372 = vst [vmem:[#allocation16_spill] sm:$0xff] %v18458_v43  ;;  %v18462_v37 = vld [vmem:[#allocation4 + $0x6a] sm:$0xff] }
 0x5e8   : > { %19373 = vst [vmem:[#allocation17_spill] sm:$0xff] %v18462_v37 }
 0x5ea   : > { %14696 = vmatmul.mubr.msk.f32.gmra.mrb[68].mxu0 %vm8017_vm4, %v18446_v62  ;;  %v18466_v62 = vld [vmem:[#allocation4 + $0x7a] sm:$0xff] }
 0x5eb   : > { %14698 = vmatprep.mubr.msk.f32.mxu0 %vm8017_vm4, %v18450_v34  ;;  %19374 = vst [vmem:[#allocation18_spill] sm:$0xff] %v18466_v62  ;;  %v18470_v34 = vld [vmem:[#allocation4 + $0x82] sm:$0xff] }
 0x5ec   : > { %19375 = vst [vmem:[#allocation19_spill] sm:$0xff] %v18470_v34 }
 0x5ee   : > { %14699 = vmatmul.mubr.msk.f32.gmra.mrb[70].mxu0 %vm8017_vm4, %v18454_v50  ;;  %v18474_v50 = vld [vmem:[#allocation4 + $0x92] sm:$0xff] }
 0x5ef   : > { %14701 = vmatprep.mubr.msk.f32.mxu0 %vm8017_vm4, %v18458_v43  ;;  %19376 = vst [vmem:[#allocation20_spill] sm:$0xff] %v18474_v50  ;;  %v18478_v43 = vld [vmem:[#allocation4 + $0x9a] sm:$0xff] }
 0x5f0   : > { %19377 = vst [vmem:[#allocation21_spill] sm:$0xff] %v18478_v43 }
 0x5f2   : > { %14702 = vmatmul.mubr.msk.f32.gmra.mrb[72].mxu0 %vm8017_vm4, %v18462_v37  ;;  %v18482_v37 = vld [vmem:[#allocation4 + $0xaa] sm:$0xff] }
 0x5f3   : > { %14704 = vmatprep.mubr.msk.f32.mxu0 %vm8017_vm4, %v18466_v62  ;;  %19378 = vst [vmem:[#allocation22_spill] sm:$0xff] %v18482_v37  ;;  %v18486_v62 = vld [vmem:[#allocation4 + $0xb2] sm:$0xff] }
 0x5f4   : > { %19379 = vst [vmem:[#allocation23_spill] sm:$0xff] %v18486_v62 }
 0x5f6   : > { %14705 = vmatmul.mubr.msk.f32.gmra.mrb[74].mxu0 %vm8017_vm4, %v18470_v34  ;;  %v18490_v34 = vld [vmem:[#allocation4 + $0xc2] sm:$0xff] }
 0x5f7   : > { %14707 = vmatprep.mubr.msk.f32.mxu0 %vm8017_vm4, %v18474_v50  ;;  %19380 = vst [vmem:[#allocation24_spill] sm:$0xff] %v18490_v34  ;;  %v18494_v50 = vld [vmem:[#allocation4 + $0xca] sm:$0xff] }
 0x5f8   : > { %19381 = vst [vmem:[#allocation25_spill] sm:$0xff] %v18494_v50 }
 0x5fa   : > { %14708 = vmatmul.mubr.msk.f32.gmra.mrb[76].mxu0 %vm8017_vm4, %v18478_v43  ;;  %v18498_v43 = vld [vmem:[#allocation4 + $0xda] sm:$0xff] }
 0x5fb   : > { %14710 = vmatprep.mubr.msk.f32.mxu0 %vm8017_vm4, %v18482_v37  ;;  %19382 = vst [vmem:[#allocation26_spill] sm:$0xff] %v18498_v43  ;;  %v18502_v37 = vld [vmem:[#allocation4 + $0xe2] sm:$0xff] }
 0x5fc   : > { %19383 = vst [vmem:[#allocation27_spill] sm:$0xff] %v18502_v37 }
 0x5fe   : > { %14711 = vmatmul.mubr.msk.f32.gmra.mrb[78].mxu0 %vm8017_vm4, %v18486_v62  ;;  %v18506_v62 = vld [vmem:[#allocation4 + $0xf2] sm:$0xff] }
 0x5ff   : > { %14713 = vmatprep.mubr.msk.f32.mxu0 %vm8017_vm4, %v18490_v34  ;;  %19384 = vst [vmem:[#allocation28_spill] sm:$0xff] %v18506_v62  ;;  %v18510_v34 = vld [vmem:[#allocation4 + $0xfa] sm:$0xff] }
 0x600   : > { %19385 = vst [vmem:[#allocation29_spill] sm:$0xff] %v18510_v34 }
 0x602   : > { %14714 = vmatmul.mubr.msk.f32.gmra.mrb[80].mxu0 %vm8017_vm4, %v18494_v50  ;;  %v18514_v50 = vld [vmem:[#allocation4 + $0x10a] sm:$0xff] }
 0x603   : > { %14716 = vmatprep.mubr.msk.f32.mxu0 %vm8017_vm4, %v18498_v43  ;;  %19386 = vst [vmem:[#allocation30_spill] sm:$0xff] %v18514_v50  ;;  %v18518_v43 = vld [vmem:[#allocation4 + $0x112] sm:$0xff] }
 0x604   : > { %19387 = vst [vmem:[#allocation31_spill] sm:$0xff] %v18518_v43 }
 0x606   : > { %14717 = vmatmul.mubr.msk.f32.gmra.mrb[82].mxu0 %vm8017_vm4, %v18502_v37  ;;  %v18522_v37 = vld [vmem:[#allocation4 + $0x122] sm:$0xff] }
 0x607   : > { %14719 = vmatprep.mubr.msk.f32.mxu0 %vm8017_vm4, %v18506_v62  ;;  %19388 = vst [vmem:[#allocation32_spill] sm:$0xff] %v18522_v37  ;;  %v18526_v62 = vld [vmem:[#allocation4 + $0x12a] sm:$0xff] }
 0x608   : > { %19389 = vst [vmem:[#allocation33_spill] sm:$0xff] %v18526_v62 }
 0x60a   : > { %14720 = vmatmul.mubr.msk.f32.gmra.mrb[84].mxu0 %vm8017_vm4, %v18510_v34  ;;  %v18530_v34 = vld [vmem:[#allocation4 + $0x13a] sm:$0xff] }
 0x60b   : > { %14722 = vmatprep.mubr.msk.f32.mxu0 %vm8017_vm4, %v18514_v50  ;;  %19390 = vst [vmem:[#allocation34_spill] sm:$0xff] %v18530_v34  ;;  %v18534_v50 = vld [vmem:[#allocation4 + $0x142] sm:$0xff] }
 0x60e   : > { %14723 = vmatmul.mubr.msk.f32.gmra.mrb[86].mxu0 %vm8017_vm4, %v18518_v43  ;;  %v18538_v43 = vld [vmem:[#allocation4 + $0x152] sm:$0xff] }
 0x60f   : > { %14725 = vmatprep.mubr.msk.f32.mxu0 %vm8017_vm4, %v18522_v37  ;;  %19391 = vst [vmem:[#allocation35_spill] sm:$0xff] %v18538_v43  ;;  %v18542_v37 = vld [vmem:[#allocation4 + $0x15a] sm:$0xff] }
 0x612   : > { %14726 = vmatmul.mubr.msk.f32.gmra.mrb[88].mxu0 %vm8017_vm4, %v18526_v62  ;;  %v18546_v62 = vld [vmem:[#allocation4 + $0x16a] sm:$0xff] }
 0x613   : > { %14728 = vmatprep.mubr.msk.f32.mxu0 %vm8017_vm4, %v18530_v34  ;;  %19392 = vst [vmem:[#allocation36_spill] sm:$0xff] %v18546_v62  ;;  %v18550_v34 = vld [vmem:[#allocation4 + $0x172] sm:$0xff] }
 0x616   : > { %14729 = vmatmul.mubr.msk.f32.gmra.mrb[90].mxu0 %vm8017_vm4, %v18534_v50 }
 0x617   : > { %14731 = vmatprep.mubr.msk.f32.mxu0 %vm8017_vm4, %v18538_v43  ;;  %v12553_v43 = vld [vmem:[%s19100_s7 + $0x28] sm:$0xff] }
 0x61a   : > { %14732 = vmatmul.mubr.msk.f32.gmra.mrb[92].mxu0 %vm8017_vm4, %v18542_v37 }
 0x61b   : > { %14734 = vmatprep.mubr.msk.f32.mxu0 %vm8017_vm4, %v18546_v62 }
 0x61e   : > { %14735 = vmatmul.mubr.msk.f32.gmra.mrb[94].mxu0 %vm8017_vm4, %v18550_v34 }
 0x61f   : > { %14739 = vmatprep.mubr.msk.f32.mxu0 %vm8017_vm4, %v18303_v49  ;;  %v18618_v49 = vld [vmem:[#allocation4 + $0x180] sm:$0xff] }
 0x622   : > { %14740 = vmatmul.mubr.msk.f32.vlgmr.msra.gmra.mrb[64].mxu0 %vm8017_vm4, %v18309_v13  ;;  %v18622_v13 = vld [vmem:[#allocation4 + $0x188] sm:$0xff] }
 0x623   : > { %14788 = vmatpush3.msra.mxu0 %v18429_v18  ;;  %14742 = vmatprep.mubr.msk.f32.mxu0 %vm8017_vm4, %v18313_v15  ;;  %v12586_v18 = vld [vmem:[%s19100_s7 + $0x30] sm:$0xff] }
 0x624   : > { %14837 = vmatprep.subr.mxu0 %v12553_v43 }
 0x626   : > { %14743 = vmatmul.mubr.msk.f32.gmra.mrb[66].mxu0 %vm8017_vm4, %v18317_v17 }
 0x627   : > { %14745 = vmatprep.mubr.msk.f32.mxu0 %vm8017_vm4, %v18321_v1 }
 0x62a   : > { %14746 = vmatmul.mubr.msk.f32.gmra.mrb[68].mxu0 %vm8017_vm4, %v18325_v39 }
 0x62b   : > { %14748 = vmatprep.mubr.msk.f32.mxu0 %vm8017_vm4, %v18329_v21 }
 0x62e   : > { %14749 = vmatmul.mubr.msk.f32.gmra.mrb[70].mxu0 %vm8017_vm4, %v18333_v44 }
 0x62f   : > { %14751 = vmatprep.mubr.msk.f32.mxu0 %vm8017_vm4, %v18337_v23 }
 0x632   : > { %14752 = vmatmul.mubr.msk.f32.gmra.mrb[72].mxu0 %vm8017_vm4, %v18341_v30 }
 0x633   : > { %14754 = vmatprep.mubr.msk.f32.mxu0 %vm8017_vm4, %v18345_v20 }
 0x636   : > { %14755 = vmatmul.mubr.msk.f32.gmra.mrb[74].mxu0 %vm8017_vm4, %v18349_v58 }
 0x637   : > { %14757 = vmatprep.mubr.msk.f32.mxu0 %vm8017_vm4, %v18353_v2 }
 0x63a   : > { %14758 = vmatmul.mubr.msk.f32.gmra.mrb[76].mxu0 %vm8017_vm4, %v18357_v4 }
 0x63b   : > { %14760 = vmatprep.mubr.msk.f32.mxu0 %vm8017_vm4, %v18361_v22 }
 0x63e   : > { %14761 = vmatmul.mubr.msk.f32.gmra.mrb[78].mxu0 %vm8017_vm4, %v18365_v6 }
 0x63f   : > { %14763 = vmatprep.mubr.msk.f32.mxu0 %vm8017_vm4, %v18369_v0 }
 0x642   : > { %14764 = vmatmul.mubr.msk.f32.gmra.mrb[80].mxu0 %vm8017_vm4, %v18373_v48 }
 0x643   : > { %14766 = vmatprep.mubr.msk.f32.mxu0 %vm8017_vm4, %v18377_v28 }
 0x646   : > { %14767 = vmatmul.mubr.msk.f32.gmra.mrb[82].mxu0 %vm8017_vm4, %v18381_v14 }
 0x647   : > { %14769 = vmatprep.mubr.msk.f32.mxu0 %vm8017_vm4, %v18385_v42 }
 0x64a   : > { %14770 = vmatmul.mubr.msk.f32.gmra.mrb[84].mxu0 %vm8017_vm4, %v18389_v29 }
 0x64b   : > { %14772 = vmatprep.mubr.msk.f32.mxu0 %vm8017_vm4, %v18393_v38 }
 0x64e   : > { %14773 = vmatmul.mubr.msk.f32.gmra.mrb[86].mxu0 %vm8017_vm4, %v18397_v47 }
 0x64f   : > { %14775 = vmatprep.mubr.msk.f32.mxu0 %vm8017_vm4, %v18401_v55 }
 0x652   : > { %14776 = vmatmul.mubr.msk.f32.gmra.mrb[88].mxu0 %vm8017_vm4, %v18405_v57 }
 0x653   : > { %14778 = vmatprep.mubr.msk.f32.mxu0 %vm8017_vm4, %v18409_v59 }
 0x656   : > { %14779 = vmatmul.mubr.msk.f32.gmra.mrb[90].mxu0 %vm8017_vm4, %v18413_v61 }
 0x657   : > { %14781 = vmatprep.mubr.msk.f32.mxu0 %vm8017_vm4, %v18417_v7 }
 0x65a   : > { %14782 = vmatmul.mubr.msk.f32.gmra.mrb[92].mxu0 %vm8017_vm4, %v18421_v5 }
 0x65b   : > { %14784 = vmatprep.mubr.msk.f32.mxu0 %vm8017_vm4, %v18618_v49 }
 0x65e   : > { %14785 = vmatmul.mubr.msk.f32.gmra.mrb[94].mxu0 %vm8017_vm4, %v18622_v13 }
 0x65f   : > { %14789 = vmatprep.mubr.msk.f32.mxu0 %vm8017_vm4, %v18077_v33  ;;  %v19393_v33 = vld [vmem:[#allocation6_spill] sm:$0xff] }
 0x662   : > { %14790 = vmatmul.mubr.msk.f32.vlgmr.msra.gmra.mrb[64].mxu0 %vm8017_vm4, %v18084_v45  ;;  %v19394_v45 = vld [vmem:[#allocation7_spill] sm:$0xff] }
 0x663   : > { %14838 = vmatpush3.msra.mxu0 %v12553_v43  ;;  %14792 = vmatprep.mubr.msk.f32.mxu0 %vm8017_vm4, %v18093_v9  ;;  %v18689_v9 = vld [vmem:[#allocation4 + $0x181] sm:$0xff] }
 0x664   : > { %14887 = vmatprep.subr.mxu0 %v12586_v18  ;;  %v19404_v43 = vld [vmem:[#allocation19_spill] sm:$0xff] }
 0x666   : > { %14793 = vmatmul.mubr.msk.f32.gmra.mrb[66].mxu0 %vm8017_vm4, %v18100_v46  ;;  %v18693_v46 = vld [vmem:[#allocation4 + $0x189] sm:$0xff] }
 0x667   : > { %14795 = vmatprep.mubr.msk.f32.mxu0 %vm8017_vm4, %v18109_v12  ;;  %v19395_v12 = vld [vmem:[#allocation8_spill] sm:$0xff] }
 0x66a   : > { %14796 = vmatmul.mubr.msk.f32.gmra.mrb[68].mxu0 %vm8017_vm4, %v18116_v32  ;;  %v12619_v32 = vld [vmem:[%s19100_s7 + $0x38] sm:$0xff] }
 0x66b   : > { %14798 = vmatprep.mubr.msk.f32.mxu0 %vm8017_vm4, %v18125_v35  ;;  %v19396_v35 = vld [vmem:[#allocation10_spill] sm:$0xff] }
 0x66e   : > { %14799 = vmatmul.mubr.msk.f32.gmra.mrb[70].mxu0 %vm8017_vm4, %v18132_v60  ;;  %v19397_v60 = vld [vmem:[#allocation11_spill] sm:$0xff] }
 0x66f   : > { %14801 = vmatprep.mubr.msk.f32.mxu0 %vm8017_vm4, %v18141_v8  ;;  %v19398_v8 = vld [vmem:[#allocation12_spill] sm:$0xff] }
 0x672   : > { %14802 = vmatmul.mubr.msk.f32.gmra.mrb[72].mxu0 %vm8017_vm4, %v18148_v31  ;;  %v19399_v31 = vld [vmem:[#allocation13_spill] sm:$0xff] }
 0x673   : > { %14804 = vmatprep.mubr.msk.f32.mxu0 %vm8017_vm4, %v18157_v63  ;;  %v19400_v63 = vld [vmem:[#allocation15_spill] sm:$0xff] }
 0x676   : > { %14805 = vmatmul.mubr.msk.f32.gmra.mrb[74].mxu0 %vm8017_vm4, %v18164_v41  ;;  %v19401_v41 = vld [vmem:[#allocation16_spill] sm:$0xff] }
 0x677   : > { %14807 = vmatprep.mubr.msk.f32.mxu0 %vm8017_vm4, %v18173_v10  ;;  %v19402_v10 = vld [vmem:[#allocation17_spill] sm:$0xff] }
 0x67a   : > { %14808 = vmatmul.mubr.msk.f32.gmra.mrb[76].mxu0 %vm8017_vm4, %v18180_v27  ;;  %v19403_v27 = vld [vmem:[#allocation18_spill] sm:$0xff] }
 0x67b   : > { %14810 = vmatprep.mubr.msk.f32.mxu0 %vm8017_vm4, %v18189_v56 }
 0x67e   : > { %14811 = vmatmul.mubr.msk.f32.gmra.mrb[78].mxu0 %vm8017_vm4, %v18196_v16 }
 0x67f   : > { %14813 = vmatprep.mubr.msk.f32.mxu0 %vm8017_vm4, %v18205_v36 }
 0x682   : > { %14814 = vmatmul.mubr.msk.f32.gmra.mrb[80].mxu0 %vm8017_vm4, %v18212_v53 }
 0x683   : > { %14816 = vmatprep.mubr.msk.f32.mxu0 %vm8017_vm4, %v18221_v19 }
 0x686   : > { %14817 = vmatmul.mubr.msk.f32.gmra.mrb[82].mxu0 %vm8017_vm4, %v18228_v51 }
 0x687   : > { %14819 = vmatprep.mubr.msk.f32.mxu0 %vm8017_vm4, %v18237_v52 }
 0x68a   : > { %14820 = vmatmul.mubr.msk.f32.gmra.mrb[84].mxu0 %vm8017_vm4, %v18244_v25 }
 0x68b   : > { %14822 = vmatprep.mubr.msk.f32.mxu0 %vm8017_vm4, %v18253_v26 }
 0x68e   : > { %14823 = vmatmul.mubr.msk.f32.gmra.mrb[86].mxu0 %vm8017_vm4, %v18260_v40 }
 0x68f   : > { %14825 = vmatprep.mubr.msk.f32.mxu0 %vm8017_vm4, %v18268_v3 }
 0x692   : > { %14826 = vmatmul.mubr.msk.f32.gmra.mrb[88].mxu0 %vm8017_vm4, %v18274_v11 }
 0x693   : > { %14828 = vmatprep.mubr.msk.f32.mxu0 %vm8017_vm4, %v18279_v54 }
 0x696   : > { %14829 = vmatmul.mubr.msk.f32.gmra.mrb[90].mxu0 %vm8017_vm4, %v18284_v24 }
 0x697   : > { %14831 = vmatprep.mubr.msk.f32.mxu0 %vm8017_vm4, %v19393_v33 }
 0x69a   : > { %14832 = vmatmul.mubr.msk.f32.gmra.mrb[92].mxu0 %vm8017_vm4, %v19394_v45 }
 0x69b   : > { %14834 = vmatprep.mubr.msk.f32.mxu0 %vm8017_vm4, %v18689_v9 }
 0x69e   : > { %14835 = vmatmul.mubr.msk.f32.gmra.mrb[94].mxu0 %vm8017_vm4, %v18693_v46 }
 0x69f   : > { %14839 = vmatprep.mubr.msk.f32.mxu0 %vm8017_vm4, %v19395_v12  ;;  %v19406_v12 = vld [vmem:[#allocation21_spill] sm:$0xff] }
 0x6a2   : > { %14840 = vmatmul.mubr.msk.f32.vlgmr.msra.gmra.mrb[64].mxu0 %vm8017_vm4, %v19396_v35  ;;  %v19407_v35 = vld [vmem:[#allocation22_spill] sm:$0xff] }
 0x6a3   : > { %14888 = vmatpush3.msra.mxu0 %v12586_v18  ;;  %14842 = vmatprep.mubr.msk.f32.mxu0 %vm8017_vm4, %v19397_v60  ;;  %v19405_v18 = vld [vmem:[#allocation20_spill] sm:$0xff] }
 0x6a4   : > { %14937 = vmatprep.subr.mxu0 %v12619_v32 }
 0x6a6   : > { %14843 = vmatmul.mubr.msk.f32.gmra.mrb[66].mxu0 %vm8017_vm4, %v19398_v8 }
 0x6a7   : > { %14845 = vmatprep.mubr.msk.f32.mxu0 %vm8017_vm4, %v19399_v31 }
 0x6aa   : > { %14846 = vmatmul.mubr.msk.f32.gmra.mrb[68].mxu0 %vm8017_vm4, %v19400_v63  ;;  %v19408_v63 = vld [vmem:[#allocation23_spill] sm:$0xff] }
 0x6ab   : > { %14848 = vmatprep.mubr.msk.f32.mxu0 %vm8017_vm4, %v19401_v41  ;;  %v19409_v41 = vld [vmem:[#allocation24_spill] sm:$0xff] }
 0x6ae   : > { %14849 = vmatmul.mubr.msk.f32.gmra.mrb[70].mxu0 %vm8017_vm4, %v19402_v10  ;;  %v19410_v10 = vld [vmem:[#allocation25_spill] sm:$0xff] }
 0x6af   : > { %14851 = vmatprep.mubr.msk.f32.mxu0 %vm8017_vm4, %v19403_v27  ;;  %v19411_v27 = vld [vmem:[#allocation26_spill] sm:$0xff] }
 0x6b2   : > { %14852 = vmatmul.mubr.msk.f32.gmra.mrb[72].mxu0 %vm8017_vm4, %v19404_v43  ;;  %v19412_v43 = vld [vmem:[#allocation27_spill] sm:$0xff] }
 0x6b3   : > { %14854 = vmatprep.mubr.msk.f32.mxu0 %vm8017_vm4, %v19405_v18  ;;  %v19413_v18 = vld [vmem:[#allocation28_spill] sm:$0xff] }
 0x6b6   : > { %14855 = vmatmul.mubr.msk.f32.gmra.mrb[74].mxu0 %vm8017_vm4, %v19406_v12  ;;  %v19414_v12 = vld [vmem:[#allocation29_spill] sm:$0xff] }
 0x6b7   : > { %14857 = vmatprep.mubr.msk.f32.mxu0 %vm8017_vm4, %v19407_v35  ;;  %v19415_v35 = vld [vmem:[#allocation30_spill] sm:$0xff] }
 0x6ba   : > { %14858 = vmatmul.mubr.msk.f32.gmra.mrb[76].mxu0 %vm8017_vm4, %v19408_v63  ;;  %v19416_v63 = vld [vmem:[#allocation31_spill] sm:$0xff] }
 0x6bb   : > { %14860 = vmatprep.mubr.msk.f32.mxu0 %vm8017_vm4, %v19409_v41  ;;  %v19417_v41 = vld [vmem:[#allocation32_spill] sm:$0xff] }
 0x6be   : > { %14861 = vmatmul.mubr.msk.f32.gmra.mrb[78].mxu0 %vm8017_vm4, %v19410_v10  ;;  %v19418_v10 = vld [vmem:[#allocation33_spill] sm:$0xff] }
 0x6bf   : > { %14863 = vmatprep.mubr.msk.f32.mxu0 %vm8017_vm4, %v19411_v27  ;;  %v19419_v27 = vld [vmem:[#allocation34_spill] sm:$0xff] }
 0x6c2   : > { %14864 = vmatmul.mubr.msk.f32.gmra.mrb[80].mxu0 %vm8017_vm4, %v19412_v43 }
 0x6c3   : > { %14866 = vmatprep.mubr.msk.f32.mxu0 %vm8017_vm4, %v19413_v18  ;;  %v19420_v18 = vld [vmem:[#allocation35_spill] sm:$0xff] }
 0x6c6   : > { %14867 = vmatmul.mubr.msk.f32.gmra.mrb[82].mxu0 %vm8017_vm4, %v19414_v12 }
 0x6c7   : > { %14869 = vmatprep.mubr.msk.f32.mxu0 %vm8017_vm4, %v19415_v35 }
 0x6ca   : > { %14870 = vmatmul.mubr.msk.f32.gmra.mrb[84].mxu0 %vm8017_vm4, %v19416_v63 }
 0x6cb   : > { %14872 = vmatprep.mubr.msk.f32.mxu0 %vm8017_vm4, %v19417_v41  ;;  %v18760_v41 = vld [vmem:[#allocation4 + $0x182] sm:$0xff] }
 0x6ce   : > { %14873 = vmatmul.mubr.msk.f32.gmra.mrb[86].mxu0 %vm8017_vm4, %v19418_v10 }
 0x6cf   : > { %14875 = vmatprep.mubr.msk.f32.mxu0 %vm8017_vm4, %v19419_v27  ;;  %v18764_v27 = vld [vmem:[#allocation4 + $0x18a] sm:$0xff] }
 0x6d2   : > { %14876 = vmatmul.mubr.msk.f32.gmra.mrb[88].mxu0 %vm8017_vm4, %v18534_v50 }
 0x6d3   : > { %14878 = vmatprep.mubr.msk.f32.mxu0 %vm8017_vm4, %v19420_v18 }
 0x6d6   : > { %14879 = vmatmul.mubr.msk.f32.gmra.mrb[90].mxu0 %vm8017_vm4, %v18542_v37 }
 0x6d7   : > { %14881 = vmatprep.mubr.msk.f32.mxu0 %vm8017_vm4, %v18546_v62  ;;  %v12652_v62 = vld [vmem:[%s19100_s7 + $0x40] sm:$0xff] }
 0x6da   : > { %14882 = vmatmul.mubr.msk.f32.gmra.mrb[92].mxu0 %vm8017_vm4, %v18550_v34 }
 0x6db   : > { %14884 = vmatprep.mubr.msk.f32.mxu0 %vm8017_vm4, %v18760_v41 }
 0x6de   : > { %14885 = vmatmul.mubr.msk.f32.gmra.mrb[94].mxu0 %vm8017_vm4, %v18764_v27 }
 0x6df   : > { %14889 = vmatprep.mubr.msk.f32.mxu0 %vm8017_vm4, %v18313_v15  ;;  %v10394_v15 = vld [vmem:[#allocation4 + $0x198] sm:$0xff] }
 0x6e2   : > { %14890 = vmatmul.mubr.msk.f32.vlgmr.msra.gmra.mrb[64].mxu0 %vm8017_vm4, %v18317_v17  ;;  %v10395_v17 = vld [vmem:[#allocation4 + $0x1a0] sm:$0xff] }
 0x6e3   : > { %14938 = vmatpush3.msra.mxu0 %v12619_v32  ;;  %14892 = vmatprep.mubr.msk.f32.mxu0 %vm8017_vm4, %v18321_v1  ;;  %v10751_v1 = vld [vmem:[#allocation4 + $0x31] sm:$0xff] }
 0x6e4   : > { %14987 = vmatprep.subr.mxu0 %v12652_v62 }
 0x6e6   : > { %14893 = vmatmul.mubr.msk.f32.gmra.mrb[66].mxu0 %vm8017_vm4, %v18325_v39  ;;  %v10752_v39 = vld [vmem:[#allocation4 + $0x39] sm:$0xff] }
 0x6e7   : > { %14895 = vmatprep.mubr.msk.f32.mxu0 %vm8017_vm4, %v18329_v21  ;;  %v10753_v21 = vld [vmem:[#allocation4 + $0x49] sm:$0xff] }
 0x6ea   : > { %14896 = vmatmul.mubr.msk.f32.gmra.mrb[68].mxu0 %vm8017_vm4, %v18333_v44  ;;  %v10754_v44 = vld [vmem:[#allocation4 + $0x51] sm:$0xff] }
 0x6eb   : > { %14898 = vmatprep.mubr.msk.f32.mxu0 %vm8017_vm4, %v18337_v23  ;;  %v10755_v23 = vld [vmem:[#allocation4 + $0x61] sm:$0xff] }
 0x6ee   : > { %14899 = vmatmul.mubr.msk.f32.gmra.mrb[70].mxu0 %vm8017_vm4, %v18341_v30  ;;  %v10756_v30 = vld [vmem:[#allocation4 + $0x69] sm:$0xff] }
 0x6ef   : > { %14901 = vmatprep.mubr.msk.f32.mxu0 %vm8017_vm4, %v18345_v20  ;;  %v10757_v20 = vld [vmem:[#allocation4 + $0x79] sm:$0xff] }
 0x6f2   : > { %14902 = vmatmul.mubr.msk.f32.gmra.mrb[72].mxu0 %vm8017_vm4, %v18349_v58  ;;  %v10758_v58 = vld [vmem:[#allocation4 + $0x81] sm:$0xff] }
 0x6f3   : > { %14904 = vmatprep.mubr.msk.f32.mxu0 %vm8017_vm4, %v18353_v2  ;;  %v10759_v2 = vld [vmem:[#allocation4 + $0x91] sm:$0xff] }
 0x6f6   : > { %14905 = vmatmul.mubr.msk.f32.gmra.mrb[74].mxu0 %vm8017_vm4, %v18357_v4  ;;  %v10760_v4 = vld [vmem:[#allocation4 + $0x99] sm:$0xff] }
 0x6f7   : > { %14907 = vmatprep.mubr.msk.f32.mxu0 %vm8017_vm4, %v18361_v22  ;;  %v10761_v22 = vld [vmem:[#allocation4 + $0xa9] sm:$0xff] }
 0x6fa   : > { %14908 = vmatmul.mubr.msk.f32.gmra.mrb[76].mxu0 %vm8017_vm4, %v18365_v6  ;;  %v10762_v6 = vld [vmem:[#allocation4 + $0xb1] sm:$0xff] }
 0x6fb   : > { %14910 = vmatprep.mubr.msk.f32.mxu0 %vm8017_vm4, %v18369_v0  ;;  %v19433_v0 = vld [vmem:[#allocation28_spill] sm:$0xff] }
 0x6fe   : > { %14911 = vmatmul.mubr.msk.f32.gmra.mrb[78].mxu0 %vm8017_vm4, %v18373_v48  ;;  %v19434_v48 = vld [vmem:[#allocation32_spill] sm:$0xff] }
 0x6ff   : > { %14913 = vmatprep.mubr.msk.f32.mxu0 %vm8017_vm4, %v18377_v28  ;;  %v19435_v28 = vld [vmem:[#allocation34_spill] sm:$0xff] }
 0x702   : > { %14914 = vmatmul.mubr.msk.f32.gmra.mrb[80].mxu0 %vm8017_vm4, %v18381_v14  ;;  %v19436_v14 = vld [vmem:[#allocation36_spill] sm:$0xff] }
 0x703   : > { %14916 = vmatprep.mubr.msk.f32.mxu0 %vm8017_vm4, %v18385_v42  ;;  %v11168_v42 = vld [vmem:[#allocation4 + $0x19a] sm:$0xff] }
 0x706   : > { %14917 = vmatmul.mubr.msk.f32.gmra.mrb[82].mxu0 %vm8017_vm4, %v18389_v29  ;;  %v18948_v29 = vld [vmem:[%s19101_s8] ss:$0 sm:$0xff] }
 0x707   : > { %14919 = vmatprep.mubr.msk.f32.mxu0 %vm8017_vm4, %v18393_v38 }
 0x70a   : > { %14920 = vmatmul.mubr.msk.f32.gmra.mrb[84].mxu0 %vm8017_vm4, %v18397_v47  ;;  %v18953_v47 = vld [vmem:[%s19102_s9] ss:$0 sm:$0xff] }
 0x70b   : > { %14922 = vmatprep.mubr.msk.f32.mxu0 %vm8017_vm4, %v18401_v55 }
 0x70e   : > { %14923 = vmatmul.mubr.msk.f32.gmra.mrb[86].mxu0 %vm8017_vm4, %v18405_v57 }
 0x70f   : > { %14925 = vmatprep.mubr.msk.f32.mxu0 %vm8017_vm4, %v18409_v59 }
 0x712   : > { %14926 = vmatmul.mubr.msk.f32.gmra.mrb[88].mxu0 %vm8017_vm4, %v18413_v61 }
 0x713   : > { %14928 = vmatprep.mubr.msk.f32.mxu0 %vm8017_vm4, %v18417_v7 }
 0x716   : > { %14929 = vmatmul.mubr.msk.f32.gmra.mrb[90].mxu0 %vm8017_vm4, %v18421_v5 }
 0x717   : > { %14931 = vmatprep.mubr.msk.f32.mxu0 %vm8017_vm4, %v18618_v49 }
 0x71a   : > { %14932 = vmatmul.mubr.msk.f32.gmra.mrb[92].mxu0 %vm8017_vm4, %v18622_v13 }
 0x71b   : > { %14934 = vmatprep.mubr.msk.f32.mxu0 %vm8017_vm4, %v10394_v15 }
 0x71e   : > { %14935 = vmatmul.mubr.msk.f32.gmra.mrb[94].mxu0 %vm8017_vm4, %v10395_v17 }
 0x71f   : > { %14939 = vmatprep.mubr.msk.f32.mxu0 %vm8017_vm4, %v10751_v1 }
 0x722   : > { %14940 = vmatmul.mubr.msk.f32.vlgmr.msra.gmra.mrb[64].mxu0 %vm8017_vm4, %v10752_v39 }
 0x723   : > { %14988 = vmatpush3.msra.mxu0 %v12652_v62  ;;  %14942 = vmatprep.mubr.msk.f32.mxu0 %vm8017_vm4, %v10753_v21 }
 0x726   : > { %14943 = vmatmul.mubr.msk.f32.gmra.mrb[66].mxu0 %vm8017_vm4, %v10754_v44 }
 0x727   : > { %14945 = vmatprep.mubr.msk.f32.mxu0 %vm8017_vm4, %v10755_v23 }
 0x72a   : > { %14946 = vmatmul.mubr.msk.f32.gmra.mrb[68].mxu0 %vm8017_vm4, %v10756_v30 }
 0x72b   : > { %14948 = vmatprep.mubr.msk.f32.mxu0 %vm8017_vm4, %v10757_v20 }
 0x72e   : > { %14949 = vmatmul.mubr.msk.f32.gmra.mrb[70].mxu0 %vm8017_vm4, %v10758_v58 }
 0x72f   : > { %14951 = vmatprep.mubr.msk.f32.mxu0 %vm8017_vm4, %v10759_v2 }
 0x732   : > { %14952 = vmatmul.mubr.msk.f32.gmra.mrb[72].mxu0 %vm8017_vm4, %v10760_v4 }
 0x733   : > { %14954 = vmatprep.mubr.msk.f32.mxu0 %vm8017_vm4, %v10761_v22 }
 0x736   : > { %14955 = vmatmul.mubr.msk.f32.gmra.mrb[74].mxu0 %vm8017_vm4, %v10762_v6 }
 0x737   : > { %14957 = vmatprep.mubr.msk.f32.mxu0 %vm8017_vm4, %v18189_v56  ;;  %v10781_v56 = vld [vmem:[#allocation4 + $0x199] sm:$0xff] }
 0x73a   : > { %14958 = vmatmul.mubr.msk.f32.gmra.mrb[76].mxu0 %vm8017_vm4, %v18196_v16  ;;  %v10782_v16 = vld [vmem:[#allocation4 + $0x1a1] sm:$0xff] }
 0x73b   : > { %14960 = vmatprep.mubr.msk.f32.mxu0 %vm8017_vm4, %v18205_v36  ;;  %v19421_v36 = vld [vmem:[#allocation15_spill] sm:$0xff] }
 0x73e   : > { %14961 = vmatmul.mubr.msk.f32.gmra.mrb[78].mxu0 %vm8017_vm4, %v18212_v53  ;;  %v19422_v53 = vld [vmem:[#allocation16_spill] sm:$0xff] }
 0x73f   : > { %14963 = vmatprep.mubr.msk.f32.mxu0 %vm8017_vm4, %v18221_v19  ;;  %v19423_v19 = vld [vmem:[#allocation17_spill] sm:$0xff] }
 0x742   : > { %14964 = vmatmul.mubr.msk.f32.gmra.mrb[80].mxu0 %vm8017_vm4, %v18228_v51  ;;  %v19424_v51 = vld [vmem:[#allocation18_spill] sm:$0xff] }
 0x743   : > { %14966 = vmatprep.mubr.msk.f32.mxu0 %vm8017_vm4, %v18237_v52  ;;  %v19425_v52 = vld [vmem:[#allocation19_spill] sm:$0xff] }
 0x746   : > { %14967 = vmatmul.mubr.msk.f32.gmra.mrb[82].mxu0 %vm8017_vm4, %v18244_v25  ;;  %v19426_v25 = vld [vmem:[#allocation20_spill] sm:$0xff] }
 0x747   : > { %14969 = vmatprep.mubr.msk.f32.mxu0 %vm8017_vm4, %v18253_v26  ;;  %v19427_v26 = vld [vmem:[#allocation21_spill] sm:$0xff] }
 0x74a   : > { %14970 = vmatmul.mubr.msk.f32.gmra.mrb[84].mxu0 %vm8017_vm4, %v18260_v40  ;;  %v19428_v40 = vld [vmem:[#allocation22_spill] sm:$0xff] }
 0x74b   : > { %14972 = vmatprep.mubr.msk.f32.mxu0 %vm8017_vm4, %v18268_v3  ;;  %v19429_v3 = vld [vmem:[#allocation23_spill] sm:$0xff] }
 0x74e   : > { %14973 = vmatmul.mubr.msk.f32.gmra.mrb[86].mxu0 %vm8017_vm4, %v18274_v11  ;;  %v19430_v11 = vld [vmem:[#allocation24_spill] sm:$0xff] }
 0x74f   : > { %14975 = vmatprep.mubr.msk.f32.mxu0 %vm8017_vm4, %v18279_v54  ;;  %v19431_v54 = vld [vmem:[#allocation25_spill] sm:$0xff] }
 0x752   : > { %14976 = vmatmul.mubr.msk.f32.gmra.mrb[88].mxu0 %vm8017_vm4, %v18284_v24  ;;  %v19432_v24 = vld [vmem:[#allocation26_spill] sm:$0xff] }
 0x753   : > { %14978 = vmatprep.mubr.msk.f32.mxu0 %vm8017_vm4, %v19393_v33 }
 0x756   : > { %14979 = vmatmul.mubr.msk.f32.gmra.mrb[90].mxu0 %vm8017_vm4, %v19394_v45 }
 0x757   : > { %14981 = vmatprep.mubr.msk.f32.mxu0 %vm8017_vm4, %v18689_v9 }
 0x75a   : > { %14982 = vmatmul.mubr.msk.f32.gmra.mrb[92].mxu0 %vm8017_vm4, %v18693_v46 }
 0x75b   : > { %14984 = vmatprep.mubr.msk.f32.mxu0 %vm8017_vm4, %v10781_v56 }
 0x75e   : > { %14985 = vmatmul.mubr.msk.f32.gmra.mrb[94].mxu0 %vm8017_vm4, %v10782_v16 }
 0x75f   : > { %14989 = vmatprep.mubr.msk.f32.mxu0 %vm8017_vm4, %v19397_v60 }
 0x762   : > { %14990 = vmatmul.mubr.msk.f32.vlgmr.msra.gmra.mrb[64].mxu0 %vm8017_vm4, %v19398_v8 }
 0x763   : > { %14992 = vmatprep.mubr.msk.f32.mxu0 %vm8017_vm4, %v19399_v31 }
 0x766   : > { %14993 = vmatmul.mubr.msk.f32.gmra.mrb[66].mxu0 %vm8017_vm4, %v19421_v36 }
 0x767   : > { %14995 = vmatprep.mubr.msk.f32.mxu0 %vm8017_vm4, %v19422_v53 }
 0x76a   : > { %14996 = vmatmul.mubr.msk.f32.gmra.mrb[68].mxu0 %vm8017_vm4, %v19423_v19 }
 0x76b   : > { %14998 = vmatprep.mubr.msk.f32.mxu0 %vm8017_vm4, %v19424_v51 }
 0x76e   : > { %14999 = vmatmul.mubr.msk.f32.gmra.mrb[70].mxu0 %vm8017_vm4, %v19425_v52 }
 0x76f   : > { %15001 = vmatprep.mubr.msk.f32.mxu0 %vm8017_vm4, %v19426_v25 }
 0x772   : > { %15002 = vmatmul.mubr.msk.f32.gmra.mrb[72].mxu0 %vm8017_vm4, %v19427_v26 }
 0x773   : > { %15004 = vmatprep.mubr.msk.f32.mxu0 %vm8017_vm4, %v19428_v40 }
 0x776   : > { %15005 = vmatmul.mubr.msk.f32.gmra.mrb[74].mxu0 %vm8017_vm4, %v19429_v3 }
 0x777   : > { %15007 = vmatprep.mubr.msk.f32.mxu0 %vm8017_vm4, %v19430_v11 }
 0x77a   : > { %15008 = vmatmul.mubr.msk.f32.gmra.mrb[76].mxu0 %vm8017_vm4, %v19431_v54 }
 0x77b   : > { %15010 = vmatprep.mubr.msk.f32.mxu0 %vm8017_vm4, %v19432_v24 }
 0x77e   : > { %15011 = vmatmul.mubr.msk.f32.gmra.mrb[78].mxu0 %vm8017_vm4, %v19412_v43 }
 0x77f   : > { %15013 = vmatprep.mubr.msk.f32.mxu0 %vm8017_vm4, %v19433_v0 }
 0x782   : > { %15014 = vmatmul.mubr.msk.f32.gmra.mrb[80].mxu0 %vm8017_vm4, %v19414_v12 }
 0x783   : > { %15016 = vmatprep.mubr.msk.f32.mxu0 %vm8017_vm4, %v19415_v35 }
 0x786   : > { %15017 = vmatmul.mubr.msk.f32.gmra.mrb[82].mxu0 %vm8017_vm4, %v19416_v63 }
 0x787   : > { %15019 = vmatprep.mubr.msk.f32.mxu0 %vm8017_vm4, %v19434_v48 }
 0x78a   : > { %15020 = vmatmul.mubr.msk.f32.gmra.mrb[84].mxu0 %vm8017_vm4, %v19418_v10 }
 0x78b   : > { %15022 = vmatprep.mubr.msk.f32.mxu0 %vm8017_vm4, %v19435_v28 }
 0x78e   : > { %15023 = vmatmul.mubr.msk.f32.gmra.mrb[86].mxu0 %vm8017_vm4, %v18534_v50  ;;  %v11169_v50 = vld [vmem:[#allocation4 + $0x1a2] sm:$0xff] }
 0x78f   : > { %15025 = vmatprep.mubr.msk.f32.mxu0 %vm8017_vm4, %v19420_v18 }
 0x792   : > { %15026 = vmatmul.mubr.msk.f32.gmra.mrb[88].mxu0 %vm8017_vm4, %v18542_v37 }
 0x793   : > { %15028 = vmatprep.mubr.msk.f32.mxu0 %vm8017_vm4, %v19436_v14 }
 0x796   : > { %15029 = vmatmul.mubr.msk.f32.gmra.mrb[90].mxu0 %vm8017_vm4, %v18550_v34 }
 0x797   : > { %15031 = vmatprep.mubr.msk.f32.mxu0 %vm8017_vm4, %v18760_v41 }
 0x79a   : > { %15032 = vmatmul.mubr.msk.f32.gmra.mrb[92].mxu0 %vm8017_vm4, %v18764_v27 }
 0x79b   : > { %15034 = vmatprep.mubr.msk.f32.mxu0 %vm8017_vm4, %v11168_v42 }
 0x79e   : > { %15035 = vmatmul.mubr.msk.f32.gmra.mrb[94].mxu0 %vm8017_vm4, %v11169_v50 }
 0x835   : > { %v14991_v38 = vpop.f32.mrb[64].mxu0 }
 0x836   : > { %v11533_v55 = vmul.f32 %v14991_v38, %v18948_v29  ;;  %v11334_v57 = vpop.f32.mrb[65].mxu0 }
 0x837   : > { %v11532_v59 = vmul.f32 %v18948_v29, %v11334_v57 }
 0x838   : > { %v11572_v61 = vadd.f32 %v18953_v47, %v11533_v55 }
 0x839   : > { %v11571_v7 = vadd.f32 %v18953_v47, %v11532_v59  ;;  %v14994_v5 = vpop.f32.mrb[66].mxu0 }
 0x83a   : > { %v11604_v37 = vmax.f32 %v11572_v61, 0.0  ;;  %v11535_v62 = vmul.f32 %v14994_v5, %v18948_v29  ;;  %v11344_v34 = vpop.f32.mrb[67].mxu0 }
 0x83b   : > { %v11603_v49 = vmax.f32 %v11571_v7, 0.0  ;;  %v11534_v13 = vmul.f32 %v18948_v29, %v11344_v34 }
 0x83c   : > { %11636 = vst.msk [vmem:[%s18963_s28 + $0x8] sm:$0xff] %vm8017_vm4, %v11604_v37  ;;  %v11574_v33 = vadd.f32 %v18953_v47, %v11535_v62 }
 0x83d   : > { %11635 = vst.msk [vmem:[%s18963_s28] sm:$0xff] %vm8017_vm4, %v11603_v49  ;;  %v11573_v45 = vadd.f32 %v18953_v47, %v11534_v13  ;;  %v14997_v9 = vpop.f32.mrb[68].mxu0 }
 0x83e   : > { %v11606_v46 = vmax.f32 %v11574_v33, 0.0  ;;  %v11537_v32 = vmul.f32 %v14997_v9, %v18948_v29  ;;  %v11354_v60 = vpop.f32.mrb[69].mxu0 }
 0x83f   : > { %v11605_v8 = vmax.f32 %v11573_v45, 0.0  ;;  %v11536_v31 = vmul.f32 %v18948_v29, %v11354_v60 }
 0x840   : > { %11638 = vst.msk [vmem:[%s18963_s28 + $0x18] sm:$0xff] %vm8017_vm4, %v11606_v46  ;;  %v11576_v63 = vadd.f32 %v18953_v47, %v11537_v32 }
 0x841   : > { %11637 = vst.msk [vmem:[%s18963_s28 + $0x10] sm:$0xff] %vm8017_vm4, %v11605_v8  ;;  %v11575_v41 = vadd.f32 %v18953_v47, %v11536_v31  ;;  %v15000_v10 = vpop.f32.mrb[70].mxu0 }
 0x842   : > { %v11608_v27 = vmax.f32 %v11576_v63, 0.0  ;;  %v11539_v43 = vmul.f32 %v15000_v10, %v18948_v29  ;;  %v11364_v18 = vpop.f32.mrb[71].mxu0 }
 0x843   : > { %v11607_v12 = vmax.f32 %v11575_v41, 0.0  ;;  %v11538_v35 = vmul.f32 %v18948_v29, %v11364_v18 }
 0x844   : > { %11640 = vst.msk [vmem:[%s18963_s28 + $0x28] sm:$0xff] %vm8017_vm4, %v11608_v27  ;;  %v11578_v15 = vadd.f32 %v18953_v47, %v11539_v43 }
 0x845   : > { %11639 = vst.msk [vmem:[%s18963_s28 + $0x20] sm:$0xff] %vm8017_vm4, %v11607_v12  ;;  %v11577_v17 = vadd.f32 %v18953_v47, %v11538_v35  ;;  %v15003_v1 = vpop.f32.mrb[72].mxu0 }
 0x846   : > { %v11610_v39 = vmax.f32 %v11578_v15, 0.0  ;;  %v11541_v21 = vmul.f32 %v15003_v1, %v18948_v29  ;;  %v11374_v44 = vpop.f32.mrb[73].mxu0 }
 0x847   : > { %v11609_v23 = vmax.f32 %v11577_v17, 0.0  ;;  %v11540_v30 = vmul.f32 %v18948_v29, %v11374_v44 }
 0x848   : > { %11642 = vst.msk [vmem:[%s18963_s28 + $0x38] sm:$0xff] %vm8017_vm4, %v11610_v39  ;;  %v11580_v20 = vadd.f32 %v18953_v47, %v11541_v21 }
 0x849   : > { %11641 = vst.msk [vmem:[%s18963_s28 + $0x30] sm:$0xff] %vm8017_vm4, %v11609_v23  ;;  %v11579_v58 = vadd.f32 %v18953_v47, %v11540_v30  ;;  %v15006_v2 = vpop.f32.mrb[74].mxu0 }
 0x84a   : > { %v11612_v4 = vmax.f32 %v11580_v20, 0.0  ;;  %v11543_v22 = vmul.f32 %v15006_v2, %v18948_v29  ;;  %v11384_v6 = vpop.f32.mrb[75].mxu0 }
 0x84b   : > { %v11611_v56 = vmax.f32 %v11579_v58, 0.0  ;;  %v11542_v16 = vmul.f32 %v18948_v29, %v11384_v6 }
 0x84c   : > { %11644 = vst.msk [vmem:[%s18963_s28 + $0x48] sm:$0xff] %vm8017_vm4, %v11612_v4  ;;  %v11582_v36 = vadd.f32 %v18953_v47, %v11543_v22 }
 0x84d   : > { %11643 = vst.msk [vmem:[%s18963_s28 + $0x40] sm:$0xff] %vm8017_vm4, %v11611_v56  ;;  %v11581_v53 = vadd.f32 %v18953_v47, %v11542_v16  ;;  %v15009_v19 = vpop.f32.mrb[76].mxu0 }
 0x84e   : > { %v11614_v51 = vmax.f32 %v11582_v36, 0.0  ;;  %v11545_v52 = vmul.f32 %v15009_v19, %v18948_v29  ;;  %v11394_v25 = vpop.f32.mrb[77].mxu0 }
 0x84f   : > { %v11613_v26 = vmax.f32 %v11581_v53, 0.0  ;;  %v11544_v40 = vmul.f32 %v18948_v29, %v11394_v25 }
 0x850   : > { %11646 = vst.msk [vmem:[%s18963_s28 + $0x58] sm:$0xff] %vm8017_vm4, %v11614_v51  ;;  %v11584_v3 = vadd.f32 %v18953_v47, %v11545_v52 }
 0x851   : > { %11645 = vst.msk [vmem:[%s18963_s28 + $0x50] sm:$0xff] %vm8017_vm4, %v11613_v26  ;;  %v11583_v11 = vadd.f32 %v18953_v47, %v11544_v40  ;;  %v15012_v54 = vpop.f32.mrb[78].mxu0 }
 0x852   : > { %v11616_v24 = vmax.f32 %v11584_v3, 0.0  ;;  %v11547_v0 = vmul.f32 %v15012_v54, %v18948_v29  ;;  %v11404_v48 = vpop.f32.mrb[79].mxu0 }
 0x853   : > { %v11615_v28 = vmax.f32 %v11583_v11, 0.0  ;;  %v11546_v14 = vmul.f32 %v18948_v29, %v11404_v48 }
 0x854   : > { %11648 = vst.msk [vmem:[%s18963_s28 + $0x68] sm:$0xff] %vm8017_vm4, %v11616_v24  ;;  %v11586_v42 = vadd.f32 %v18953_v47, %v11547_v0 }
 0x855   : > { %11647 = vst.msk [vmem:[%s18963_s28 + $0x60] sm:$0xff] %vm8017_vm4, %v11615_v28  ;;  %v11585_v50 = vadd.f32 %v18953_v47, %v11546_v14  ;;  %v15015_v38 = vpop.f32.mrb[80].mxu0 }
 0x856   : > { %v11618_v55 = vmax.f32 %v11586_v42, 0.0  ;;  %v11549_v57 = vmul.f32 %v15015_v38, %v18948_v29  ;;  %v11414_v59 = vpop.f32.mrb[81].mxu0 }
 0x857   : > { %v11617_v61 = vmax.f32 %v11585_v50, 0.0  ;;  %v11548_v7 = vmul.f32 %v18948_v29, %v11414_v59 }
 0x858   : > { %11650 = vst.msk [vmem:[%s18963_s28 + $0x78] sm:$0xff] %vm8017_vm4, %v11618_v55  ;;  %v11588_v5 = vadd.f32 %v18953_v47, %v11549_v57 }
 0x859   : > { %11649 = vst.msk [vmem:[%s18963_s28 + $0x70] sm:$0xff] %vm8017_vm4, %v11617_v61  ;;  %v11587_v37 = vadd.f32 %v18953_v47, %v11548_v7  ;;  %v15018_v62 = vpop.f32.mrb[82].mxu0 }
 0x85a   : > { %v11620_v34 = vmax.f32 %v11588_v5, 0.0  ;;  %v11551_v49 = vmul.f32 %v15018_v62, %v18948_v29  ;;  %v11424_v13 = vpop.f32.mrb[83].mxu0 }
 0x85b   : > { %v11619_v33 = vmax.f32 %v11587_v37, 0.0  ;;  %v11550_v45 = vmul.f32 %v18948_v29, %v11424_v13 }
 0x85c   : > { %11652 = vst.msk [vmem:[%s18963_s28 + $0x88] sm:$0xff] %vm8017_vm4, %v11620_v34  ;;  %v11590_v9 = vadd.f32 %v18953_v47, %v11551_v49 }
 0x85d   : > { %11651 = vst.msk [vmem:[%s18963_s28 + $0x80] sm:$0xff] %vm8017_vm4, %v11619_v33  ;;  %v11589_v46 = vadd.f32 %v18953_v47, %v11550_v45  ;;  %v15021_v32 = vpop.f32.mrb[84].mxu0 }
 0x85e   : > { %v11622_v60 = vmax.f32 %v11590_v9, 0.0  ;;  %v11553_v8 = vmul.f32 %v15021_v32, %v18948_v29  ;;  %v11434_v31 = vpop.f32.mrb[85].mxu0 }
 0x85f   : > { %v11621_v63 = vmax.f32 %v11589_v46, 0.0  ;;  %v11552_v41 = vmul.f32 %v18948_v29, %v11434_v31 }
 0x860   : > { %11654 = vst.msk [vmem:[%s18963_s28 + $0x98] sm:$0xff] %vm8017_vm4, %v11622_v60  ;;  %v11592_v10 = vadd.f32 %v18953_v47, %v11553_v8 }
 0x861   : > { %11653 = vst.msk [vmem:[%s18963_s28 + $0x90] sm:$0xff] %vm8017_vm4, %v11621_v63  ;;  %v11591_v27 = vadd.f32 %v18953_v47, %v11552_v41  ;;  %v15024_v43 = vpop.f32.mrb[86].mxu0 }
 0x862   : > { %v11624_v18 = vmax.f32 %v11592_v10, 0.0  ;;  %v11555_v12 = vmul.f32 %v15024_v43, %v18948_v29  ;;  %v11444_v35 = vpop.f32.mrb[87].mxu0 }
 0x863   : > { %v11623_v15 = vmax.f32 %v11591_v27, 0.0  ;;  %v11554_v17 = vmul.f32 %v18948_v29, %v11444_v35 }
 0x864   : > { %11656 = vst.msk [vmem:[%s18963_s28 + $0xa8] sm:$0xff] %vm8017_vm4, %v11624_v18  ;;  %v11594_v1 = vadd.f32 %v18953_v47, %v11555_v12 }
 0x865   : > { %11655 = vst.msk [vmem:[%s18963_s28 + $0xa0] sm:$0xff] %vm8017_vm4, %v11623_v15  ;;  %v11593_v39 = vadd.f32 %v18953_v47, %v11554_v17  ;;  %v15027_v21 = vpop.f32.mrb[88].mxu0 }
 0x866   : > { %v11626_v44 = vmax.f32 %v11594_v1, 0.0  ;;  %v11557_v23 = vmul.f32 %v15027_v21, %v18948_v29  ;;  %v11454_v30 = vpop.f32.mrb[89].mxu0 }
 0x867   : > { %v11625_v20 = vmax.f32 %v11593_v39, 0.0  ;;  %v11556_v58 = vmul.f32 %v18948_v29, %v11454_v30 }
 0x868   : > { %11658 = vst.msk [vmem:[%s18963_s28 + $0xb8] sm:$0xff] %vm8017_vm4, %v11626_v44  ;;  %v11596_v2 = vadd.f32 %v18953_v47, %v11557_v23 }
 0x869   : > { %11657 = vst.msk [vmem:[%s18963_s28 + $0xb0] sm:$0xff] %vm8017_vm4, %v11625_v20  ;;  %v11595_v4 = vadd.f32 %v18953_v47, %v11556_v58  ;;  %v15030_v22 = vpop.f32.mrb[90].mxu0 }
 0x86a   : > { %v11628_v6 = vmax.f32 %v11596_v2, 0.0  ;;  %v11559_v56 = vmul.f32 %v15030_v22, %v18948_v29  ;;  %v11464_v16 = vpop.f32.mrb[91].mxu0 }
 0x86b   : > { %v11627_v36 = vmax.f32 %v11595_v4, 0.0  ;;  %v11558_v53 = vmul.f32 %v18948_v29, %v11464_v16 }
 0x86c   : > { %11660 = vst.msk [vmem:[%s18963_s28 + $0xc8] sm:$0xff] %vm8017_vm4, %v11628_v6  ;;  %v11598_v19 = vadd.f32 %v18953_v47, %v11559_v56 }
 0x86d   : > { %11659 = vst.msk [vmem:[%s18963_s28 + $0xc0] sm:$0xff] %vm8017_vm4, %v11627_v36  ;;  %v11597_v51 = vadd.f32 %v18953_v47, %v11558_v53  ;;  %v15033_v52 = vpop.f32.mrb[92].mxu0 }
 0x86e   : > { %v11630_v25 = vmax.f32 %v11598_v19, 0.0  ;;  %v11561_v26 = vmul.f32 %v15033_v52, %v18948_v29  ;;  %v11474_v40 = vpop.f32.mrb[93].mxu0 }
 0x86f   : > { %v11629_v3 = vmax.f32 %v11597_v51, 0.0  ;;  %v11560_v11 = vmul.f32 %v18948_v29, %v11474_v40 }
 0x870   : > { %11662 = vst.msk [vmem:[%s18963_s28 + $0xd8] sm:$0xff] %vm8017_vm4, %v11630_v25  ;;  %v11600_v54 = vadd.f32 %v18953_v47, %v11561_v26 }
 0x871   : > { %11661 = vst.msk [vmem:[%s18963_s28 + $0xd0] sm:$0xff] %vm8017_vm4, %v11629_v3  ;;  %v11599_v24 = vadd.f32 %v18953_v47, %v11560_v11  ;;  %v15036_v0 = vpop.f32.mrb[94].mxu0 }
 0x872   : > { %v11632_v48 = vmax.f32 %v11600_v54, 0.0  ;;  %v11563_v28 = vmul.f32 %v15036_v0, %v18948_v29  ;;  %v11484_v14 = vpop.f32.mrb[95].mxu0 }
 0x873   : > { %v11631_v42 = vmax.f32 %v11599_v24, 0.0  ;;  %v11562_v50 = vmul.f32 %v18948_v29, %v11484_v14 }
 0x874   : > { %11664 = vst.msk [vmem:[%s18963_s28 + $0xe8] sm:$0xff] %vm8017_vm4, %v11632_v48  ;;  %v11602_v38 = vadd.f32 %v18953_v47, %v11563_v28 }
 0x875   : > { %11663 = vst.msk [vmem:[%s18963_s28 + $0xe0] sm:$0xff] %vm8017_vm4, %v11631_v42  ;;  %v11601_v55 = vadd.f32 %v18953_v47, %v11562_v50 }
 0x876   : > { %v11634_v57 = vmax.f32 %v11602_v38, 0.0 }
 0x877   : > { %v11633_v59 = vmax.f32 %v11601_v55, 0.0 }
 0x878   : > { %11666 = vst.msk [vmem:[%s18963_s28 + $0xf8] sm:$0xff] %vm8017_vm4, %v11634_v57 }
 0x879   : > { %11665 = vst.msk [vmem:[%s18963_s28 + $0xf0] sm:$0xff] %vm8017_vm4, %v11633_v59 }
 0x87a PF: > { %s20_s13 = sadd.s32 1, %s15870_s13  }
 0x87b   : > { %p17_p4 = scmp.ge.s32.totalorder %s20_s13, 4  }
 0x87d   :  { %19 = sbr.rel (!%p17_p4) target bundleno = 1 (0x1), region = 123 }

</bundles_post_ra>
